<compile_context>
chip_gen: v7x
topology: tpu7x:2x2x1
jax: 0.10.0
libtpu: 0.0.40
codegen_flags: <defaults>
</compile_context>

<pallas_src>
import jax
import jax.numpy as jnp
import numpy as np
from jax.experimental import pallas as pl
from jax.experimental.pallas import tpu as pltpu


def _elu(v):
    # ELU(alpha=1): x if x > 0 else exp(x) - 1.
    # No clamp: exp() of the positive branch is discarded by the where (finite inputs),
    # saving one VPU op per element on the dominant elementwise tensor.
    return jnp.where(v > 0, v, jnp.exp(v) - 1.0)


def critic_kernel(mean_ref, log_std_ref, noise_ref, pool_ref,
                  w14_ref, b14_ref,
                  w2_ref, b2_ref, w5_ref, b5_ref,
                  w3_ref, w6_ref, b36_ref,
                  o_ref):
    H = w2_ref.shape[0]
    Bt, d = mean_ref.shape
    Np = noise_ref.shape[0]          # padded noise rows (multiple of 8)

    # x = mean + exp(log_std) * noise  for a whole tile of batch rows  -> [Bt, Np, d]
    std = jnp.exp(log_std_ref[...])                                    # [Bt, d]
    x3 = mean_ref[...][:, None, :] + std[:, None, :] * noise_ref[...][None, :, :]
    x = x3.reshape(Bt * Np, d)       # Np % 8 == 0 -> sublane-aligned reshape

    # fused l1|l4: ONE MXU matmul over all batch rows x noise samples, then ELU
    h = jnp.dot(x, w14_ref[...], preferred_element_type=jnp.float32) + b14_ref[...]
    h = _elu(h)                                                         # [Bt*Np, 2H]

    # pooled mean over noise samples: 1/N + pad-mask folded into pool_ref, so this is
    # a single weighted (sublane) reduction per batch row
    h3 = h.reshape(Bt, Np, 2 * H)
    q = jnp.sum(h3 * pool_ref[...], axis=1)                             # [Bt, 2H]

    q1 = q[:, :H]                    # branch-1 pooled features (lane-aligned split)
    q2 = q[:, H:]                    # branch-2 pooled features

    # l2 / l5: [Bt, H] @ [H, H] + ELU
    h1 = _elu(jnp.dot(q1, w2_ref[...], preferred_element_type=jnp.float32) + b2_ref[...])
    h2 = _elu(jnp.dot(q2, w5_ref[...], preferred_element_type=jnp.float32) + b5_ref[...])

    # l3 / l6 heads (out_dim == 1): VPU multiply + lane reduction, skip the MXU
    o1 = jnp.sum(h1 * w3_ref[...], axis=-1, keepdims=True)              # [Bt, 1]
    o2 = jnp.sum(h2 * w6_ref[...], axis=-1, keepdims=True)              # [Bt, 1]

    # lane-dense [Bt, 2] store: q1 in lane 0, q2 in lane 1
    o_ref[...] = jnp.concatenate([o1, o2], axis=-1) + b36_ref[...]


def _choose_b_tile(batch):
    """Keep >=2 grid steps when possible (v7x megacore), sublane-aligned, <=128 rows."""
    if batch <= 8:
        return 8
    tile = min(128, pl.cdiv(batch, 2))
    return max(8, (tile // 8) * 8)


def critic_forward(mean, log_std, params, b_tile=None):
    B, d = mean.shape
    if b_tile is None:
        b_tile = _choose_b_tile(B)
    n_tiles = pl.cdiv(B, b_tile)
    Bp = n_tiles * b_tile
    if Bp != B:                       # pad batch to a whole number of tiles
        pad = ((0, Bp - B), (0, 0))
        mean = jnp.pad(mean, pad)
        log_std = jnp.pad(log_std, pad)

    def full(arr):  # whole array resident in VMEM; constant index_map => fetched once
        return pl.BlockSpec(arr.shape, lambda b, _nd=arr.ndim: (0,) * _nd)

    out = pl.pallas_call(
        critic_kernel,
        grid=(n_tiles,),
        in_specs=[
            pl.BlockSpec((b_tile, d), lambda b: (b, 0)),   # mean tile
            pl.BlockSpec((b_tile, d), lambda b: (b, 0)),   # log_std tile
            full(params["noise"]), full(params["pool"]),
            full(params["w14"]), full(params["b14"]),
            full(params["w2"]),  full(params["b2"]),
            full(params["w5"]),  full(params["b5"]),
            full(params["w3"]),  full(params["w6"]),
            full(params["b36"]),
        ],
        out_specs=pl.BlockSpec((b_tile, 2), lambda b: (b, 0)),
        out_shape=jax.ShapeDtypeStruct((Bp, 2), jnp.float32),
        compiler_params=pltpu.CompilerParams(dimension_semantics=("parallel",)),
    )(mean, log_std, params["noise"], params["pool"],
      params["w14"], params["b14"],
      params["w2"], params["b2"],
      params["w5"], params["b5"],
      params["w3"], params["w6"],
      params["b36"])

    out = out[:B]
    return out[:, 0:1], out[:, 1:2]


def make_params(key, feature_dim, num_noise, hidden_dim):
    """Deterministic init mirroring nn.Linear defaults; weights stored [in, out]."""
    ks = jax.random.split(key, 13)

    def linear(kw, kb, fan_in, fan_out):
        bound = 1.0 / np.sqrt(fan_in)
        w = jax.random.uniform(kw, (fan_in, fan_out), jnp.float32, -bound, bound)
        b = jax.random.uniform(kb, (1, fan_out), jnp.float32, -bound, bound)
        return w, b

    noise = jax.random.normal(ks[0], (num_noise, feature_dim), dtype=jnp.float32)
    # Pad the noise axis to a multiple of 8 (sublane tile); fold 1/N and the pad-row
    # mask into a single pooling vector applied before the sum.
    n_pad = ((num_noise + 7) // 8) * 8
    noise_padded = jnp.pad(noise, ((0, n_pad - num_noise), (0, 0)))
    pool = jnp.where(jnp.arange(n_pad)[:, None] < num_noise,
                     1.0 / num_noise, 0.0).astype(jnp.float32)        # [n_pad, 1]

    w1, b1 = linear(ks[1], ks[2], feature_dim, hidden_dim)     # l1
    w4, b4 = linear(ks[3], ks[4], feature_dim, hidden_dim)     # l4
    w2, b2 = linear(ks[5], ks[6], hidden_dim, hidden_dim)      # l2
    w5, b5 = linear(ks[7], ks[8], hidden_dim, hidden_dim)      # l5
    w3, b3 = linear(ks[9], ks[10], hidden_dim, 1)              # l3
    w6, b6 = linear(ks[11], ks[12], hidden_dim, 1)             # l6

    return dict(
        num_noise=num_noise,
        noise=noise_padded,                      # [n_pad, d]
        pool=pool,                               # [n_pad, 1]  (mask * 1/N)
        w14=jnp.concatenate([w1, w4], axis=1),   # [d, 2H]  (l1 | l4 fused)
        b14=jnp.concatenate([b1, b4], axis=1),   # [1, 2H]
        w2=w2, b2=b2, w5=w5, b5=b5,
        w3=w3.T, w6=w6.T,                        # [1, H] head rows
        b36=jnp.concatenate([b3, b6], axis=1),   # [1, 2]
    )


def critic_reference(mean, log_std, p):
    """Pure-JAX mirror of the PyTorch Critic.forward."""
    std = jnp.exp(log_std)
    B, d = mean.shape
    N = p["num_noise"]
    noise = p["noise"][:N]
    H = p["w2"].shape[0]
    x = (mean[:, None, :] + std[:, None, :] * noise[None, :, :]).reshape(-1, d)

    w1, w4 = p["w14"][:, :H], p["w14"][:, H:]
    b1, b4 = p["b14"][:, :H], p["b14"][:, H:]

    q1 = jax.nn.elu(x @ w1 + b1).reshape(B, N, -1).mean(axis=1)
    q1 = jax.nn.elu(q1 @ p["w2"] + p["b2"])
    q1 = q1 @ p["w3"].T + p["b36"][:, 0:1]

    q2 = jax.nn.elu(x @ w4 + b4).reshape(B, N, -1).mean(axis=1)
    q2 = jax.nn.elu(q2 @ p["w5"] + p["b5"])
    q2 = q2 @ p["w6"].T + p["b36"][:, 1:2]
    return q1, q2


if __name__ == "__main__":
    key = jax.random.PRNGKey(0)
    k_params, k_mean, k_std = jax.random.split(key, 3)

    feature_dim = 16
    num_noise = 20      # module default
    hidden_dim = 256    # module default
    batch = 16          # -> B_TILE=8, grid=(2,): two parallel tiles (v7x megacore)

    params = make_params(k_params, feature_dim, num_noise, hidden_dim)
    mean = jax.random.normal(k_mean, (batch, feature_dim), dtype=jnp.float32)
    log_std = 0.1 * jax.random.normal(k_std, (batch, feature_dim), dtype=jnp.float32) - 0.5

    q1, q2 = critic_forward(mean, log_std, params)
    q1 = jax.block_until_ready(q1)
    q2 = jax.block_until_ready(q2)

    r1, r2 = critic_reference(mean, log_std, params)
    assert q1.shape == (batch, 1) and q2.shape == (batch, 1)
    np.testing.assert_allclose(np.asarray(q1), np.asarray(r1), rtol=1e-4, atol=1e-4)
    np.testing.assert_allclose(np.asarray(q2), np.asarray(r2), rtol=1e-4, atol=1e-4)

    print("KERNEL_OK")
</pallas_src>

<mosaic_0001>
module attributes {stable_mosaic.version = 11 : i64} {
  func.func @critic_kernel(%arg0: i32, %arg1: memref<8x16xf32, #tpu.memory_space<vmem>>, %arg2: memref<8x16xf32, #tpu.memory_space<vmem>>, %arg3: memref<24x16xf32, #tpu.memory_space<vmem>>, %arg4: memref<24x1xf32, #tpu.memory_space<vmem>>, %arg5: memref<16x512xf32, #tpu.memory_space<vmem>>, %arg6: memref<1x512xf32, #tpu.memory_space<vmem>>, %arg7: memref<256x256xf32, #tpu.memory_space<vmem>>, %arg8: memref<1x256xf32, #tpu.memory_space<vmem>>, %arg9: memref<256x256xf32, #tpu.memory_space<vmem>>, %arg10: memref<1x256xf32, #tpu.memory_space<vmem>>, %arg11: memref<1x256xf32, #tpu.memory_space<vmem>>, %arg12: memref<1x256xf32, #tpu.memory_space<vmem>>, %arg13: memref<1x2xf32, #tpu.memory_space<vmem>>, %arg14: memref<8x2xf32, #tpu.memory_space<vmem>>) attributes {dimension_semantics = [#tpu.dimension_semantics<parallel>], iteration_bounds = array<i64: 2>, scalar_prefetch = 0 : i64, scratch_operands = 0 : i64, tpu.core_type = #tpu.core_type<tc>, window_params = [{transform_indices = @transform_0, window_bounds = array<i64: 8, 16>}, {transform_indices = @transform_1, window_bounds = array<i64: 8, 16>}, {pipeline_mode = #tpu.pipeline_mode<synchronous>, transform_indices = @transform_2, window_bounds = array<i64: 24, 16>}, {pipeline_mode = #tpu.pipeline_mode<synchronous>, transform_indices = @transform_3, window_bounds = array<i64: 24, 1>}, {pipeline_mode = #tpu.pipeline_mode<synchronous>, transform_indices = @transform_4, window_bounds = array<i64: 16, 512>}, {pipeline_mode = #tpu.pipeline_mode<synchronous>, transform_indices = @transform_5, window_bounds = array<i64: 1, 512>}, {pipeline_mode = #tpu.pipeline_mode<synchronous>, transform_indices = @transform_6, window_bounds = array<i64: 256, 256>}, {pipeline_mode = #tpu.pipeline_mode<synchronous>, transform_indices = @transform_7, window_bounds = array<i64: 1, 256>}, {pipeline_mode = #tpu.pipeline_mode<synchronous>, transform_indices = @transform_8, window_bounds = array<i64: 256, 256>}, {pipeline_mode = #tpu.pipeline_mode<synchronous>, transform_indices = @transform_9, window_bounds = array<i64: 1, 256>}, {pipeline_mode = #tpu.pipeline_mode<synchronous>, transform_indices = @transform_10, window_bounds = array<i64: 1, 256>}, {pipeline_mode = #tpu.pipeline_mode<synchronous>, transform_indices = @transform_11, window_bounds = array<i64: 1, 256>}, {pipeline_mode = #tpu.pipeline_mode<synchronous>, transform_indices = @transform_12, window_bounds = array<i64: 1, 2>}, {transform_indices = @transform_13, window_bounds = array<i64: 8, 2>}]} {
    %c0 = arith.constant 0 : index
    %c0_0 = arith.constant 0 : index
    %0 = vector.load %arg2[%c0, %c0_0] : memref<8x16xf32, #tpu.memory_space<vmem>>, vector<8x16xf32>
    %1 = math.exp %0 : vector<8x16xf32>
    %c0_1 = arith.constant 0 : index
    %c0_2 = arith.constant 0 : index
    %2 = vector.load %arg1[%c0_1, %c0_2] : memref<8x16xf32, #tpu.memory_space<vmem>>, vector<8x16xf32>
    %3 = vector.shape_cast %2 : vector<8x16xf32> to vector<8x1x16xf32>
    %4 = vector.shape_cast %1 : vector<8x16xf32> to vector<8x1x16xf32>
    %c0_3 = arith.constant 0 : index
    %c0_4 = arith.constant 0 : index
    %5 = vector.load %arg3[%c0_3, %c0_4] : memref<24x16xf32, #tpu.memory_space<vmem>>, vector<24x16xf32>
    %6 = vector.shape_cast %5 : vector<24x16xf32> to vector<1x24x16xf32>
    %7 = vector.broadcast %4 : vector<8x1x16xf32> to vector<8x24x16xf32>
    %8 = vector.broadcast %6 : vector<1x24x16xf32> to vector<8x24x16xf32>
    %9 = arith.mulf %7, %8 : vector<8x24x16xf32>
    %10 = vector.broadcast %3 : vector<8x1x16xf32> to vector<8x24x16xf32>
    %11 = arith.addf %10, %9 : vector<8x24x16xf32>
    %12 = vector.shape_cast %11 : vector<8x24x16xf32> to vector<192x16xf32>
    %c0_5 = arith.constant 0 : index
    %c0_6 = arith.constant 0 : index
    %13 = vector.load %arg5[%c0_5, %c0_6] : memref<16x512xf32, #tpu.memory_space<vmem>>, vector<16x512xf32>
    %cst = arith.constant dense<0.000000e+00> : vector<192x512xf32>
    %14 = tpu.matmul %12, %13, %cst {dimension_numbers = #tpu.dot_dimension_numbers<[1], [0], [0], [1], [0, 0, 1, 1], [], []>} : vector<192x16xf32>, vector<16x512xf32>, vector<192x512xf32> -> vector<192x512xf32>
    %c0_7 = arith.constant 0 : index
    %c0_8 = arith.constant 0 : index
    %15 = vector.load %arg6[%c0_7, %c0_8] : memref<1x512xf32, #tpu.memory_space<vmem>>, vector<1x512xf32>
    %16 = vector.broadcast %15 : vector<1x512xf32> to vector<192x512xf32>
    %17 = arith.addf %14, %16 : vector<192x512xf32>
    %cst_9 = arith.constant 0.000000e+00 : f32
    %18 = vector.broadcast %cst_9 : f32 to vector<192x512xf32>
    %19 = arith.cmpf ogt, %17, %18 : vector<192x512xf32>
    %20 = math.exp %17 : vector<192x512xf32>
    %cst_10 = arith.constant 1.000000e+00 : f32
    %21 = vector.broadcast %cst_10 : f32 to vector<192x512xf32>
    %22 = arith.subf %20, %21 : vector<192x512xf32>
    %23 = arith.select %19, %17, %22 : vector<192x512xi1>, vector<192x512xf32>
    %24 = vector.shape_cast %23 : vector<192x512xf32> to vector<8x24x512xf32>
    %c0_11 = arith.constant 0 : index
    %c0_12 = arith.constant 0 : index
    %25 = vector.load %arg4[%c0_11, %c0_12] : memref<24x1xf32, #tpu.memory_space<vmem>>, vector<24x1xf32>
    %26 = vector.shape_cast %25 : vector<24x1xf32> to vector<1x24x1xf32>
    %27 = vector.broadcast %26 : vector<1x24x1xf32> to vector<8x24x512xf32>
    %28 = arith.mulf %24, %27 : vector<8x24x512xf32>
    %cst_13 = arith.constant dense<0.000000e+00> : vector<8x512xf32>
    %29 = vector.multi_reduction <add>, %28, %cst_13 [1] : vector<8x24x512xf32> to vector<8x512xf32>
    %30 = vector.extract_strided_slice %29 {offsets = [0, 0], sizes = [8, 256], strides = [1, 1]} : vector<8x512xf32> to vector<8x256xf32>
    %31 = vector.extract_strided_slice %29 {offsets = [0, 256], sizes = [8, 256], strides = [1, 1]} : vector<8x512xf32> to vector<8x256xf32>
    %c0_14 = arith.constant 0 : index
    %c0_15 = arith.constant 0 : index
    %32 = vector.load %arg7[%c0_14, %c0_15] : memref<256x256xf32, #tpu.memory_space<vmem>>, vector<256x256xf32>
    %cst_16 = arith.constant dense<0.000000e+00> : vector<8x256xf32>
    %33 = tpu.matmul %30, %32, %cst_16 {dimension_numbers = #tpu.dot_dimension_numbers<[1], [0], [0], [1], [0, 0, 1, 1], [], []>} : vector<8x256xf32>, vector<256x256xf32>, vector<8x256xf32> -> vector<8x256xf32>
    %c0_17 = arith.constant 0 : index
    %c0_18 = arith.constant 0 : index
    %34 = vector.load %arg8[%c0_17, %c0_18] : memref<1x256xf32, #tpu.memory_space<vmem>>, vector<1x256xf32>
    %35 = vector.broadcast %34 : vector<1x256xf32> to vector<8x256xf32>
    %36 = arith.addf %33, %35 : vector<8x256xf32>
    %cst_19 = arith.constant 0.000000e+00 : f32
    %37 = vector.broadcast %cst_19 : f32 to vector<8x256xf32>
    %38 = arith.cmpf ogt, %36, %37 : vector<8x256xf32>
    %39 = math.exp %36 : vector<8x256xf32>
    %cst_20 = arith.constant 1.000000e+00 : f32
    %40 = vector.broadcast %cst_20 : f32 to vector<8x256xf32>
    %41 = arith.subf %39, %40 : vector<8x256xf32>
    %42 = arith.select %38, %36, %41 : vector<8x256xi1>, vector<8x256xf32>
    %c0_21 = arith.constant 0 : index
    %c0_22 = arith.constant 0 : index
    %43 = vector.load %arg9[%c0_21, %c0_22] : memref<256x256xf32, #tpu.memory_space<vmem>>, vector<256x256xf32>
    %cst_23 = arith.constant dense<0.000000e+00> : vector<8x256xf32>
    %44 = tpu.matmul %31, %43, %cst_23 {dimension_numbers = #tpu.dot_dimension_numbers<[1], [0], [0], [1], [0, 0, 1, 1], [], []>} : vector<8x256xf32>, vector<256x256xf32>, vector<8x256xf32> -> vector<8x256xf32>
    %c0_24 = arith.constant 0 : index
    %c0_25 = arith.constant 0 : index
    %45 = vector.load %arg10[%c0_24, %c0_25] : memref<1x256xf32, #tpu.memory_space<vmem>>, vector<1x256xf32>
    %46 = vector.broadcast %45 : vector<1x256xf32> to vector<8x256xf32>
    %47 = arith.addf %44, %46 : vector<8x256xf32>
    %cst_26 = arith.constant 0.000000e+00 : f32
    %48 = vector.broadcast %cst_26 : f32 to vector<8x256xf32>
    %49 = arith.cmpf ogt, %47, %48 : vector<8x256xf32>
    %50 = math.exp %47 : vector<8x256xf32>
    %cst_27 = arith.constant 1.000000e+00 : f32
    %51 = vector.broadcast %cst_27 : f32 to vector<8x256xf32>
    %52 = arith.subf %50, %51 : vector<8x256xf32>
    %53 = arith.select %49, %47, %52 : vector<8x256xi1>, vector<8x256xf32>
    %c0_28 = arith.constant 0 : index
    %c0_29 = arith.constant 0 : index
    %54 = vector.load %arg11[%c0_28, %c0_29] : memref<1x256xf32, #tpu.memory_space<vmem>>, vector<1x256xf32>
    %55 = vector.broadcast %54 : vector<1x256xf32> to vector<8x256xf32>
    %56 = arith.mulf %42, %55 : vector<8x256xf32>
    %cst_30 = arith.constant dense<0.000000e+00> : vector<8xf32>
    %57 = vector.multi_reduction <add>, %56, %cst_30 [1] : vector<8x256xf32> to vector<8xf32>
    %58 = vector.shape_cast %57 : vector<8xf32> to vector<8x1xf32>
    %c0_31 = arith.constant 0 : index
    %c0_32 = arith.constant 0 : index
    %59 = vector.load %arg12[%c0_31, %c0_32] : memref<1x256xf32, #tpu.memory_space<vmem>>, vector<1x256xf32>
    %60 = vector.broadcast %59 : vector<1x256xf32> to vector<8x256xf32>
    %61 = arith.mulf %53, %60 : vector<8x256xf32>
    %cst_33 = arith.constant dense<0.000000e+00> : vector<8xf32>
    %62 = vector.multi_reduction <add>, %61, %cst_33 [1] : vector<8x256xf32> to vector<8xf32>
    %63 = vector.shape_cast %62 : vector<8xf32> to vector<8x1xf32>
    %64 = tpu.concatenate %58, %63 in 1 : vector<8x1xf32>, vector<8x1xf32> -> vector<8x2xf32>
    %c0_34 = arith.constant 0 : index
    %c0_35 = arith.constant 0 : index
    %65 = vector.load %arg13[%c0_34, %c0_35] : memref<1x2xf32, #tpu.memory_space<vmem>>, vector<1x2xf32>
    %66 = vector.broadcast %65 : vector<1x2xf32> to vector<8x2xf32>
    %67 = arith.addf %64, %66 : vector<8x2xf32>
    %c0_36 = arith.constant 0 : index
    %c0_37 = arith.constant 0 : index
    %68 = vector.load %arg14[%c0_36, %c0_37] : memref<8x2xf32, #tpu.memory_space<vmem>>, vector<8x2xf32>
    tpu.vector_store %arg14[%c0_36, %c0_37], %67 {strides = array<i32>} : memref<8x2xf32, #tpu.memory_space<vmem>>, vector<8x2xf32>,
    return
  }
  func.func @transform_0(%arg0: i32) -> (i32, i32) {
    %c0_i32 = arith.constant 0 : i32
    %c0_i32_0 = arith.constant 0 : i32
    return %arg0, %c0_i32 : i32, i32
  }
  func.func @transform_1(%arg0: i32) -> (i32, i32) {
    %c0_i32 = arith.constant 0 : i32
    %c0_i32_0 = arith.constant 0 : i32
    return %arg0, %c0_i32 : i32, i32
  }
  func.func @transform_2(%arg0: i32) -> (i32, i32) {
    %c0_i32 = arith.constant 0 : i32
    %c0_i32_0 = arith.constant 0 : i32
    %c0_i32_1 = arith.constant 0 : i32
    return %c0_i32, %c0_i32_0 : i32, i32
  }
  func.func @transform_3(%arg0: i32) -> (i32, i32) {
    %c0_i32 = arith.constant 0 : i32
    %c0_i32_0 = arith.constant 0 : i32
    %c0_i32_1 = arith.constant 0 : i32
    return %c0_i32, %c0_i32_0 : i32, i32
  }
  func.func @transform_4(%arg0: i32) -> (i32, i32) {
    %c0_i32 = arith.constant 0 : i32
    %c0_i32_0 = arith.constant 0 : i32
    %c0_i32_1 = arith.constant 0 : i32
    return %c0_i32, %c0_i32_0 : i32, i32
  }
  func.func @transform_5(%arg0: i32) -> (i32, i32) {
    %c0_i32 = arith.constant 0 : i32
    %c0_i32_0 = arith.constant 0 : i32
    %c0_i32_1 = arith.constant 0 : i32
    return %c0_i32, %c0_i32_0 : i32, i32
  }
  func.func @transform_6(%arg0: i32) -> (i32, i32) {
    %c0_i32 = arith.constant 0 : i32
    %c0_i32_0 = arith.constant 0 : i32
    %c0_i32_1 = arith.constant 0 : i32
    return %c0_i32, %c0_i32_0 : i32, i32
  }
  func.func @transform_7(%arg0: i32) -> (i32, i32) {
    %c0_i32 = arith.constant 0 : i32
    %c0_i32_0 = arith.constant 0 : i32
    %c0_i32_1 = arith.constant 0 : i32
    return %c0_i32, %c0_i32_0 : i32, i32
  }
  func.func @transform_8(%arg0: i32) -> (i32, i32) {
    %c0_i32 = arith.constant 0 : i32
    %c0_i32_0 = arith.constant 0 : i32
    %c0_i32_1 = arith.constant 0 : i32
    return %c0_i32, %c0_i32_0 : i32, i32
  }
  func.func @transform_9(%arg0: i32) -> (i32, i32) {
    %c0_i32 = arith.constant 0 : i32
    %c0_i32_0 = arith.constant 0 : i32
    %c0_i32_1 = arith.constant 0 : i32
    return %c0_i32, %c0_i32_0 : i32, i32
  }
  func.func @transform_10(%arg0: i32) -> (i32, i32) {
    %c0_i32 = arith.constant 0 : i32
    %c0_i32_0 = arith.constant 0 : i32
    %c0_i32_1 = arith.constant 0 : i32
    return %c0_i32, %c0_i32_0 : i32, i32
  }
  func.func @transform_11(%arg0: i32) -> (i32, i32) {
    %c0_i32 = arith.constant 0 : i32
    %c0_i32_0 = arith.constant 0 : i32
    %c0_i32_1 = arith.constant 0 : i32
    return %c0_i32, %c0_i32_0 : i32, i32
  }
  func.func @transform_12(%arg0: i32) -> (i32, i32) {
    %c0_i32 = arith.constant 0 : i32
    %c0_i32_0 = arith.constant 0 : i32
    %c0_i32_1 = arith.constant 0 : i32
    return %c0_i32, %c0_i32_0 : i32, i32
  }
  func.func @transform_13(%arg0: i32) -> (i32, i32) {
    %c0_i32 = arith.constant 0 : i32
    %c0_i32_0 = arith.constant 0 : i32
    return %arg0, %c0_i32 : i32, i32
  }
}

</mosaic_0001>

<bundles_post_ra>
// kernel: tpu_custom_call.1
= control target key start
LH: loop header
LB: loop body
LE: loop exit
PB: predicated region body
PF: predicated region fallthrough
CT: control target
= control target key end

     0   :  { %s5461_s0 = inlined_call_operand.vmem [shape: f32[16,16], index: 0, kind: input, shape index: {}]   ;;  %s5462_s1 = inlined_call_operand.hbm [shape: f32[16,16], index: 1, kind: input, shape index: {}]   ;;  %s5463_s2 = inlined_call_operand.vmem [shape: f32[24,16], index: 2, kind: input, shape index: {}]   ;;  %s5464_s3 = inlined_call_operand.vmem [shape: f32[24,1], index: 3, kind: input, shape index: {}]   ;;  %s5465_s4 = inlined_call_operand.vmem [shape: f32[16,512], index: 4, kind: input, shape index: {}]   ;;  %s5466_s5 = inlined_call_operand.hbm [shape: f32[1,512], index: 5, kind: input, shape index: {}]   ;;  %s5467_s6 = inlined_call_operand.hbm [shape: f32[256,256], index: 6, kind: input, shape index: {}]   ;;  %s5468_s7 = inlined_call_operand.vmem [shape: f32[1,256], index: 7, kind: input, shape index: {}]   ;;  %s5469_s8 = inlined_call_operand.hbm [shape: f32[256,256], index: 8, kind: input, shape index: {}]   ;;  %s5470_s9 = inlined_call_operand.vmem [shape: f32[1,256], index: 9, kind: input, shape index: {}]   ;;  %s5471_s10 = inlined_call_operand.vmem [shape: f32[1,256], index: 10, kind: input, shape index: {}]   ;;  %s5472_s11 = inlined_call_operand.vmem [shape: f32[1,256], index: 11, kind: input, shape index: {}]   ;;  %s5473_s12 = inlined_call_operand.vmem [shape: f32[1,2], index: 12, kind: input, shape index: {}]   ;;  %s5474_s13 = inlined_call_operand.vmem [shape: f32[16,2], index: 13, kind: output, shape index: {}]  }
   0x1   :  { %5505 = sst [smem:[#allocation68_spill]] %s5466_s5 }
   0x2   :  { %5506 = sst [smem:[#allocation69_spill]] %s5472_s11 }
   0x3   :  { %5507 = sst [smem:[#allocation70_spill]] %s5473_s12 }
   0x4   :  { %5508 = sst [smem:[#allocation71_spill]] %s5474_s13 }
   0x5   :  { %18 = vsyncpa [#allocation3], 0 }
   0x6   :  { %20 = vsyncpa [#allocation3 + $0x1], 0 }
   0x7   :  { %21 = vsyncpa [#allocation5], 0 }
   0x8   :  { %22 = vsyncpa [#allocation8], 0  ;;  %s3477_s25 = smov 0   ;;  %s3479_s26 = smov 0  }
   0x9   :  { %s3481_s27 = smov 0   ;;  %s3483_s28 = smov 0  }
   0xa LB: > { %s3496_s29 = sadd.s32 4294967295, %s3396_s28   ;;  %p74_p0 = scmp.ne.s32.totalorder %s3388_s26, %s3384_s25  ;;  %s3396_s28 = sphi %s3483_s28, %s5680_s28   ;;  %s3392_s27 = sphi %s3481_s27, %s5679_s27   ;;  %s3388_s26 = sphi %s3479_s26, %s5678_s26   ;;  %s3384_s25 = sphi %s3477_s25, %s5677_s25  }
   0xb   : > { %p5475_p1 = scmp.eq.s32.totalorder %s3496_s29, 0  ;;  %p2659_p2 = scmp.ge.s32.totalorder %s3396_s28, 1 }
   0xc   : > { %p342_p3 = scmp.lt.s32.totalorder %s3396_s28, 3  ;;  %s3398_s15 = smov [#allocation4]  }
   0xd   : > { %p3504_p4 = por %p5475_p1, %p74_p0  ;;  %s364_s16 = sshll.u32 %s3398_s15, 4  ;;  %s365_s16 = int_to_ptr.vmem [resolvable:$true] %s364_s16 }
   0xe   : > { %p3508_p5 = pnand %p2659_p2, %p342_p3  ;;  %s3399_s17 = smov [#allocation6]  }
   0xf   : > { %s5509_s30 = scalar_select %p3504_p4, 1, 0 }
  0x10   : > { %s5510_s14 = scalar_select %p3508_p5, 1, 0 }
  0x11   : > { %p2974_p6 = pneg %p3508_p5  ;;  %s374_s18 = sshll.u32 %s3399_s17, 4  ;;  %s3520_s18 = int_to_ptr.vmem [resolvable:$true] %s374_s18 }
  0x12   : > { %s3400_s20 = smov [#allocation7]   ;;  %s5512_s5 = sld [smem:[#allocation68_spill]] }
  0x13   : > { %p3516_p7 = pnand %p2974_p6, %p5475_p1  ;;  %s3522_s21 = sshll.u32 %s3400_s20, 4  ;;  %s391_s21 = int_to_ptr.vmem [resolvable:$true] %s3522_s21 }
  0x15   : > { %p3532_p9 = pneg %p3516_p7 }
  0x18   : > { %s3240_s24 = scalar_lea.hbm %s5512_s5, 64 }
  0x19   : > { %p3241_p8 = scmp.ne.s32.totalorder %s5512_s5, %s3240_s24  ;;  %p3247_p12 = scmp.lt.u32.totalorder %s3240_s24, %s5512_s5 }
  0x1b   : > { %p3243_p10 = pnand %p3532_p9, %p3241_p8 }
  0x1d   : > { %p3244_p11 = pneg %p3243_p10 }
  0x1f   : > { %p3249_p13 = pnand %p3247_p12, %p3244_p11 }
  0x21   : > { %3252 = shalt.err (!%p3249_p13)
}
  0x22   : > { %s3253_s22 = scalar_lea.vmem %s365_s16, 64  ;;  %p3261_p6 = scmp.lt.s32.totalorder %s365_s16, %s365_s16 }
  0x23   : > { %p3254_p0 = scmp.ne.s32.totalorder %s365_s16, %s3253_s22  ;;  %p3262_p1 = scmp.lt.s32.totalorder %s3253_s22, %s3253_s22 }
  0x25   : > { %p3256_p2 = pnand %p3254_p0, %p3532_p9  ;;  %p3263_p4 = por %p3262_p1, %p3261_p6 }
  0x27   : > { %p3257_p3 = pneg %p3256_p2 }
  0x29   : > { %p3264_p5 = pnand %p3263_p4, %p3257_p3 }
  0x2b   : > { %3267 = shalt.err (!%p3264_p5)
}
  0x2c   : > { %2977 = dma.hbm_to_vmem [thread:$0]  (!%p3516_p7), %s5512_s5, 64, %s365_s16, [#allocation5]  }
  0x2d   : > { %s3268_s15 = scalar_lea.hbm %s5467_s6, 8192 }
  0x2e   : > { %p3269_p8 = scmp.ne.s32.totalorder %s5467_s6, %s3268_s15  ;;  %p3275_p4 = scmp.lt.u32.totalorder %s3268_s15, %s5467_s6 }
  0x30   : > { %p3271_p10 = pnand %p3269_p8, %p3532_p9 }
  0x32   : > { %p3272_p1 = pneg %p3271_p10 }
  0x34   : > { %p3277_p5 = pnand %p3275_p4, %p3272_p1 }
  0x36   : > { %3280 = shalt.err (!%p3277_p5)
}
  0x37   : > { %s3281_s16 = scalar_lea.vmem %s3520_s18, 8192  ;;  %p3289_p0 = scmp.lt.s32.totalorder %s3520_s18, %s3520_s18 }
  0x38   : > { %p3282_p11 = scmp.ne.s32.totalorder %s3520_s18, %s3281_s16  ;;  %p3290_p2 = scmp.lt.s32.totalorder %s3281_s16, %s3281_s16 }
  0x3a   : > { %p3284_p12 = pnand %p3282_p11, %p3532_p9  ;;  %p3291_p3 = por %p3290_p2, %p3289_p0 }
  0x3c   : > { %p3285_p13 = pneg %p3284_p12 }
  0x3e   : > { %p3292_p6 = pnand %p3291_p3, %p3285_p13 }
  0x40   : > { %3295 = shalt.err (!%p3292_p6)
}
  0x41   : > { %s3401_s12 = smov 256   ;;  %s3402_s11 = smov 16  }
  0x42   : > { %2980 = dma.hbm_to_vmem [thread:$0]  (!%p3516_p7), %s5467_s6, 8192, %s3520_s18, [#allocation5], %s3401_s12, %s3401_s12, %s3402_s11  }
  0x43   : > { %s3296_s15 = scalar_lea.hbm %s5469_s8, 8192 }
  0x44   : > { %p3297_p8 = scmp.ne.s32.totalorder %s5469_s8, %s3296_s15  ;;  %p3303_p4 = scmp.lt.u32.totalorder %s3296_s15, %s5469_s8 }
  0x46   : > { %p3299_p10 = pnand %p3297_p8, %p3532_p9 }
  0x48   : > { %p3300_p1 = pneg %p3299_p10 }
  0x4a   : > { %p3305_p5 = pnand %p3303_p4, %p3300_p1 }
  0x4c   : > { %3308 = shalt.err (!%p3305_p5)
}
  0x4d   : > { %s3309_s23 = scalar_lea.vmem %s391_s21, 8192  ;;  %p3317_p0 = scmp.lt.s32.totalorder %s391_s21, %s391_s21 }
  0x4e   : > { %p3310_p11 = scmp.ne.s32.totalorder %s391_s21, %s3309_s23  ;;  %p3318_p2 = scmp.lt.s32.totalorder %s3309_s23, %s3309_s23 }
  0x50   : > { %p3312_p12 = pnand %p3310_p11, %p3532_p9  ;;  %p3319_p3 = por %p3318_p2, %p3317_p0 }
  0x52   : > { %p3313_p13 = pneg %p3312_p12 }
  0x54   : > { %p3320_p6 = pnand %p3319_p3, %p3313_p13 }
  0x56   : > { %3323 = shalt.err (!%p3320_p6)
}
  0x57   : > { %2983 = dma.hbm_to_vmem [thread:$0]  (!%p3516_p7), %s5469_s8, 8192, %s391_s21, [#allocation8], %s3401_s12, %s3401_s12, %s3402_s11  }
  0x58   : > { %s3591_s5 = sadd.s32 1, %s3396_s28   ;;  %s61_s13 = sadd.s32 1, %s3392_s27 }
  0x59   : > { %s58_s17 = ssub.s32 %s3396_s28, %s3591_s5  ;;  %p68_p8 = scmp.ne.s32.totalorder %s3392_s27, %s3388_s26 }
  0x5a   : > { %p59_p9 = scmp.eq.s32.totalorder %s58_s17, 0  ;;  %p69_p10 = scmp.eq.s32.totalorder %s3396_s28, 0 }
  0x5b   : > { %p2991_p1 = scmp.lt.s32.totalorder %s3396_s28, 2  ;;  %s423_s24 = sand.u32 1, %s3392_s27  }
  0x5c   : > { %s3601_s19 = scalar_select %p59_p9, %s3392_s27, %s61_s13  }
  0x5d   : > { %p70_p4 = por %p69_p10, %p68_p8  ;;  %s2664_s15 = sshll.u32 %s423_s24, 3 }
  0x5e   : > { %s2665_s20 = sshll.u32 %s3396_s28, 7  ;;  %s427_s21 = scalar_lea.vmem [#allocation2], %s2664_s15 }
  0x5f   : > { %s3608_s23 = scalar_lea.hbm %s5462_s1, %s2665_s20  ;;  %s434_s12 = sshll.u32 %s427_s21, 4  ;;  %s3610_s12 = int_to_ptr.vmem [resolvable:$true] %s434_s12 }
  0x60   : > { %p3612_p7 = pnand %p2991_p1, %p70_p4  ;;  %s424_s28 = scalar_lea.sflag [#allocation3], %s423_s24 }
  0x61   : > { %s3324_s18 = scalar_lea.hbm %s3608_s23, 128  ;;  %s3329_s13 = scalar_lea.hbm %s5462_s1, 256 }
  0x62   : > { %p3325_p5 = scmp.ne.s32.totalorder %s3608_s23, %s3324_s18  ;;  %p3326_p11 = pneg %p3612_p7 }
  0x63   : > { %p3330_p0 = scmp.lt.u32.totalorder %s3608_s23, %s5462_s1  ;;  %p3331_p2 = scmp.lt.u32.totalorder %s3329_s13, %s3324_s18 }
  0x64   : > { %p3327_p12 = pnand %p3326_p11, %p3325_p5  ;;  %p3333_p6 = scmp.lt.u32.totalorder %s3324_s18, %s3608_s23 }
  0x65   : > { %p3332_p3 = por %p3331_p2, %p3330_p0 }
  0x66   : > { %p3328_p13 = pneg %p3327_p12 }
  0x67   : > { %p3334_p9 = por %p3333_p6, %p3332_p3 }
  0x69   : > { %p3335_p8 = pnand %p3334_p9, %p3328_p13 }
  0x6b   : > { %3338 = shalt.err (!%p3335_p8)
}
  0x6c   : > { %s3339_s24 = scalar_lea.vmem %s3610_s12, 128  ;;  %s3403_s22 = smov [#allocation2]  }
  0x6d   : > { %p3340_p10 = scmp.ne.s32.totalorder %s3610_s12, %s3339_s24  ;;  %s3344_s16 = sshll.u32 %s3403_s22, 4  ;;  %s3345_s16 = int_to_ptr.vmem [resolvable:$false] %s3344_s16 }
  0x6e   : > { %s3346_s21 = scalar_lea.vmem %s3345_s16, 256  ;;  %p3347_p5 = scmp.lt.s32.totalorder %s3610_s12, %s3345_s16 }
  0x6f   : > { %p3342_p1 = pnand %p3340_p10, %p3326_p11  ;;  %p3348_p12 = scmp.lt.s32.totalorder %s3346_s21, %s3339_s24 }
  0x71   : > { %p3343_p4 = pneg %p3342_p1  ;;  %p3349_p0 = por %p3348_p12, %p3347_p5 }
  0x73   : > { %p3350_p2 = pnand %p3349_p0, %p3343_p4 }
  0x75   : > { %3353 = shalt.err (!%p3350_p2)
}
  0x76   : > { %2987 = dma.hbm_to_vmem [thread:$0]  (!%p3612_p7), %s3608_s23, 128, %s3610_s12, %s424_s28  }
  0x77   : > { %p5515_p13 = scmp.ne.s32.totalorder %s5510_s14, 0 }
  0x79   : > { %443 = sbr.rel (%p5515_p13) target bundleno = 1026 (0x402), region = 72 }
  0x80   : > { %s445_s18 = sand.u32 1, %s3388_s26   ;;  %p5516_p11 = scmp.ne.s32.totalorder %s5509_s30, 0 }
  0x81   : > { %s2667_s25 = sshll.u32 %s445_s18, 3  ;;  %s446_s17 = scalar_lea.sflag [#allocation3], %s445_s18 }
  0x82   : > { %s449_s13 = scalar_lea.vmem [#allocation2], %s2667_s25 }
  0x83   : > { %3371 = dma.done.wait (%p5516_p11), %s446_s17, 128  }
  0x84   : > { %3373 = vsyncadd (%p5516_p11), %s446_s17, 4294967168  ;;  %p5517_p3 = scmp.eq.s32.totalorder %s3496_s29, 0 }
  0x86   : > { %3375 = dma.done.wait (%p5517_p3), [#allocation5], 8256   ;;  %p5518_p6 = pmov %p5517_p3 }
  0x87   : > { %p5519_p7 = pmov %p5517_p3 }
  0x88   : > { %3377 = vsyncadd (%p5518_p6), [#allocation5], 4294959040 }
  0x89   : > { %3379 = dma.done.wait (%p5519_p7), [#allocation8], 8192   ;;  %p5520_p9 = pmov %p5517_p3 }
  0x8a   : > { %v3404_v0 = vmov 0.0   ;;  %p507_p8 = scmp.lt.s32.totalorder %s3496_s29, 1  ;;  %v3405_v1 = vmov 0   ;;  %v751_v2 = vld [vmem:[%s5465_s4 + $0x8] sm:$0xff]  ;;  %v753_v4 = vld [vmem:[%s5465_s4 + $0x18] sm:$0xff]  ;;  %v750_v7 = vld [vmem:[%s5465_s4] sm:$0xff]  ;;  %v524_v16 = vlaneseq }
  0x8b   : > { %3381 = vsyncadd (%p5520_p9), [#allocation8], 4294959104  ;;  %917 = vmatprep.mubr.f32.mxu0 %v3404_v0  ;;  %1126 = vmatprep.mubr.f32.mxu1 %v3404_v0  ;;  %v755_v3 = vld [vmem:[%s5465_s4 + $0x28] sm:$0xff]  ;;  %v757_v6 = vld [vmem:[%s5465_s4 + $0x38] sm:$0xff]  ;;  %v3406_v14 = vmov 1966171168  }
  0x8c   : > { %3035 = vset.pattern.permute.xlu0 %v3405_v1  ;;  %3036 = vset.pattern.permute.xlu1 %v3405_v1  ;;  %s5682_s29 = smov (!%p507_p8, %s3496_s29), 1  ;;  %v2824_v5 = vpack.c.bf16 %v755_v3, %v751_v2  ;;  %v754_v8 = vld [vmem:[%s5465_s4 + $0x20] sm:$0xff]  ;;  %v2828_v9 = vpack.c.bf16 %v757_v6, %v753_v4  ;;  %v752_v11 = vld [vmem:[%s5465_s4 + $0x10] sm:$0xff]  ;;  %v522_v15 = vunpack.c.l.s4 %v3406_v14  ;;  %v3698_v22 = vshrl.u32 %v524_v16, 7  ;;  %v1752_v23 = vld [vmem:[%s5464_s3 + $0x8] sm:$0xff]  ;;  %s5674_s22 = sld [smem:[#allocation69_spill]] }
  0x8d   : > { %v2826_v10 = vpack.c.bf16 %v754_v8, %v750_v7  ;;  %v756_v12 = vld [vmem:[%s5465_s4 + $0x30] sm:$0xff]  ;;  %v515_v13 = vld [vmem:[%s449_s13] sm:$0xff]  ;;  %s2671_s14 = sshll.u32 %s5682_s29, 3  ;;  %vm780_vm0 = vcmask 130048   ;;  %s5675_s18 = sld [smem:[#allocation70_spill]] }
  0x8e   : > { %2825 = vmatprep.subr.bf16.mxu0 %v2824_v5  ;;  %v2830_v17 = vpack.c.bf16 %v756_v12, %v752_v11  ;;  %v516_v18 = vmul.f32 1.442695, %v515_v13  ;;  %2829 = vmatprep.subr.bf16.mxu1 %v2828_v9  ;;  %v1751_v19 = vld [vmem:[%s5464_s3] sm:$0xff]  ;;  %v1753_v20 = vld [vmem:[%s5464_s3 + $0x10] sm:$0xff]  ;;  %s510_s20 = scalar_lea.vmem %s5461_s0, %s2671_s14  ;;  %v523_v21 = vunpack.c.0.s8 %v522_v15  ;;  %v3712_v30 = vsub.s32 0, %v3698_v22  ;;  %v3723_v34 = vld [vmem:[%s5463_s2 + $0x8] sm:$0xff] }
  0x8f   : > { %2827 = vmatpush1.bf16.msra.mxu0 %v2826_v10  ;;  %1756 = vperm.xlu0 %3035, %v1751_v19   ;;  %v518_v24 = vld [vmem:[%s510_s20] sm:$0xff]  ;;  %v3736_v43 = vld [vmem:[%s5463_s2 + $0x10] sm:$0xff]  ;;  %s5676_s30 = sld [smem:[#allocation71_spill]] }
  0x90   : > { %2831 = vmatpush1.bf16.msra.mxu1 %v2830_v17  ;;  %3038 = vpow2.f32 %v516_v18  ;;  %1766 = vperm.xlu1 %3036, %v1753_v20   ;;  %v3704_v25 = vsub.s32 %v523_v21, %v3698_v22  ;;  %5521 = vst [vmem:[#allocation12_spill] sm:$0xff] %v3712_v30  ;;  %v3718_v33 = vld [vmem:[%s5463_s2] sm:$0xff]  ;;  %v520_v35 = vcombine.high %v518_v24, %v518_v24 }
  0x92   : > { %v527_v26 = vrot.slane %v518_v24, %v3704_v25  ;;  %v3739_v44 = vrot.slane %v520_v35, %v3704_v25 }
  0x93   : > { %1761 = vperm.xlu0 %3035, %v1752_v23  }
  0x94   : > { %v3708_v28 = vrot.slane %v527_v26, %v3704_v25  ;;  %v535_v38 = vcombine.high %v527_v26, %v527_v26  ;;  %v536_v48 = vcombine.high %v3739_v44, %v3739_v44 }
  0x95   : > { %s514_s23 = scalar_lea.vmem %s5676_s30, %s2671_s14 }
  0x96   : > { %v689_v37 = vrot.slane %v3708_v28, %v3712_v30  ;;  %v3742_v46 = vrot.slane %v535_v38, %v3704_v25  ;;  %v3764_v56 = vrot.slane %v536_v48, %v3704_v25  ;;  %v565_v3 = vcombine.high %v3708_v28, %v3708_v28 }
  0x98   : > { %v693_v53 = vrot.slane %v3742_v46, %v3712_v30  ;;  %v568_v58 = vcombine.high %v3764_v56, %v3764_v56  ;;  %v697_v14 = vrot.slane %v565_v3, %v3712_v30  ;;  %v567_v18 = vcombine.high %v3742_v46, %v3742_v46  ;;  %v2123_v3 = vld [vmem:[#allocation6 + $0x10] sm:$0xff] }
  0x9a   : > { %v3039_v27 = vpop.eup %3038  ;;  %v717_v1 = vrot.slane %v568_v58, %v3712_v30  ;;  %v701_v26 = vrot.slane %v567_v18, %v3712_v30  ;;  %v2323_v18 = vld [vmem:[#allocation7 + $0x30] sm:$0xff] }
  0x9b   : > { %v577_v29 = vrot.slane %v3039_v27, %v3704_v25  ;;  %v570_v39 = vcombine.high %v3039_v27, %v3039_v27 }
  0x9d   : > { %v593_v31 = vrot.slane %v577_v29, %v3704_v25  ;;  %v585_v32 = vcombine.high %v577_v29, %v577_v29  ;;  %v3745_v47 = vrot.slane %v570_v39, %v3704_v25 }
  0x9f   : > { %v625_v36 = vrot.slane %v593_v31, %v3712_v30  ;;  %v3731_v42 = vrot.slane %v585_v32, %v3704_v25  ;;  %v586_v52 = vcombine.high %v3745_v47, %v3745_v47  ;;  %v615_v59 = vcombine.high %v593_v31, %v593_v31 }
  0xa0   : > { %v600_v29 = vrot.slane %v3745_v47, %v3704_v25  ;;  %v550_v31 = vrot.slane %v3739_v44, %v3704_v25  ;;  %v709_v47 = vrot.slane %v3764_v56, %v3712_v30 }
  0xa1   : > { %v662_v40 = vmul.f32 %v625_v36, %v3718_v33  ;;  %v663_v41 = vmul.f32 %v625_v36, %v3723_v34  ;;  %v664_v50 = vmul.f32 %v625_v36, %v3736_v43  ;;  %v629_v51 = vrot.slane %v3731_v42, %v3712_v30 }
  0xa2   : > { %v3769_v57 = vrot.slane %v586_v52, %v3704_v25  ;;  %v633_v4 = vrot.slane %v615_v59, %v3712_v30  ;;  %v617_v17 = vcombine.high %v3731_v42, %v3731_v42  ;;  %v641_v36 = vrot.slane %v600_v29, %v3712_v30 }
  0xa3   : > { %v726_v45 = vadd.f32 %v689_v37, %v662_v40  ;;  %v727_v49 = vadd.f32 %v689_v37, %v663_v41  ;;  %v728_v54 = vadd.f32 %v689_v37, %v664_v50  ;;  %v665_v55 = vmul.f32 %v629_v51, %v3718_v33 }
  0xa4   : > { %v618_v60 = vcombine.high %v3769_v57, %v3769_v57  ;;  %v666_v62 = vmul.f32 %v629_v51, %v3723_v34  ;;  %v667_v2 = vmul.f32 %v629_v51, %v3736_v43  ;;  %v668_v13 = vmul.f32 %v633_v4, %v3718_v33 }
  0xa5   : > { %2673 = vmatmul.mubr.msk.f32.vlgmr.msra.gmra.mrb[0].mxu0 %vm780_vm0, %v726_v45  ;;  %2697 = vmatmul.mubr.msk.f32.vlgmr.msra.gmra.mrb[0].mxu1 %vm780_vm0, %v726_v45  ;;  %v729_v61 = vadd.f32 %v693_v53, %v665_v55  ;;  %v669_v16 = vmul.f32 %v633_v4, %v3723_v34  ;;  %v670_v20 = vmul.f32 %v633_v4, %v3736_v43 }
  0xa6   : > { %923 = vmatprep.mubr.f32.mxu0 %v3404_v0  ;;  %1132 = vmatprep.mubr.f32.mxu1 %v3404_v0  ;;  %v653_v63 = vrot.slane %v618_v60, %v3712_v30  ;;  %v730_v6 = vadd.f32 %v693_v53, %v666_v62  ;;  %v731_v12 = vadd.f32 %v693_v53, %v667_v2  ;;  %v2318_v62 = vld [vmem:[#allocation7 + $0x8] sm:$0xff]  ;;  %v2121_v2 = vld [vmem:[#allocation6] sm:$0xff] }
  0xa7   : > { %v732_v15 = vadd.f32 %v697_v14, %v668_v13  ;;  %v733_v19 = vadd.f32 %v697_v14, %v669_v16  ;;  %v637_v21 = vrot.slane %v617_v17, %v3712_v30  ;;  %v734_v23 = vadd.f32 %v697_v14, %v670_v20  ;;  %v2125_v14 = vld [vmem:[#allocation6 + $0x20] sm:$0xff]  ;;  %v2130_v20 = vld [vmem:[#allocation6 + $0x48] sm:$0xff] }
  0xa8   : > { %v683_v5 = vmul.f32 %v653_v63, %v3718_v33  ;;  %v684_v7 = vmul.f32 %v653_v63, %v3723_v34  ;;  %v685_v8 = vmul.f32 %v653_v63, %v3736_v43  ;;  %v674_v25 = vmul.f32 %v641_v36, %v3718_v33  ;;  %v2321_v16 = vld [vmem:[#allocation7 + $0x20] sm:$0xff] }
  0xa9   : > { %2674 = vmatmul.mubr.msk.f32.gmra.mrb[2].mxu0 %vm780_vm0, %v727_v49  ;;  %2698 = vmatmul.mubr.msk.f32.gmra.mrb[2].mxu1 %vm780_vm0, %v727_v49  ;;  %v671_v24 = vmul.f32 %v637_v21, %v3718_v33  ;;  %v672_v28 = vmul.f32 %v637_v21, %v3723_v34  ;;  %v673_v35 = vmul.f32 %v637_v21, %v3736_v43  ;;  %v2132_v21 = vld [vmem:[#allocation6 + $0x58] sm:$0xff] }
  0xaa   : > { %929 = vmatprep.mubr.f32.mxu0 %v3404_v0  ;;  %1138 = vmatprep.mubr.f32.mxu1 %v3404_v0  ;;  %v3793_v9 = vadd.f32 %v717_v1, %v683_v5  ;;  %v3795_v10 = vadd.f32 %v717_v1, %v684_v7  ;;  %v3797_v11 = vadd.f32 %v717_v1, %v685_v8  ;;  %v2320_v1 = vld [vmem:[#allocation7 + $0x18] sm:$0xff]  ;;  %v2319_v7 = vld [vmem:[#allocation7 + $0x10] sm:$0xff] }
  0xab   : > { %v735_v27 = vadd.f32 %v701_v26, %v671_v24  ;;  %v736_v32 = vadd.f32 %v701_v26, %v672_v28  ;;  %v737_v37 = vadd.f32 %v701_v26, %v673_v35  ;;  %v705_v38 = vrot.slane %v550_v31, %v3712_v30  ;;  %v2328_v26 = vld [vmem:[#allocation7 + $0x58] sm:$0xff]  ;;  %v2131_v28 = vld [vmem:[#allocation6 + $0x50] sm:$0xff] }
  0xac   : > { %v675_v40 = vmul.f32 %v641_v36, %v3723_v34  ;;  %v676_v42 = vmul.f32 %v641_v36, %v3736_v43  ;;  %v645_v44 = vrot.slane %v3769_v57, %v3712_v30  ;;  %v616_v50 = vcombine.high %v600_v29, %v600_v29  ;;  %v2327_v35 = vld [vmem:[#allocation7 + $0x50] sm:$0xff] }
  0xad   : > { %2675 = vmatmul.mubr.msk.f32.gmra.mrb[4].mxu0 %vm780_vm0, %v728_v54  ;;  %2699 = vmatmul.mubr.msk.f32.gmra.mrb[4].mxu1 %vm780_vm0, %v728_v54  ;;  %v738_v39 = vadd.f32 %v705_v38, %v674_v25  ;;  %v566_v51 = vcombine.high %v550_v31, %v550_v31  ;;  %v2896_v4 = vpack.c.bf16 %v2320_v1, %v2318_v62  ;;  %v2136_v25 = vld [vmem:[#allocation6 + $0x78] sm:$0xff] }
  0xae   : > { %935 = vmatprep.mubr.f32.mxu0 %v3404_v0  ;;  %1144 = vmatprep.mubr.f32.mxu1 %v3404_v0  ;;  %v739_v41 = vadd.f32 %v705_v38, %v675_v40  ;;  %v740_v45 = vadd.f32 %v705_v38, %v676_v42  ;;  %v677_v46 = vmul.f32 %v645_v44, %v3718_v33  ;;  %v2330_v38 = vld [vmem:[#allocation7 + $0x68] sm:$0xff]  ;;  %v2332_v40 = vld [vmem:[#allocation7 + $0x78] sm:$0xff]  ;;  %v2135_v42 = vld [vmem:[#allocation6 + $0x70] sm:$0xff] }
  0xaf   : > { %v678_v49 = vmul.f32 %v645_v44, %v3723_v34  ;;  %v679_v53 = vmul.f32 %v645_v44, %v3736_v43  ;;  %v649_v54 = vrot.slane %v616_v50, %v3712_v30  ;;  %v713_v57 = vrot.slane %v566_v51, %v3712_v30  ;;  %2897 = vmatprep.subr.bf16.mxu1 %v2896_v4  ;;  %v758_v50 = vld [vmem:[#allocation4] sm:$0xf] }
  0xb0   : > { %v741_v48 = vadd.f32 %v709_v47, %v677_v46  ;;  %v2834_v5 = vpack.c.bf16 %v2123_v3, %v2121_v2  ;;  %v2840_v24 = vpack.c.bf16 %v2132_v21, %v2130_v20  ;;  %v2908_v44 = vpack.c.bf16 %v2332_v40, %v2330_v38  ;;  %v2329_v46 = vld [vmem:[#allocation7 + $0x60] sm:$0xff] }
  0xb1   : > { %2676 = vmatmul.mubr.msk.f32.gmra.mrb[6].mxu0 %vm780_vm0, %v729_v61  ;;  %2700 = vmatmul.mubr.msk.f32.gmra.mrb[6].mxu1 %vm780_vm0, %v729_v61  ;;  %v742_v52 = vadd.f32 %v709_v47, %v678_v49  ;;  %v743_v55 = vadd.f32 %v709_v47, %v679_v53  ;;  %v680_v56 = vmul.f32 %v649_v54, %v3718_v33  ;;  %v2124_v61 = vld [vmem:[#allocation6 + $0x18] sm:$0xff]  ;;  %v2331_v47 = vld [vmem:[#allocation7 + $0x70] sm:$0xff]  ;;  %v770_v49 = vsub.s32 2, %v3698_v22 }
  0xb2   : > { %941 = vmatprep.mubr.f32.mxu0 %v3404_v0  ;;  %1150 = vmatprep.mubr.f32.mxu1 %v3404_v0  ;;  %v681_v59 = vmul.f32 %v649_v54, %v3723_v34  ;;  %v682_v60 = vmul.f32 %v649_v54, %v3736_v43  ;;  %v2122_v43 = vld [vmem:[#allocation6 + $0x8] sm:$0xff]  ;;  %v774_v51 = vsub.s32 3, %v3698_v22  ;;  %v3924_v54 = vsub.s32 1, %v3698_v22 }
  0xb3   : > { %v744_v58 = vadd.f32 %v713_v57, %v680_v56  ;;  %v2832_v63 = vpack.c.bf16 %v2124_v61, %v2122_v43 }
  0xb4   : > { %v745_v33 = vadd.f32 %v713_v57, %v681_v59  ;;  %v746_v34 = vadd.f32 %v713_v57, %v682_v60  ;;  %v3921_v53 = vrot.slane %v758_v50, %v774_v51  ;;  %5522 = vst [vmem:[#allocation13_spill] sm:$0xff] %v3924_v54 }
  0xb5   : > { %2677 = vmatmul.mubr.msk.f32.gmra.mrb[8].mxu0 %vm780_vm0, %v730_v6  ;;  %2701 = vmatmul.mubr.msk.f32.gmra.mrb[8].mxu1 %vm780_vm0, %v730_v6  ;;  %v2317_v6 = vld [vmem:[#allocation7] sm:$0xff] }
  0xb6   : > { %947 = vmatprep.mubr.f32.mxu0 %v3404_v0  ;;  %1156 = vmatprep.mubr.f32.mxu1 %v3404_v0  ;;  %v2898_v8 = vpack.c.bf16 %v2319_v7, %v2317_v6 }
  0xb7   : > { %2833 = vmatprep.subr.bf16.mxu0 %v2832_v63 }
  0xb8   : > { %2835 = vmatpush1.bf16.msra.mxu0 %v2834_v5  ;;  %2899 = vmatpush1.bf16.msra.mxu1 %v2898_v8 }
  0xb9   : > { %2678 = vmatmul.mubr.msk.f32.gmra.mrb[10].mxu0 %vm780_vm0, %v731_v12  ;;  %2702 = vmatmul.mubr.msk.f32.gmra.mrb[10].mxu1 %vm780_vm0, %v731_v12 }
  0xba   : > { %953 = vmatprep.mubr.f32.mxu0 %v3404_v0  ;;  %1162 = vmatprep.mubr.f32.mxu1 %v3404_v0 }
  0xbd   : > { %2679 = vmatmul.mubr.msk.f32.gmra.mrb[12].mxu0 %vm780_vm0, %v732_v15  ;;  %2703 = vmatmul.mubr.msk.f32.gmra.mrb[12].mxu1 %vm780_vm0, %v732_v15  ;;  %v2127_v15 = vld [vmem:[#allocation6 + $0x30] sm:$0xff] }
  0xbe   : > { %959 = vmatprep.mubr.f32.mxu0 %v3404_v0  ;;  %1168 = vmatprep.mubr.f32.mxu1 %v3404_v0  ;;  %v2838_v17 = vpack.c.bf16 %v2127_v15, %v2125_v14 }
  0xc1   : > { %2680 = vmatmul.mubr.msk.f32.gmra.mrb[14].mxu0 %vm780_vm0, %v733_v19  ;;  %2704 = vmatmul.mubr.msk.f32.gmra.mrb[14].mxu1 %vm780_vm0, %v733_v19  ;;  %v2902_v19 = vpack.c.bf16 %v2323_v18, %v2321_v16 }
  0xc2   : > { %965 = vmatprep.mubr.f32.mxu0 %v3404_v0  ;;  %1174 = vmatprep.mubr.f32.mxu1 %v3404_v0 }
  0xc5   : > { %2681 = vmatmul.mubr.msk.f32.gmra.mrb[16].mxu0 %vm780_vm0, %v734_v23  ;;  %2705 = vmatmul.mubr.msk.f32.gmra.mrb[16].mxu1 %vm780_vm0, %v734_v23  ;;  %v2326_v23 = vld [vmem:[#allocation7 + $0x48] sm:$0xff] }
  0xc6   : > { %971 = vmatprep.mubr.f32.mxu0 %v3404_v0  ;;  %1180 = vmatprep.mubr.f32.mxu1 %v3404_v0  ;;  %v2904_v29 = vpack.c.bf16 %v2328_v26, %v2326_v23 }
  0xc9   : > { %2682 = vmatmul.mubr.msk.f32.gmra.mrb[18].mxu0 %vm780_vm0, %v735_v27  ;;  %2706 = vmatmul.mubr.msk.f32.gmra.mrb[18].mxu1 %vm780_vm0, %v735_v27  ;;  %v2129_v27 = vld [vmem:[#allocation6 + $0x40] sm:$0xff] }
  0xca   : > { %977 = vmatprep.mubr.f32.mxu0 %v3404_v0  ;;  %1186 = vmatprep.mubr.f32.mxu1 %v3404_v0  ;;  %v2842_v31 = vpack.c.bf16 %v2131_v28, %v2129_v27 }
  0xcd   : > { %2683 = vmatmul.mubr.msk.f32.gmra.mrb[20].mxu0 %vm780_vm0, %v736_v32  ;;  %2707 = vmatmul.mubr.msk.f32.gmra.mrb[20].mxu1 %vm780_vm0, %v736_v32  ;;  %v2325_v32 = vld [vmem:[#allocation7 + $0x40] sm:$0xff] }
  0xce   : > { %983 = vmatprep.mubr.f32.mxu0 %v3404_v0  ;;  %1192 = vmatprep.mubr.f32.mxu1 %v3404_v0  ;;  %v2906_v36 = vpack.c.bf16 %v2327_v35, %v2325_v32 }
  0xd1   : > { %2684 = vmatmul.mubr.msk.f32.gmra.mrb[22].mxu0 %vm780_vm0, %v737_v37  ;;  %2708 = vmatmul.mubr.msk.f32.gmra.mrb[22].mxu1 %vm780_vm0, %v737_v37  ;;  %v2134_v37 = vld [vmem:[#allocation6 + $0x68] sm:$0xff] }
  0xd2   : > { %989 = vmatprep.mubr.f32.mxu0 %v3404_v0  ;;  %1198 = vmatprep.mubr.f32.mxu1 %v3404_v0 }
  0xd5   : > { %2685 = vmatmul.mubr.msk.f32.gmra.mrb[24].mxu0 %vm780_vm0, %v738_v39  ;;  %2709 = vmatmul.mubr.msk.f32.gmra.mrb[24].mxu1 %vm780_vm0, %v738_v39  ;;  %v2844_v39 = vpack.c.bf16 %v2136_v25, %v2134_v37 }
  0xd6   : > { %995 = vmatprep.mubr.f32.mxu0 %v3404_v0  ;;  %1204 = vmatprep.mubr.f32.mxu1 %v3404_v0 }
  0xd9   : > { %2686 = vmatmul.mubr.msk.f32.gmra.mrb[26].mxu0 %vm780_vm0, %v739_v41  ;;  %2710 = vmatmul.mubr.msk.f32.gmra.mrb[26].mxu1 %vm780_vm0, %v739_v41  ;;  %v2133_v41 = vld [vmem:[#allocation6 + $0x60] sm:$0xff] }
  0xda   : > { %1001 = vmatprep.mubr.f32.mxu0 %v3404_v0  ;;  %1210 = vmatprep.mubr.f32.mxu1 %v3404_v0 }
  0xdd   : > { %2687 = vmatmul.mubr.msk.f32.gmra.mrb[28].mxu0 %vm780_vm0, %v740_v45  ;;  %2711 = vmatmul.mubr.msk.f32.gmra.mrb[28].mxu1 %vm780_vm0, %v740_v45  ;;  %v2846_v45 = vpack.c.bf16 %v2135_v42, %v2133_v41 }
  0xde   : > { %1007 = vmatprep.mubr.f32.mxu0 %v3404_v0  ;;  %1216 = vmatprep.mubr.f32.mxu1 %v3404_v0 }
  0xe1   : > { %2688 = vmatmul.mubr.msk.f32.gmra.mrb[30].mxu0 %vm780_vm0, %v741_v48  ;;  %2712 = vmatmul.mubr.msk.f32.gmra.mrb[30].mxu1 %vm780_vm0, %v741_v48  ;;  %v2910_v48 = vpack.c.bf16 %v2331_v47, %v2329_v46 }
  0xe2   : > { %1013 = vmatprep.mubr.f32.mxu0 %v3404_v0  ;;  %1222 = vmatprep.mubr.f32.mxu1 %v3404_v0 }
  0xe5   : > { %2689 = vmatmul.mubr.msk.f32.gmra.mrb[32].mxu0 %vm780_vm0, %v742_v52  ;;  %2713 = vmatmul.mubr.msk.f32.gmra.mrb[32].mxu1 %vm780_vm0, %v742_v52  ;;  %v3919_v52 = vrot.slane %v758_v50, %v770_v49 }
  0xe6   : > { %1019 = vmatprep.mubr.f32.mxu0 %v3404_v0  ;;  %1228 = vmatprep.mubr.f32.mxu1 %v3404_v0 }
  0xe9   : > { %2690 = vmatmul.mubr.msk.f32.gmra.mrb[34].mxu0 %vm780_vm0, %v743_v55  ;;  %2714 = vmatmul.mubr.msk.f32.gmra.mrb[34].mxu1 %vm780_vm0, %v743_v55  ;;  %v3927_v55 = vrot.slane %v758_v50, %v3712_v30 }
  0xea   : > { %1025 = vmatprep.mubr.f32.mxu0 %v3404_v0  ;;  %1234 = vmatprep.mubr.f32.mxu1 %v3404_v0 }
  0xed   : > { %2691 = vmatmul.mubr.msk.f32.gmra.mrb[36].mxu0 %vm780_vm0, %v744_v58  ;;  %2715 = vmatmul.mubr.msk.f32.gmra.mrb[36].mxu1 %vm780_vm0, %v744_v58 }
  0xee   : > { %1031 = vmatprep.mubr.f32.mxu0 %v3404_v0  ;;  %1240 = vmatprep.mubr.f32.mxu1 %v3404_v0 }
  0xf1   : > { %2692 = vmatmul.mubr.msk.f32.gmra.mrb[38].mxu0 %vm780_vm0, %v745_v33  ;;  %2716 = vmatmul.mubr.msk.f32.gmra.mrb[38].mxu1 %vm780_vm0, %v745_v33 }
  0xf2   : > { %1037 = vmatprep.mubr.f32.mxu0 %v3404_v0  ;;  %1246 = vmatprep.mubr.f32.mxu1 %v3404_v0 }
  0xf5   : > { %2693 = vmatmul.mubr.msk.f32.gmra.mrb[40].mxu0 %vm780_vm0, %v746_v34  ;;  %2717 = vmatmul.mubr.msk.f32.gmra.mrb[40].mxu1 %vm780_vm0, %v746_v34  ;;  %v3936_v34 = vrot.slane %v758_v50, %v3924_v54 }
  0xf6   : > { %1043 = vmatprep.mubr.f32.mxu0 %v3404_v0  ;;  %1252 = vmatprep.mubr.f32.mxu1 %v3404_v0 }
  0xf9   : > { %2694 = vmatmul.mubr.msk.f32.gmra.mrb[42].mxu0 %vm780_vm0, %v3793_v9  ;;  %2718 = vmatmul.mubr.msk.f32.gmra.mrb[42].mxu1 %vm780_vm0, %v3793_v9  ;;  %v2128_v9 = vld [vmem:[#allocation6 + $0x38] sm:$0xff] }
  0xfa   : > { %1049 = vmatprep.mubr.f32.mxu0 %v3404_v0  ;;  %1258 = vmatprep.mubr.f32.mxu1 %v3404_v0 }
  0xfd   : > { %2695 = vmatmul.mubr.msk.f32.gmra.mrb[44].mxu0 %vm780_vm0, %v3795_v10  ;;  %2719 = vmatmul.mubr.msk.f32.gmra.mrb[44].mxu1 %vm780_vm0, %v3795_v10  ;;  %v2322_v10 = vld [vmem:[#allocation7 + $0x28] sm:$0xff] }
  0xfe   : > { %1055 = vmatprep.mubr.f32.mxu0 %v3404_v0  ;;  %1264 = vmatprep.mubr.f32.mxu1 %v3404_v0  ;;  %v2126_v0 = vld [vmem:[#allocation6 + $0x28] sm:$0xff] }
  0xff   : > { %v2836_v12 = vpack.c.bf16 %v2128_v9, %v2126_v0 }
 0x101   : > { %2696 = vmatmul.mubr.msk.f32.gmra.mrb[46].mxu0 %vm780_vm0, %v3797_v11  ;;  %2720 = vmatmul.mubr.msk.f32.gmra.mrb[46].mxu1 %vm780_vm0, %v3797_v11  ;;  %v2324_v11 = vld [vmem:[#allocation7 + $0x38] sm:$0xff] }
 0x102   : > { %v2900_v13 = vpack.c.bf16 %v2324_v11, %v2322_v10  ;;  %2837 = vmatprep.subr.bf16.mxu0 %v2836_v12  ;;  %v2138_v12 = vld [vmem:[#allocation6 + $0x88] sm:$0xff]  ;;  %v2140_v11 = vld [vmem:[#allocation6 + $0x98] sm:$0xff] }
 0x103   : > { %2839 = vmatpush1.bf16.msra.mxu0 %v2838_v17  ;;  %v2848_v15 = vpack.c.bf16 %v2140_v11, %v2138_v12 }
 0x104   : > { %2901 = vmatprep.subr.bf16.mxu1 %v2900_v13  ;;  %2841 = vmatprep.subr.bf16.mxu0 %v2840_v24 }
 0x105   : > { %2903 = vmatpush1.bf16.msra.mxu1 %v2902_v19 }
 0x106   : > { %2905 = vmatprep.subr.bf16.mxu1 %v2904_v29 }
 0x107   : > { %2843 = vmatpush1.bf16.msra.mxu0 %v2842_v31 }
 0x108   : > { %2845 = vmatprep.subr.bf16.mxu0 %v2844_v39 }
 0x109   : > { %2907 = vmatpush1.bf16.msra.mxu1 %v2906_v36 }
 0x10a   : > { %2909 = vmatprep.subr.bf16.mxu1 %v2908_v44 }
 0x10b   : > { %2847 = vmatpush1.bf16.msra.mxu0 %v2846_v45 }
 0x10c   : > { %2849 = vmatprep.subr.bf16.mxu0 %v2848_v15 }
 0x10d   : > { %2911 = vmatpush1.bf16.msra.mxu1 %v2910_v48 }
 0x178   : > { %v919_v56 = vpop.f32.mrb[0].mxu0  ;;  %v1128_v57 = vpop.f32.mrb[0].mxu1 }
 0x179   : > { %v3930_v58 = vadd.f32 %v1128_v57, %v3919_v52  ;;  %v921_v59 = vpop.f32.mrb[1].mxu0  ;;  %v1130_v33 = vpop.f32.mrb[1].mxu1  ;;  %v3939_v43 = vadd.f32 %v919_v56, %v3927_v55 }
 0x17a   : > { %v3933_v60 = vadd.f32 %v1130_v33, %v3921_v53  ;;  %v3945_v2 = vadd.f32 %v921_v59, %v3936_v34 }
 0x17b   : > { %v1367_v4 = vmul.f32 1.442695, %v3939_v43  ;;  %v1371_v8 = vmul.f32 1.442695, %v3930_v58  ;;  %vm1271_vm1 = vcmp.gt.f32.partialorder %v3939_v43, 0.0  ;;  %vm1273_vm2 = vcmp.gt.f32.partialorder %v3930_v58, 0.0 }
 0x17c   : > { %v925_v22 = vpop.f32.mrb[2].mxu0  ;;  %v1134_v61 = vpop.f32.mrb[2].mxu1  ;;  %v1369_v13 = vmul.f32 1.442695, %v3945_v2  ;;  %v1373_v16 = vmul.f32 1.442695, %v3933_v60 }
 0x17d   : > { %v3942_v62 = vadd.f32 %v1134_v61, %v3919_v52  ;;  %v927_v63 = vpop.f32.mrb[3].mxu0  ;;  %v1136_v1 = vpop.f32.mrb[3].mxu1  ;;  %v3952_v7 = vadd.f32 %v925_v22, %v3927_v55  ;;  %3040 = vpow2.f32 %v1367_v4  ;;  %vm1272_vm3 = vcmp.gt.f32.partialorder %v3945_v2, 0.0 }
 0x17e   : > { %v3948_v3 = vadd.f32 %v1136_v1, %v3921_v53  ;;  %v3964_v17 = vadd.f32 %v927_v63, %v3936_v34  ;;  %3042 = vpow2.f32 %v1371_v8  ;;  %vm1274_vm4 = vcmp.gt.f32.partialorder %v3933_v60, 0.0 }
 0x17f   : > { %v1375_v20 = vmul.f32 1.442695, %v3952_v7  ;;  %v1379_v23 = vmul.f32 1.442695, %v3942_v62  ;;  %3044 = vpow2.f32 %v1369_v13  ;;  %vm1275_vm5 = vcmp.gt.f32.partialorder %v3952_v7, 0.0 }
 0x180   : > { %v931_v5 = vpop.f32.mrb[4].mxu0  ;;  %v1140_v6 = vpop.f32.mrb[4].mxu1  ;;  %3046 = vpow2.f32 %v1373_v16  ;;  %v1377_v28 = vmul.f32 1.442695, %v3964_v17  ;;  %v1381_v37 = vmul.f32 1.442695, %v3948_v3 }
 0x181   : > { %v3956_v0 = vadd.f32 %v1140_v6, %v3919_v52  ;;  %v933_v9 = vpop.f32.mrb[5].mxu0  ;;  %v1142_v10 = vpop.f32.mrb[5].mxu1  ;;  %v3976_v29 = vadd.f32 %v931_v5, %v3927_v55  ;;  %3048 = vpow2.f32 %v1375_v20  ;;  %vm1277_vm6 = vcmp.gt.f32.partialorder %v3942_v62, 0.0 }
 0x182   : > { %v3960_v14 = vadd.f32 %v1142_v10, %v3921_v53  ;;  %3050 = vpow2.f32 %v1379_v23  ;;  %v3980_v25 = vadd.f32 %v933_v9, %v3936_v34  ;;  %vm1276_vm7 = vcmp.gt.f32.partialorder %v3964_v17, 0.0 }
 0x183   : > { %3052 = vpow2.f32 %v1377_v28  ;;  %v1383_v38 = vmul.f32 1.442695, %v3976_v29  ;;  %v1387_v42 = vmul.f32 1.442695, %v3956_v0  ;;  %vm1278_vm8 = vcmp.gt.f32.partialorder %v3948_v3, 0.0 }
 0x184   : > { %v937_v18 = vpop.f32.mrb[6].mxu0  ;;  %v1146_v19 = vpop.f32.mrb[6].mxu1  ;;  %3054 = vpow2.f32 %v1381_v37  ;;  %v1385_v48 = vmul.f32 1.442695, %v3980_v25  ;;  %v1389_v50 = vmul.f32 1.442695, %v3960_v14 }
 0x185   : > { %v939_v21 = vpop.f32.mrb[7].mxu0  ;;  %v1148_v24 = vpop.f32.mrb[7].mxu1  ;;  %v3969_v26 = vadd.f32 %v1146_v19, %v3919_v52  ;;  %v3984_v39 = vadd.f32 %v937_v18, %v3927_v55  ;;  %3056 = vpow2.f32 %v1383_v38  ;;  %vm1279_vm9 = vcmp.gt.f32.partialorder %v3976_v29, 0.0 }
 0x186   : > { %v3972_v27 = vadd.f32 %v1148_v24, %v3921_v53  ;;  %v3992_v49 = vadd.f32 %v939_v21, %v3936_v34  ;;  %3058 = vpow2.f32 %v1387_v42  ;;  %vm1281_vm10 = vcmp.gt.f32.partialorder %v3956_v0, 0.0 }
 0x187   : > { %v3041_v47 = vpop.eup %3040  ;;  %v1391_v56 = vmul.f32 1.442695, %v3984_v39  ;;  %v1395_v63 = vmul.f32 1.442695, %v3969_v26  ;;  %3060 = vpow2.f32 %v1385_v48  ;;  %vm1280_vm11 = vcmp.gt.f32.partialorder %v3980_v25, 0.0 }
 0x188   : > { %v943_v31 = vpop.f32.mrb[8].mxu0  ;;  %v1152_v32 = vpop.f32.mrb[8].mxu1  ;;  %v2721_v61 = vadd.f32 -1.0, %v3041_v47  ;;  %v1393_v8 = vmul.f32 1.442695, %v3992_v49  ;;  %3062 = vpow2.f32 %v1389_v50  ;;  %vm1282_vm12 = vcmp.gt.f32.partialorder %v3960_v14, 0.0 }
 0x189   : > { %v945_v35 = vpop.f32.mrb[9].mxu0  ;;  %v1154_v36 = vpop.f32.mrb[9].mxu1  ;;  %v3988_v44 = vadd.f32 %v1152_v32, %v3919_v52  ;;  %v3999_v57 = vadd.f32 %v943_v31, %v3927_v55  ;;  %v1397_v12 = vmul.f32 1.442695, %v3972_v27  ;;  %3064 = vpow2.f32 %v1391_v56 }
 0x18a   : > { %v3043_v51 = vpop.eup %3042  ;;  %v4008_v1 = vadd.f32 %v1154_v36, %v3921_v53  ;;  %v4017_v9 = vadd.f32 %v945_v35, %v3936_v34  ;;  %v4034_v20 = vsel %vm1271_vm1, %v3939_v43, %v2721_v61  ;;  %3066 = vpow2.f32 %v1395_v63 }
 0x18b   : > { %v3045_v22 = vpop.eup %3044  ;;  %v2723_v13 = vadd.f32 -1.0, %v3043_v51  ;;  %v1399_v15 = vmul.f32 1.442695, %v3999_v57  ;;  %5526 = vst [vmem:[#allocation17_spill] sm:$0xff] %v4034_v20  ;;  %v1403_v21 = vmul.f32 1.442695, %v3988_v44  ;;  %3068 = vpow2.f32 %v1393_v8 }
 0x18c   : > { %v949_v40 = vpop.f32.mrb[10].mxu0  ;;  %v1158_v41 = vpop.f32.mrb[10].mxu1  ;;  %5523 = vst [vmem:[#allocation14_spill] sm:$0xff] %v4008_v1  ;;  %5524 = vst [vmem:[#allocation15_spill] sm:$0xff] %v4017_v9  ;;  %v2722_v32 = vadd.f32 -1.0, %v3045_v22  ;;  %3070 = vpow2.f32 %v1397_v12 }
 0x18d   : > { %v951_v45 = vpop.f32.mrb[11].mxu0  ;;  %v1160_v46 = vpop.f32.mrb[11].mxu1  ;;  %v4025_v16 = vadd.f32 %v949_v40, %v3927_v55  ;;  %v4038_v23 = vadd.f32 %v1158_v41, %v3919_v52  ;;  %v1401_v36 = vmul.f32 1.442695, %v4017_v9  ;;  %v1405_v43 = vmul.f32 1.442695, %v4008_v1 }
 0x18e   : > { %v3047_v6 = vpop.eup %3046  ;;  %3072 = vpow2.f32 %v1399_v15  ;;  %v4049_v42 = vadd.f32 %v951_v45, %v3936_v34  ;;  %v4052_v47 = vadd.f32 %v1160_v46, %v3921_v53  ;;  %v4061_v51 = vsel %vm1273_vm2, %v3930_v58, %v2723_v13 }
 0x18f   : > { %v3049_v10 = vpop.eup %3048  ;;  %5525 = vst [vmem:[#allocation16_spill] sm:$0xff] %v4025_v16  ;;  %5527 = vst [vmem:[#allocation18_spill] sm:$0xff] %v4038_v23  ;;  %v2724_v35 = vadd.f32 -1.0, %v3047_v6  ;;  %v1407_v41 = vmul.f32 1.442695, %v4025_v16  ;;  %3074 = vpow2.f32 %v1403_v21  ;;  %v4072_v63 = vsel %vm1272_vm3, %v3945_v2, %v2722_v32 }
 0x190   : > { %v4001_v59 = vpop.f32.mrb[12].mxu0  ;;  %v4003_v33 = vpop.f32.mrb[12].mxu1  ;;  %v2725_v37 = vadd.f32 -1.0, %v3049_v10  ;;  %5528 = vst [vmem:[#allocation19_spill] sm:$0xff] %v4049_v42  ;;  %5529 = vst [vmem:[#allocation20_spill] sm:$0xff] %v4052_v47  ;;  %3076 = vpow2.f32 %v1401_v36 }
 0x191   : > { %v4010_v4 = vpop.f32.mrb[13].mxu0  ;;  %v4012_v5 = vpop.f32.mrb[13].mxu1  ;;  %5530 = vst [vmem:[#allocation21_spill] sm:$0xff] %v4061_v51  ;;  %v1411_v22 = vmul.f32 1.442695, %v4038_v23  ;;  %5531 = vst [vmem:[#allocation22_spill] sm:$0xff] %v4072_v63  ;;  %v4077_v58 = vsel %vm1274_vm4, %v3933_v60, %v2724_v35  ;;  %v4083_v6 = vadd.f32 %v4001_v59, %v3927_v55  ;;  %3078 = vpow2.f32 %v1405_v43 }
 0x192   : > { %v3051_v11 = vpop.eup %3050  ;;  %5532 = vst [vmem:[#allocation23_spill] sm:$0xff] %v4077_v58  ;;  %v4088_v2 = vsel %vm1275_vm5, %v3952_v7, %v2725_v37  ;;  %v4093_v60 = vadd.f32 %v4003_v33, %v3919_v52  ;;  %3080 = vpow2.f32 %v1407_v41 }
 0x193   : > { %v3053_v31 = vpop.eup %3052  ;;  %v2727_v38 = vadd.f32 -1.0, %v3051_v11  ;;  %5533 = vst [vmem:[#allocation24_spill] sm:$0xff] %v4088_v2  ;;  %v1409_v11 = vmul.f32 1.442695, %v4049_v42  ;;  %v1415_v7 = vmul.f32 1.442695, %v4083_v6  ;;  %3082 = vpow2.f32 %v1411_v22  ;;  %v4216_v2 = vpop.permute.xlu0 %1756 }
 0x194   : > { %v4027_v18 = vpop.f32.mrb[14].mxu0  ;;  %v4029_v19 = vpop.f32.mrb[14].mxu1  ;;  %v2726_v56 = vadd.f32 -1.0, %v3053_v31  ;;  %v1419_v31 = vmul.f32 1.442695, %v4093_v60  ;;  %vm1295_vm13 = vcmp.gt.f32.partialorder %v4083_v6, 0.0 }
 0x195   : > { %v4040_v24 = vpop.f32.mrb[15].mxu0  ;;  %v4042_v28 = vpop.f32.mrb[15].mxu1  ;;  %v4098_v59 = vsel %vm1277_vm6, %v3942_v62, %v2727_v38  ;;  %v4114_v62 = vadd.f32 %v4010_v4, %v3936_v34  ;;  %3084 = vpow2.f32 %v1415_v7  ;;  %v4122_v38 = vadd.f32 %v4012_v5, %v3921_v53 }
 0x196   : > { %v3055_v40 = vpop.eup %3054  ;;  %5534 = vst [vmem:[#allocation25_spill] sm:$0xff] %v4098_v59  ;;  %v4109_v33 = vsel %vm1276_vm7, %v3964_v17, %v2726_v56  ;;  %v4126_v17 = vadd.f32 %v4027_v18, %v3927_v55  ;;  %3086 = vpow2.f32 %v1419_v31  ;;  %vm1297_vm14 = vcmp.gt.f32.partialorder %v4093_v60, 0.0 }
 0x197   : > { %v3057_v46 = vpop.eup %3056  ;;  %v2728_v10 = vadd.f32 -1.0, %v3055_v40  ;;  %5535 = vst [vmem:[#allocation26_spill] sm:$0xff] %v4109_v33  ;;  %v1417_v4 = vmul.f32 1.442695, %v4114_v62  ;;  %3088 = vpow2.f32 %v1409_v11  ;;  %v1421_v7 = vmul.f32 1.442695, %v4122_v38 }
 0x198   : > { %v4054_v48 = vpop.f32.mrb[16].mxu0  ;;  %v4056_v50 = vpop.f32.mrb[16].mxu1  ;;  %v2729_v37 = vadd.f32 -1.0, %v3057_v46  ;;  %v1413_v46 = vmul.f32 1.442695, %v4052_v47  ;;  %vm1296_vm15 = vcmp.gt.f32.partialorder %v4114_v62, 0.0 }
 0x199   : > { %v4065_v45 = vpop.f32.mrb[17].mxu0  ;;  %v4067_v61 = vpop.f32.mrb[17].mxu1  ;;  %v4136_v18 = vsel %vm1278_vm8, %v3948_v3, %v2728_v10  ;;  %v4154_v3 = vadd.f32 %v4040_v24, %v3936_v34  ;;  %v4158_v10 = vadd.f32 %v4042_v28, %v3921_v53  ;;  %vm1298_vm0 = vcmp.gt.f32.partialorder %v4122_v38, 0.0 }
 0x19a   : > { %v3059_v8 = vpop.eup %3058  ;;  %5536 = vst [vmem:[#allocation27_spill] sm:$0xff] %v4136_v18  ;;  %3090 = vpow2.f32 %v1417_v4  ;;  %v4150_v30 = vsel %vm1279_vm9, %v3976_v29, %v2729_v37  ;;  %vm1299_vm1 = vcmp.gt.f32.partialorder %v4126_v17, 0.0  ;;  %vm1283_vm7 = vcmp.gt.f32.partialorder %v3984_v39, 0.0 }
 0x19b   : > { %v3061_v12 = vpop.eup %3060  ;;  %v2731_v40 = vadd.f32 -1.0, %v3059_v8  ;;  %v1423_v8 = vmul.f32 1.442695, %v4126_v17  ;;  %5537 = vst [vmem:[#allocation28_spill] sm:$0xff] %v4150_v30  ;;  %3092 = vpow2.f32 %v1421_v7  ;;  %vm1300_vm3 = vcmp.gt.f32.partialorder %v4154_v3, 0.0 }
 0x19c   : > { %v4102_v13 = vpop.f32.mrb[18].mxu0  ;;  %v4104_v15 = vpop.f32.mrb[18].mxu1  ;;  %v2730_v41 = vadd.f32 -1.0, %v3061_v12  ;;  %v4141_v12 = vadd.f32 %v4029_v19, %v3919_v52  ;;  %vm1302_vm4 = vcmp.gt.f32.partialorder %v4158_v10, 0.0  ;;  %vm1285_vm8 = vcmp.gt.f32.partialorder %v3969_v26, 0.0 }
 0x19d   : > { %v3063_v21 = vpop.eup %3062  ;;  %v4116_v32 = vpop.f32.mrb[19].mxu0  ;;  %v4165_v51 = vsel %vm1281_vm10, %v3956_v0, %v2731_v40  ;;  %3094 = vpow2.f32 %v1423_v8  ;;  %v1425_v0 = vmul.f32 1.442695, %v4154_v3  ;;  %v4192_v8 = vadd.f32 %v4054_v48, %v3927_v55 }
 0x19e   : > { %v4118_v35 = vpop.f32.mrb[19].mxu1  ;;  %v3065_v36 = vpop.eup %3064  ;;  %v2732_v22 = vadd.f32 -1.0, %v3063_v21  ;;  %5538 = vst [vmem:[#allocation29_spill] sm:$0xff] %v4165_v51  ;;  %v4170_v29 = vsel %vm1280_vm11, %v3980_v25, %v2730_v41  ;;  %v1427_v24 = vmul.f32 1.442695, %v4141_v12  ;;  %3096 = vpow2.f32 %v1413_v46 }
 0x19f   : > { %v3067_v43 = vpop.eup %3066  ;;  %5539 = vst [vmem:[#allocation30_spill] sm:$0xff] %v4170_v29  ;;  %v4180_v7 = vadd.f32 -1.0, %v3065_v36  ;;  %v1429_v41 = vmul.f32 1.442695, %v4158_v10  ;;  %vm1301_vm2 = vcmp.gt.f32.partialorder %v4141_v12, 0.0  ;;  %vm1303_vm5 = vcmp.gt.f32.partialorder %v4192_v8, 0.0 }
 0x1a0   : > { %v3069_v56 = vpop.eup %3068  ;;  %v4131_v54 = vpop.f32.mrb[20].mxu0  ;;  %v4178_v28 = vsel %vm1282_vm12, %v3960_v14, %v2732_v22  ;;  %v4187_v25 = vadd.f32 -1.0, %v3067_v43  ;;  %3098 = vpow2.f32 %v1427_v24  ;;  %v4206_v43 = vadd.f32 %v4056_v50, %v3919_v52 }
 0x1a1   : > { %v3071_v5 = vpop.eup %3070  ;;  %v4143_v11 = vpop.f32.mrb[20].mxu1  ;;  %5540 = vst [vmem:[#allocation31_spill] sm:$0xff] %v4178_v28  ;;  %v4200_v46 = vadd.f32 -1.0, %v3069_v56  ;;  %3100 = vpow2.f32 %v1425_v0  ;;  %v1431_v56 = vmul.f32 1.442695, %v4192_v8  ;;  %v4224_v0 = vadd.f32 %v4065_v45, %v3936_v34 }
 0x1a2   : > { %v4145_v21 = vpop.f32.mrb[21].mxu0  ;;  %v3073_v31 = vpop.eup %3072  ;;  %v4202_v59 = vadd.f32 -1.0, %v3071_v5  ;;  %3102 = vpow2.f32 %v1429_v41  ;;  %v1435_v50 = vmul.f32 1.442695, %v4206_v43  ;;  %v4233_v41 = vadd.f32 %v4067_v61, %v3921_v53 }
 0x1a3   : > { %v4160_v19 = vpop.f32.mrb[21].mxu1  ;;  %v3075_v4 = vpop.eup %3074  ;;  %v4212_v48 = vadd.f32 -1.0, %v3073_v31  ;;  %3104 = vpow2.f32 %v1431_v56  ;;  %v1433_v63 = vmul.f32 1.442695, %v4224_v0  ;;  %v4248_v56 = vadd.f32 %v4102_v13, %v3927_v55 }
 0x1a4   : > { %v4173_v37 = vpop.eup %3076  ;;  %v4183_v40 = vpop.f32.mrb[22].mxu0  ;;  %v4214_v20 = vadd.f32 -1.0, %v3075_v4  ;;  %3106 = vpow2.f32 %v1435_v50  ;;  %v1437_v61 = vmul.f32 1.442695, %v4233_v41  ;;  %vm1305_vm6 = vcmp.gt.f32.partialorder %v4206_v43, 0.0 }
 0x1a5   : > { %v4185_v51 = vpop.eup %3078  ;;  %v4194_v14 = vpop.f32.mrb[22].mxu1  ;;  %3108 = vpow2.f32 %v1433_v63  ;;  %vm1284_vm9 = vcmp.gt.f32.partialorder %v3992_v49, 0.0  ;;  %vm1286_vm10 = vcmp.gt.f32.partialorder %v3972_v27, 0.0  ;;  %vm1287_vm11 = vcmp.gt.f32.partialorder %v3999_v57, 0.0 }
 0x1a6   : > { %v4196_v36 = vpop.f32.mrb[23].mxu0  ;;  %v4198_v22 = vpop.eup %3080  ;;  %3110 = vpow2.f32 %v1437_v61  ;;  %v4280_v61 = vadd.f32 %v4116_v32, %v3936_v34  ;;  %vm1289_vm12 = vcmp.gt.f32.partialorder %v3988_v44, 0.0 }
 0x1a7   : > { %v4208_v24 = vpop.f32.mrb[23].mxu1  ;;  %v4210_v30 = vpop.eup %3082 }
 0x1a8   : > { %v3085_v5 = vpop.eup %3084  ;;  %v4226_v31 = vpop.f32.mrb[24].mxu0 }
 0x1a9   : > { %5541 = vst [vmem:[#allocation32_spill] sm:$0xff] %v4226_v31  ;;  %v4228_v4 = vpop.f32.mrb[24].mxu1  ;;  %v3087_v28 = vpop.eup %3086  ;;  %v2745_v18 = vadd.f32 -1.0, %v3085_v5 }
 0x1aa   : > { %5542 = vst [vmem:[#allocation33_spill] sm:$0xff] %v4228_v4  ;;  %v4235_v58 = vpop.f32.mrb[25].mxu0  ;;  %v4237_v29 = vpop.f32.mrb[25].mxu1  ;;  %v2747_v45 = vadd.f32 -1.0, %v3087_v28 }
 0x1ab   : > { %5543 = vst [vmem:[#allocation34_spill] sm:$0xff] %v4235_v58  ;;  %5544 = vst [vmem:[#allocation35_spill] sm:$0xff] %v4237_v29  ;;  %v4239_v33 = vpop.eup %3088  ;;  %v1679_v28 = vsel %vm1295_vm13, %v4083_v6, %v2745_v18  ;;  %vm1304_vm13 = vcmp.gt.f32.partialorder %v4224_v0, 0.0 }
 0x1ac   : > { %v3091_v5 = vpop.eup %3090  ;;  %v4254_v50 = vpop.f32.mrb[26].mxu0  ;;  %v1681_v1 = vsel %vm1297_vm14, %v4093_v60, %v2747_v45  ;;  %v1793_v45 = vmul.f32 %v4216_v2, %v1679_v28  ;;  %vm1306_vm14 = vcmp.gt.f32.partialorder %v4233_v41, 0.0 }
 0x1ad   : > { %v3093_v47 = vpop.eup %3092  ;;  %v2746_v42 = vadd.f32 -1.0, %v3091_v5  ;;  %5545 = vst [vmem:[#allocation36_spill] sm:$0xff] %v4254_v50  ;;  %v4256_v23 = vpop.f32.mrb[26].mxu1  ;;  %v1439_v5 = vmul.f32 1.442695, %v4248_v56 }
 0x1ae   : > { %5546 = vst [vmem:[#allocation37_spill] sm:$0xff] %v4256_v23  ;;  %v3095_v16 = vpop.eup %3094  ;;  %v2748_v13 = vadd.f32 -1.0, %v3093_v47  ;;  %v4262_v9 = vpop.f32.mrb[27].mxu0  ;;  %v4272_v23 = vadd.f32 %v4104_v15, %v3919_v52 }
 0x1af   : > { %5547 = vst [vmem:[#allocation38_spill] sm:$0xff] %v4262_v9  ;;  %v4264_v6 = vpop.f32.mrb[27].mxu1  ;;  %v4266_v18 = vpop.eup %3096  ;;  %v2749_v63 = vadd.f32 -1.0, %v3095_v16  ;;  %v4284_v16 = vadd.f32 %v4118_v35, %v3921_v53  ;;  %v1795_v9 = vmul.f32 %v4216_v2, %v1681_v1  ;;  %v1680_v15 = vsel %vm1296_vm15, %v4114_v62, %v2746_v42 }
 0x1b0   : > { %5548 = vst [vmem:[#allocation39_spill] sm:$0xff] %v4264_v6  ;;  %v3099_v60 = vpop.eup %3098  ;;  %v4274_v47 = vpop.permute.xlu0 %1761  ;;  %v1682_v35 = vsel %vm1298_vm0, %v4122_v38, %v2748_v13  ;;  %v1443_v31 = vmul.f32 1.442695, %v4272_v23  ;;  %3112 = vpow2.f32 %v1439_v5  ;;  %vm1307_vm15 = vcmp.gt.f32.partialorder %v4248_v56, 0.0 }
 0x1b1   : > { %v3101_v6 = vpop.eup %3100  ;;  %v1683_v28 = vsel %vm1299_vm1, %v4126_v17, %v2749_v63  ;;  %v2751_v50 = vadd.f32 -1.0, %v3099_v60  ;;  %v4293_v29 = vpop.f32.mrb[28].mxu0  ;;  %v1441_v60 = vmul.f32 1.442695, %v4280_v61  ;;  %vm1309_vm0 = vcmp.gt.f32.partialorder %v4272_v23, 0.0 }
 0x1b2   : > { %v4295_v32 = vpop.f32.mrb[28].mxu1  ;;  %v3103_v58 = vpop.eup %3102  ;;  %v1797_v1 = vmul.f32 %v4274_v47, %v1683_v28  ;;  %v2750_v4 = vadd.f32 -1.0, %v3101_v6  ;;  %3114 = vpow2.f32 %v1443_v31  ;;  %v1796_v31 = vmul.f32 %v4216_v2, %v1682_v35 }
 0x1b3   : > { %v4302_v42 = vpop.f32.mrb[29].mxu0  ;;  %v4304_v62 = vpop.f32.mrb[29].mxu1  ;;  %v1685_v17 = vsel %vm1301_vm2, %v4141_v12, %v2751_v50  ;;  %v2752_v63 = vadd.f32 -1.0, %v3103_v58  ;;  %v1794_v58 = vmul.f32 %v4216_v2, %v1680_v15  ;;  %3116 = vpow2.f32 %v1441_v60 }
 0x1b4   : > { %5549 = vst [vmem:[#allocation40_spill] sm:$0xff] %v4304_v62  ;;  %v3105_v38 = vpop.eup %3104  ;;  %v1929_v13 = vadd.f32 %v1797_v1, %v1793_v45  ;;  %v1799_v6 = vmul.f32 %v4274_v47, %v1685_v17  ;;  %v1684_v28 = vsel %vm1300_vm3, %v4154_v3, %v2750_v4  ;;  %v4323_v45 = vpop.f32.mrb[30].mxu0  ;;  %v4342_v35 = vadd.f32 %v4131_v54, %v3927_v55 }
 0x1b5   : > { %v3107_v62 = vpop.eup %3106  ;;  %v1798_v12 = vmul.f32 %v4274_v47, %v1684_v28  ;;  %v1686_v50 = vsel %vm1302_vm4, %v4158_v10, %v2752_v63  ;;  %v2753_v5 = vadd.f32 -1.0, %v3105_v38  ;;  %v4325_v3 = vpop.f32.mrb[30].mxu1  ;;  %vm1308_vm1 = vcmp.gt.f32.partialorder %v4280_v61, 0.0 }
 0x1b6   : > { %5550 = vst [vmem:[#allocation41_spill] sm:$0xff] %v4325_v3  ;;  %v1945_v4 = vadd.f32 %v1799_v6, %v1795_v9  ;;  %v1800_v15 = vmul.f32 %v4274_v47, %v1686_v50  ;;  %v2755_v1 = vadd.f32 -1.0, %v3107_v62  ;;  %v4331_v17 = vpop.f32.mrb[31].mxu0  ;;  %v4333_v28 = vpop.f32.mrb[31].mxu1  ;;  %vm1311_vm2 = vcmp.gt.f32.partialorder %v4342_v35, 0.0 }
 0x1b7   : > { %5551 = vst [vmem:[#allocation42_spill] sm:$0xff] %v4333_v28  ;;  %v3109_v10 = vpop.eup %3108  ;;  %v4335_v63 = vpop.permute.xlu1 %1766  ;;  %v1937_v38 = vadd.f32 %v1798_v12, %v1794_v58  ;;  %v1687_v3 = vsel %vm1303_vm5, %v4192_v8, %v2753_v5  ;;  %vm1310_vm5 = vcmp.gt.f32.partialorder %v4284_v16, 0.0 }
 0x1b8   : > { %v3111_v9 = vpop.eup %3110  ;;  %v1953_v6 = vadd.f32 %v1800_v15, %v1796_v31  ;;  %v1801_v62 = vmul.f32 %v4335_v63, %v1687_v3  ;;  %v1689_v50 = vsel %vm1305_vm6, %v4206_v43, %v2755_v1  ;;  %v2754_v28 = vadd.f32 -1.0, %v3109_v10  ;;  %v4351_v60 = vpop.f32.mrb[32].mxu0 }
 0x1b9   : > { %v1803_v58 = vmul.f32 %v4335_v63, %v1689_v50  ;;  %v2756_v8 = vadd.f32 -1.0, %v3111_v9  ;;  %v4353_v54 = vpop.f32.mrb[32].mxu1  ;;  %v1447_v3 = vmul.f32 1.442695, %v4342_v35  ;;  %v4359_v43 = vadd.f32 %v4143_v11, %v3919_v52  ;;  %v4361_v31 = vpop.f32.mrb[33].mxu0 }
 0x1ba   : > { %v1930_v12 = vadd.f32 %v1929_v13, %v1801_v62  ;;  %v1688_v5 = vsel %vm1304_vm13, %v4224_v0, %v2754_v28  ;;  %v4363_v15 = vpop.f32.mrb[33].mxu1  ;;  %v1445_v50 = vmul.f32 1.442695, %v4284_v16  ;;  %v4372_v0 = vsel %vm1283_vm7, %v3984_v39, %v4180_v7  ;;  %v3113_v28 = vpop.eup %3112 }
 0x1bb   : > { %5552 = vst [vmem:[#allocation43_spill] sm:$0xff] %v4363_v15  ;;  %v1946_v1 = vadd.f32 %v1945_v4, %v1803_v58  ;;  %v1802_v10 = vmul.f32 %v4335_v63, %v1688_v5  ;;  %v1690_v9 = vsel %vm1306_vm14, %v4233_v41, %v2756_v8  ;;  %5553 = vst [vmem:[#allocation44_spill] sm:$0xff] %v4372_v0  ;;  %3118 = vpow2.f32 %v1447_v3 }
 0x1bc   : > { %v1931_v13 = vrot.slane %v1930_v12, 4  ;;  %v1804_v11 = vmul.f32 %v4335_v63, %v1690_v9  ;;  %v1451_v4 = vmul.f32 1.442695, %v4359_v43  ;;  %v4378_v41 = vadd.f32 %v4145_v21, %v3936_v34  ;;  %v4380_v58 = vpop.f32.mrb[34].mxu0  ;;  %v4382_v8 = vpop.f32.mrb[34].mxu1 }
 0x1bd   : > { %v1947_v62 = vrot.slane %v1946_v1, 4  ;;  %v1938_v15 = vadd.f32 %v1937_v38, %v1802_v10  ;;  %v3115_v5 = vpop.eup %3114  ;;  %v4388_v39 = vsel %vm1285_vm8, %v3969_v26, %v4187_v25  ;;  %v4394_v7 = vsel %vm1284_vm9, %v3992_v49, %v4200_v46  ;;  %v4402_v3 = vpop.f32.mrb[35].mxu0 }
 0x1be   : > { %5554 = vst [vmem:[#allocation45_spill] sm:$0xff] %v4388_v39  ;;  %5555 = vst [vmem:[#allocation46_spill] sm:$0xff] %v4394_v7  ;;  %v4400_v21 = vsel %vm1286_vm10, %v3972_v27, %v4202_v59  ;;  %v1954_v38 = vadd.f32 %v1953_v6, %v1804_v11  ;;  %v4404_v10 = vpop.f32.mrb[35].mxu1  ;;  %v4410_v26 = vsel %vm1287_vm11, %v3999_v57, %v4212_v48  ;;  %3120 = vpow2.f32 %v1445_v50  ;;  %v3117_v6 = vpop.eup %3116 }
 0x1bf   : > { %5556 = vst [vmem:[#allocation47_spill] sm:$0xff] %v4400_v21  ;;  %5557 = vst [vmem:[#allocation48_spill] sm:$0xff] %v4402_v3  ;;  %v4416_v49 = vsel %vm1289_vm12, %v3988_v44, %v4214_v20  ;;  %v1932_v25 = vadd.f32 %v1931_v13, %v1930_v12  ;;  %v4419_v27 = vadd.f32 -1.0, %v4173_v37  ;;  %v4422_v59 = vadd.f32 -1.0, %v4185_v51 }
 0x1c0   : > { %5558 = vst [vmem:[#allocation49_spill] sm:$0xff] %v4404_v10  ;;  %5559 = vst [vmem:[#allocation50_spill] sm:$0xff] %v4410_v26  ;;  %v2757_v46 = vadd.f32 -1.0, %v3113_v28  ;;  %3122 = vpow2.f32 %v1451_v4  ;;  %v4425_v57 = vadd.f32 -1.0, %v4198_v22  ;;  %v1948_v48 = vadd.f32 %v1947_v62, %v1946_v1  ;;  %v4428_v44 = vpop.f32.mrb[36].mxu0  ;;  %v4430_v20 = vpop.f32.mrb[36].mxu1 }
 0x1c1   : > { %5560 = vst [vmem:[#allocation51_spill] sm:$0xff] %v4416_v49  ;;  %v2759_v9 = vadd.f32 -1.0, %v3115_v5  ;;  %v1449_v11 = vmul.f32 1.442695, %v4378_v41  ;;  %5561 = vst [vmem:[#allocation52_spill] sm:$0xff] %v4428_v44  ;;  %v4433_v37 = vadd.f32 -1.0, %v4210_v30  ;;  %v4455_v5 = vadd.f32 %v4183_v40, %v3927_v55 }
 0x1c2   : > { %5562 = vst [vmem:[#allocation53_spill] sm:$0xff] %v4430_v20  ;;  %v4436_v51 = vadd.f32 -1.0, %v4239_v33  ;;  %v4439_v12 = vadd.f32 -1.0, %v4266_v18  ;;  %v1939_v50 = vrot.slane %v1938_v15, 4  ;;  %v4441_v22 = vpop.f32.mrb[37].mxu0  ;;  %v4443_v1 = vpop.f32.mrb[37].mxu1  ;;  %v1691_v30 = vsel %vm1307_vm15, %v4248_v56, %v2757_v46 }
 0x1c3   : > { %5563 = vst [vmem:[#allocation54_spill] sm:$0xff] %v4441_v22  ;;  %5564 = vst [vmem:[#allocation55_spill] sm:$0xff] %v4443_v1  ;;  %v1933_v13 = vrot.slane %v1932_v25, 2  ;;  %3124 = vpow2.f32 %v1449_v11  ;;  %v1955_v28 = vrot.slane %v1954_v38, 4  ;;  %v2758_v62 = vadd.f32 -1.0, %v3117_v6 }
 0x1c4   : > { %v4450_v33 = vadd.f32 %v4160_v19, %v3921_v53  ;;  %v1949_v18 = vrot.slane %v1948_v48, 2  ;;  %v1693_v4 = vsel %vm1309_vm0, %v4272_v23, %v2759_v9  ;;  %v4459_v49 = vadd.f32 %v4194_v14, %v3919_v52  ;;  %v4461_v11 = vpop.f32.mrb[38].mxu0  ;;  %v4463_v39 = vpop.f32.mrb[38].mxu1 }
 0x1c5   : > { %5565 = vst [vmem:[#allocation56_spill] sm:$0xff] %v4461_v11  ;;  %5566 = vst [vmem:[#allocation57_spill] sm:$0xff] %v4463_v39  ;;  %v3119_v56 = vpop.eup %3118  ;;  %v1940_v46 = vadd.f32 %v1939_v50, %v1938_v15  ;;  %vm1313_vm3 = vcmp.gt.f32.partialorder %v4359_v43, 0.0  ;;  %v4468_v23 = vpop.f32.mrb[39].mxu0  ;;  %v4472_v40 = vadd.f32 %v1933_v13, %v1932_v25  ;;  %v1805_v14 = vmul.f32 %v4216_v2, %v1691_v30  ;;  %v5594_v39 = vld [vmem:[#allocation19_spill] sm:$0xff] }
 0x1c6   : > { %5567 = vst [vmem:[#allocation58_spill] sm:$0xff] %v4468_v23  ;;  %v4470_v19 = vpop.f32.mrb[39].mxu1  ;;  %v2761_v6 = vadd.f32 -1.0, %v3119_v56  ;;  %vm1312_vm4 = vcmp.gt.f32.partialorder %v4378_v41, 0.0  ;;  %v4476_v9 = vadd.f32 %v1955_v28, %v1954_v38  ;;  %v1807_v15 = vmul.f32 %v4216_v2, %v1693_v4 }
 0x1c7   : > { %5568 = vst [vmem:[#allocation59_spill] sm:$0xff] %v4470_v19  ;;  %v1453_v50 = vmul.f32 1.442695, %v4450_v33  ;;  %v1455_v26 = vmul.f32 1.442695, %v4455_v5  ;;  %v4482_v21 = vadd.f32 %v1949_v18, %v1948_v48  ;;  %v1692_v25 = vsel %vm1308_vm1, %v4280_v61, %v2758_v62 }
 0x1c8   : > { %v3121_v0 = vpop.eup %3120  ;;  %v1695_v38 = vsel %vm1311_vm2, %v4342_v35, %v2761_v6  ;;  %v1459_v13 = vmul.f32 1.442695, %v4459_v49  ;;  %v4491_v28 = vpop.f32.mrb[40].mxu0  ;;  %v1941_v56 = vrot.slane %v1940_v46, 2  ;;  %v4498_v48 = vadd.f32 %v4196_v36, %v3936_v34  ;;  %v5574_v6 = vld [vmem:[#allocation32_spill] sm:$0xff] }
 0x1c9   : > { %5569 = vst [vmem:[#allocation60_spill] sm:$0xff] %v4482_v21  ;;  %5570 = vst [vmem:[#allocation61_spill] sm:$0xff] %v4491_v28  ;;  %v4493_v30 = vpop.f32.mrb[40].mxu1  ;;  %v1809_v7 = vmul.f32 %v4274_v47, %v1695_v38  ;;  %3126 = vpow2.f32 %v1453_v50  ;;  %v4500_v61 = vpop.f32.mrb[41].mxu0  ;;  %v4506_v18 = vadd.f32 %v4208_v24, %v3921_v53  ;;  %v1806_v50 = vmul.f32 %v4216_v2, %v1692_v25  ;;  %v5171_v21 = vld [vmem:[#allocation6 + $0x170] sm:$0xff] }
 0x1ca   : > { %5571 = vst [vmem:[#allocation62_spill] sm:$0xff] %v4493_v30  ;;  %v3123_v4 = vpop.eup %3122  ;;  %5572 = vst [vmem:[#allocation63_spill] sm:$0xff] %v4500_v61  ;;  %v4502_v62 = vpop.f32.mrb[41].mxu1  ;;  %3128 = vpow2.f32 %v1455_v26  ;;  %v4510_v30 = vadd.f32 %v5574_v6, %v3927_v55  ;;  %v1457_v36 = vmul.f32 1.442695, %v4498_v48  ;;  %vm1314_vm6 = vcmp.gt.f32.partialorder %v4450_v33, 0.0 }
 0x1cb   : > { %5573 = vst [vmem:[#allocation64_spill] sm:$0xff] %v4502_v62  ;;  %v2763_v35 = vadd.f32 -1.0, %v3123_v4  ;;  %v4513_v38 = vadd.f32 %v1809_v7, %v1805_v14  ;;  %3130 = vpow2.f32 %v1459_v13  ;;  %v2760_v4 = vadd.f32 -1.0, %v3121_v0  ;;  %v5579_v0 = vld [vmem:[#allocation33_spill] sm:$0xff] }
 0x1cc   : > { %v1461_v26 = vmul.f32 1.442695, %v4506_v18  ;;  %v4521_v28 = vpop.f32.mrb[42].mxu0  ;;  %v4523_v6 = vpop.f32.mrb[42].mxu1  ;;  %3132 = vpow2.f32 %v1457_v36  ;;  %v1463_v25 = vmul.f32 1.442695, %v4510_v30 }
 0x1cd   : > { %v3125_v61 = vpop.eup %3124  ;;  %v1697_v24 = vsel %vm1313_vm3, %v4359_v43, %v2763_v35  ;;  %5575 = vst [vmem:[#allocation32_spill] sm:$0xff] %v4521_v28  ;;  %5576 = vst [vmem:[#allocation65_spill] sm:$0xff] %v4523_v6  ;;  %v4527_v13 = vpop.f32.mrb[43].mxu0  ;;  %v4533_v43 = vadd.f32 %v5579_v0, %v3919_v52  ;;  %v5580_v35 = vld [vmem:[#allocation34_spill] sm:$0xff]  ;;  %v5581_v6 = vld [vmem:[#allocation35_spill] sm:$0xff]  ;;  %vm1292_vm11 = vcmp.gt.f32.partialorder %v5594_v39, 0.0 }
 0x1ce   : > { %v1811_v7 = vmul.f32 %v4274_v47, %v1697_v24  ;;  %v2762_v14 = vadd.f32 -1.0, %v3125_v61  ;;  %5577 = vst [vmem:[#allocation66_spill] sm:$0xff] %v4527_v13  ;;  %v4529_v62 = vpop.f32.mrb[43].mxu1  ;;  %3134 = vpow2.f32 %v1461_v26  ;;  %v4537_v28 = vadd.f32 %v5580_v35, %v3936_v34 }
 0x1cf   : > { %5578 = vst [vmem:[#allocation67_spill] sm:$0xff] %v4529_v62  ;;  %v4541_v24 = vadd.f32 %v5581_v6, %v3921_v53  ;;  %v5582_v62 = vld [vmem:[#allocation36_spill] sm:$0xff]  ;;  %v4553_v13 = vadd.f32 %v1941_v56, %v1940_v46  ;;  %v1694_v35 = vsel %vm1310_vm5, %v4284_v16, %v2760_v4  ;;  %v1467_v61 = vmul.f32 1.442695, %v4533_v43 }
 0x1d0   : > { %v4544_v36 = vadd.f32 %v1811_v7, %v1807_v15  ;;  %v1696_v26 = vsel %vm1312_vm4, %v4378_v41, %v2762_v14  ;;  %v4551_v0 = vadd.f32 %v5582_v62, %v3927_v55  ;;  %v4560_v15 = vpop.f32.mrb[44].mxu0  ;;  %v4562_v7 = vpop.f32.mrb[44].mxu1  ;;  %3136 = vpow2.f32 %v1463_v25  ;;  %v5585_v62 = vld [vmem:[#allocation37_spill] sm:$0xff]  ;;  %v5589_v25 = vld [vmem:[#allocation14_spill] sm:$0xff] }
 0x1d1   : > { %v1810_v6 = vmul.f32 %v4274_v47, %v1696_v26  ;;  %5583 = vst [vmem:[#allocation33_spill] sm:$0xff] %v4560_v15  ;;  %5584 = vst [vmem:[#allocation34_spill] sm:$0xff] %v4562_v7  ;;  %v1465_v41 = vmul.f32 1.442695, %v4537_v28  ;;  %v1469_v46 = vmul.f32 1.442695, %v4541_v24  ;;  %3138 = vpow2.f32 %v1467_v61 }
 0x1d2   : > { %v1471_v16 = vmul.f32 1.442695, %v4551_v0  ;;  %v4572_v4 = vadd.f32 %v5585_v62, %v3919_v52  ;;  %v4574_v14 = vpop.f32.mrb[45].mxu0  ;;  %v4576_v26 = vpop.f32.mrb[45].mxu1  ;;  %v5588_v15 = vld [vmem:[#allocation15_spill] sm:$0xff]  ;;  %vm1290_vm8 = vcmp.gt.f32.partialorder %v5589_v25, 0.0  ;;  %v1808_v19 = vmul.f32 %v4216_v2, %v1694_v35 }
 0x1d3   : > { %v4567_v56 = vadd.f32 %v1810_v6, %v1806_v50  ;;  %5586 = vst [vmem:[#allocation35_spill] sm:$0xff] %v4574_v14  ;;  %5587 = vst [vmem:[#allocation36_spill] sm:$0xff] %v4576_v26  ;;  %v3127_v7 = vpop.eup %3126  ;;  %vm1288_vm7 = vcmp.gt.f32.partialorder %v5588_v15, 0.0  ;;  %3140 = vpow2.f32 %v1465_v41  ;;  %v5590_v50 = vld [vmem:[#allocation38_spill] sm:$0xff]  ;;  %v5591_v6 = vld [vmem:[#allocation39_spill] sm:$0xff]  ;;  %vm1315_vm12 = vcmp.gt.f32.partialorder %v4455_v5, 0.0 }
 0x1d4   : > { %v4583_v61 = vadd.f32 %v5590_v50, %v3936_v34  ;;  %v4587_v62 = vadd.f32 %v5591_v6, %v3921_v53  ;;  %v3129_v23 = vpop.eup %3128  ;;  %v5592_v14 = vld [vmem:[#allocation16_spill] sm:$0xff]  ;;  %v5593_v26 = vld [vmem:[#allocation18_spill] sm:$0xff]  ;;  %v2764_v11 = vadd.f32 -1.0, %v3127_v7  ;;  %3142 = vpow2.f32 %v1469_v46  ;;  %v4594_v41 = vpop.f32.mrb[46].mxu0 }
 0x1d5   : > { %vm1291_vm9 = vcmp.gt.f32.partialorder %v5592_v14, 0.0  ;;  %vm1293_vm10 = vcmp.gt.f32.partialorder %v5593_v26, 0.0  ;;  %v1475_v35 = vmul.f32 1.442695, %v4572_v4  ;;  %5595 = vst [vmem:[#allocation37_spill] sm:$0xff] %v4594_v41  ;;  %v4596_v50 = vpop.f32.mrb[46].mxu1  ;;  %v3131_v1 = vpop.eup %3130  ;;  %3144 = vpow2.f32 %v1471_v16 }
 0x1d6   : > { %5596 = vst [vmem:[#allocation15_spill] sm:$0xff] %v4596_v50  ;;  %v5597_v6 = vld [vmem:[#allocation20_spill] sm:$0xff]  ;;  %v2765_v22 = vadd.f32 -1.0, %v3129_v23  ;;  %vm1317_vm14 = vcmp.gt.f32.partialorder %v4459_v49, 0.0  ;;  %v1473_v20 = vmul.f32 1.442695, %v4583_v61  ;;  %v1698_v46 = vsel %vm1314_vm6, %v4450_v33, %v2764_v11  ;;  %v3133_v23 = vpop.eup %3132 }
 0x1d7   : > { %vm1294_vm13 = vcmp.gt.f32.partialorder %v5597_v6, 0.0  ;;  %v4601_v44 = vpop.f32.mrb[47].mxu0  ;;  %v4603_v7 = vpop.f32.mrb[47].mxu1  ;;  %v2767_v41 = vadd.f32 -1.0, %v3131_v1  ;;  %3146 = vpow2.f32 %v1475_v35  ;;  %v4610_v50 = vadd.f32 %v4293_v29, %v3927_v55 }
 0x1d8   : > { %5598 = vst [vmem:[#allocation14_spill] sm:$0xff] %v4601_v44  ;;  %5599 = vst [vmem:[#allocation38_spill] sm:$0xff] %v4603_v7  ;;  %v1812_v3 = vmul.f32 %v4274_v47, %v1698_v46  ;;  %v1699_v16 = vsel %vm1315_vm12, %v4455_v5, %v2765_v22  ;;  %3148 = vpow2.f32 %v1473_v20  ;;  %v1477_v7 = vmul.f32 1.442695, %v4587_v62  ;;  %v3135_v44 = vpop.eup %3134 }
 0x1d9   : > { %v1813_v10 = vmul.f32 %v4335_v63, %v1699_v16  ;;  %v1701_v1 = vsel %vm1317_vm14, %v4459_v49, %v2767_v41  ;;  %vm1316_vm15 = vcmp.gt.f32.partialorder %v4498_v48, 0.0  ;;  %v2766_v29 = vadd.f32 -1.0, %v3133_v23 }
 0x1da   : > { %v1985_v33 = vadd.f32 %v1812_v3, %v1808_v19  ;;  %v1815_v11 = vmul.f32 %v4335_v63, %v1701_v1  ;;  %v2768_v35 = vadd.f32 -1.0, %v3135_v44  ;;  %3150 = vpow2.f32 %v1477_v7  ;;  %v3137_v46 = vpop.eup %3136 }
 0x1db   : > { %v1962_v22 = vadd.f32 %v4513_v38, %v1813_v10  ;;  %v1700_v20 = vsel %vm1316_vm15, %v4498_v48, %v2766_v29  ;;  %vm1318_vm0 = vcmp.gt.f32.partialorder %v4506_v18, 0.0  ;;  %v1479_v5 = vmul.f32 1.442695, %v4610_v50  ;;  %v3139_v44 = vpop.eup %3138 }
 0x1dc   : > { %v1978_v16 = vadd.f32 %v4544_v36, %v1815_v11  ;;  %v1814_v49 = vmul.f32 %v4335_v63, %v1700_v20  ;;  %v1702_v41 = vsel %vm1318_vm0, %v4506_v18, %v2768_v35  ;;  %v4632_v3 = vadd.f32 %v4295_v32, %v3919_v52 }
 0x1dd   : > { %v4638_v10 = vsel %vm1288_vm7, %v5588_v15, %v4419_v27  ;;  %v4644_v19 = vsel %vm1290_vm8, %v5589_v25, %v4422_v59  ;;  %v1816_v48 = vmul.f32 %v4335_v63, %v1702_v41  ;;  %3152 = vpow2.f32 %v1479_v5  ;;  %v3141_v18 = vpop.eup %3140 }
 0x1de   : > { %v4651_v32 = vsel %vm1291_vm9, %v5592_v14, %v4425_v57  ;;  %v4657_v27 = vsel %vm1293_vm10, %v5593_v26, %v4433_v37  ;;  %v4663_v59 = vsel %vm1292_vm11, %v5594_v39, %v4436_v51  ;;  %v4666_v38 = vadd.f32 %v4567_v56, %v1814_v49  ;;  %v3143_v36 = vpop.eup %3142 }
 0x1df   : > { %v4672_v57 = vsel %vm1294_vm13, %v5597_v6, %v4439_v12  ;;  %v4675_v37 = vadd.f32 %v1985_v33, %v1816_v48  ;;  %v2769_v14 = vadd.f32 -1.0, %v3137_v46  ;;  %v3145_v26 = vpop.eup %3144  ;;  %v5600_v39 = vrot.slane %v4472_v40, 1 }
 0x1e0   : > { %v1943_v56 = vrot.slane %v4553_v13, 1  ;;  %v5602_v25 = vrot.slane %v4476_v9, 2  ;;  %v2771_v12 = vadd.f32 -1.0, %v3139_v44  ;;  %vm1319_vm1 = vcmp.gt.f32.partialorder %v4510_v30, 0.0 }
 0x1e1   : > { %v4680_v51 = vadd.f32 %v5600_v39, %v4472_v40  ;;  %v3147_v6 = vpop.eup %3146  ;;  %vm1321_vm2 = vcmp.gt.f32.partialorder %v4533_v43, 0.0  ;;  %vm1320_vm3 = vcmp.gt.f32.partialorder %v4537_v28, 0.0  ;;  %v2770_v23 = vadd.f32 -1.0, %v3141_v18 }
 0x1e2   : > { %v4686_v7 = vadd.f32 %v5602_v25, %v4476_v9  ;;  %v3149_v1 = vpop.eup %3148  ;;  %vm1322_vm4 = vcmp.gt.f32.partialorder %v4541_v24, 0.0  ;;  %vm1323_vm5 = vcmp.gt.f32.partialorder %v4551_v0, 0.0  ;;  %vm1325_vm6 = vcmp.gt.f32.partialorder %v4572_v4, 0.0 }
 0x1e3   : > { %5601 = vst [vmem:[#allocation39_spill] sm:$0xff] %v4680_v51  ;;  %vm1324_vm7 = vcmp.gt.f32.partialorder %v4583_v61, 0.0  ;;  %v1703_v40 = vsel %vm1319_vm1, %v4510_v30, %v2769_v14  ;;  %v2772_v9 = vadd.f32 -1.0, %v3143_v36  ;;  %v2773_v29 = vadd.f32 -1.0, %v3145_v26 }
 0x1e4   : > { %vm1326_vm8 = vcmp.gt.f32.partialorder %v4587_v62, 0.0  ;;  %v3151_v33 = vpop.eup %3150  ;;  %v1963_v11 = vrot.slane %v1962_v22, 4  ;;  %v1705_v35 = vsel %vm1321_vm2, %v4533_v43, %v2771_v12  ;;  %v2775_v20 = vadd.f32 -1.0, %v3147_v6 }
 0x1e5   : > { %v2774_v5 = vadd.f32 -1.0, %v3149_v1  ;;  %v1979_v46 = vrot.slane %v1978_v16, 4  ;;  %v1704_v49 = vsel %vm1320_vm3, %v4537_v28, %v2770_v23  ;;  %v1707_v41 = vsel %vm1323_vm5, %v4551_v0, %v2773_v29  ;;  %v2334_v1 = vld [vmem:[#allocation7 + $0x88] sm:$0xff] }
 0x1e6   : > { %v2776_v44 = vadd.f32 -1.0, %v3151_v33  ;;  %v1817_v30 = vmul.f32 %v4216_v2, %v1703_v40  ;;  %v1821_v48 = vmul.f32 %v4274_v47, %v1707_v41  ;;  %v1709_v18 = vsel %vm1325_vm6, %v4572_v4, %v2775_v20  ;;  %v2336_v40 = vld [vmem:[#allocation7 + $0x98] sm:$0xff]  ;;  %v2137_v33 = vld [vmem:[#allocation6 + $0x80] sm:$0xff] }
 0x1e7   : > { %vm1327_vm9 = vcmp.gt.f32.partialorder %v4610_v50, 0.0  ;;  %v3153_v43 = vpop.eup %3152  ;;  %v1819_v36 = vmul.f32 %v4216_v2, %v1705_v35  ;;  %v1706_v28 = vsel %vm1322_vm4, %v4541_v24, %v2772_v9  ;;  %v1823_v0 = vmul.f32 %v4274_v47, %v1709_v18  ;;  %v5603_v35 = vld [vmem:[#allocation40_spill] sm:$0xff] }
 0x1e8   : > { %v1708_v14 = vsel %vm1324_vm7, %v4583_v61, %v2774_v5  ;;  %v1964_v26 = vadd.f32 %v1963_v11, %v1962_v22  ;;  %v1818_v39 = vmul.f32 %v4216_v2, %v1704_v49  ;;  %v1993_v25 = vadd.f32 %v1821_v48, %v1817_v30  ;;  %v2139_v5 = vld [vmem:[#allocation6 + $0x90] sm:$0xff] }
 0x1e9   : > { %v1822_v4 = vmul.f32 %v4274_v47, %v1708_v14  ;;  %v4718_v12 = vadd.f32 %v1979_v46, %v1978_v16  ;;  %v4720_v6 = vadd.f32 %v1823_v0, %v1819_v36  ;;  %v1710_v24 = vsel %vm1326_vm8, %v4587_v62, %v2776_v44  ;;  %v2333_v46 = vld [vmem:[#allocation7 + $0x80] sm:$0xff]  ;;  %v2335_v49 = vld [vmem:[#allocation7 + $0x90] sm:$0xff]  ;;  %v5604_v14 = vld [vmem:[#allocation41_spill] sm:$0xff] }
 0x1ea   : > { %v2777_v23 = vadd.f32 -1.0, %v3153_v43  ;;  %v1820_v9 = vmul.f32 %v4216_v2, %v1706_v28  ;;  %v1824_v22 = vmul.f32 %v4274_v47, %v1710_v24  ;;  %v1483_v29 = vmul.f32 1.442695, %v4632_v3  ;;  %v5605_v24 = vld [vmem:[#allocation42_spill] sm:$0xff] }
 0x1eb   : > { %v4726_v61 = vadd.f32 %v1822_v4, %v1818_v39  ;;  %v1971_v16 = vrot.slane %v4666_v38, 4  ;;  %v4736_v62 = vadd.f32 %v4302_v42, %v3936_v34  ;;  %v4740_v20 = vadd.f32 %v5603_v35, %v3921_v53 }
 0x1ec   : > { %v1711_v11 = vsel %vm1327_vm9, %v4610_v50, %v2777_v23  ;;  %v4742_v41 = vadd.f32 %v1824_v22, %v1820_v9  ;;  %3154 = vpow2.f32 %v1483_v29  ;;  %v2912_v30 = vpack.c.bf16 %v2336_v40, %v2334_v1  ;;  %v2142_v23 = vld [vmem:[#allocation6 + $0xa8] sm:$0xff]  ;;  %v2144_v9 = vld [vmem:[#allocation6 + $0xb8] sm:$0xff] }
 0x1ed   : > { %v1825_v44 = vmul.f32 %v4335_v63, %v1711_v11  ;;  %v1965_v48 = vrot.slane %v1964_v26, 2  ;;  %v1987_v50 = vrot.slane %v4675_v37, 4  ;;  %v1481_v18 = vmul.f32 1.442695, %v4736_v62  ;;  %v2338_v22 = vld [vmem:[#allocation7 + $0xa8] sm:$0xff]  ;;  %v2340_v29 = vld [vmem:[#allocation7 + $0xb8] sm:$0xff] }
 0x1ee   : > { %v1485_v42 = vmul.f32 1.442695, %v4740_v20  ;;  %2913 = vmatprep.subr.bf16.mxu1 %v2912_v30  ;;  %v2850_v36 = vpack.c.bf16 %v2139_v5, %v2137_v33  ;;  %v2914_v28 = vpack.c.bf16 %v2335_v49, %v2333_v46  ;;  %v4752_v0 = vadd.f32 %v4323_v45, %v3927_v55  ;;  %v2339_v30 = vld [vmem:[#allocation7 + $0xb0] sm:$0xff] }
 0x1ef   : > { %v4748_v43 = vadd.f32 %v1993_v25, %v1825_v44  ;;  %3156 = vpow2.f32 %v1481_v18  ;;  %v4756_v39 = vadd.f32 %v5604_v14, %v3919_v52  ;;  %v4760_v4 = vadd.f32 %v4331_v17, %v3936_v34  ;;  %v2337_v44 = vld [vmem:[#allocation7 + $0xa0] sm:$0xff] }
 0x1f0   : > { %v4764_v25 = vadd.f32 %v5605_v24, %v3921_v53  ;;  %v1959_v1 = vrot.slane %v4686_v7, 1  ;;  %v1972_v40 = vadd.f32 %v1971_v16, %v4666_v38  ;;  %3158 = vpow2.f32 %v1485_v42  ;;  %2851 = vmatpush1.bf16.msra.mxu0 %v2850_v36  ;;  %2915 = vmatpush1.bf16.msra.mxu1 %v2914_v28  ;;  %v2141_v38 = vld [vmem:[#allocation6 + $0xa0] sm:$0xff]  ;;  %v2143_v16 = vld [vmem:[#allocation6 + $0xb0] sm:$0xff] }
 0x1f1   : > { %v1487_v45 = vmul.f32 1.442695, %v4752_v0  ;;  %v4772_v17 = vadd.f32 %v1943_v56, %v4553_v13  ;;  %v1988_v33 = vadd.f32 %v1987_v50, %v4675_v37  ;;  %v1491_v11 = vmul.f32 1.442695, %v4756_v39 }
 0x1f2   : > { %v1489_v35 = vmul.f32 1.442695, %v4760_v4  ;;  %v1966_v5 = vadd.f32 %v1965_v48, %v1964_v26  ;;  %v1981_v46 = vrot.slane %v4718_v12, 2  ;;  %v1493_v49 = vmul.f32 1.442695, %v4764_v25 }
 0x1f3   : > { %3160 = vpow2.f32 %v1487_v45  ;;  %v2852_v18 = vpack.c.bf16 %v2144_v9, %v2142_v23  ;;  %v2916_v13 = vpack.c.bf16 %v2340_v29, %v2338_v22  ;;  %v4781_v37 = vadd.f32 %v4351_v60, %v3927_v55  ;;  %v5607_v23 = vld [vmem:[#allocation43_spill] sm:$0xff] }
 0x1f4   : > { %3162 = vpow2.f32 %v1491_v11  ;;  %v1973_v56 = vrot.slane %v1972_v40, 2  ;;  %v4785_v50 = vadd.f32 %v4353_v54, %v3919_v52  ;;  %v2854_v26 = vpack.c.bf16 %v2143_v16, %v2141_v38 }
 0x1f5   : > { %3164 = vpow2.f32 %v1489_v35  ;;  %v1989_v48 = vrot.slane %v1988_v33, 2  ;;  %vm1329_vm10 = vcmp.gt.f32.partialorder %v4632_v3, 0.0  ;;  %2853 = vmatprep.subr.bf16.mxu0 %v2852_v18  ;;  %2917 = vmatprep.subr.bf16.mxu1 %v2916_v13  ;;  %v1495_v42 = vmul.f32 1.442695, %v4781_v37  ;;  %v5608_v13 = vld [vmem:[#allocation49_spill] sm:$0xff] }
 0x1f6   : > { %v2918_v36 = vpack.c.bf16 %v2339_v30, %v2337_v44  ;;  %v3155_v28 = vpop.eup %3154  ;;  %v4790_v14 = vadd.f32 %v1981_v46, %v4718_v12  ;;  %3166 = vpow2.f32 %v1493_v49  ;;  %v1499_v60 = vmul.f32 1.442695, %v4785_v50  ;;  %2855 = vmatpush1.bf16.msra.mxu0 %v2854_v26 }
 0x1f7   : > { %v4795_v54 = vadd.f32 %v4361_v31, %v3936_v34  ;;  %v2779_v24 = vadd.f32 -1.0, %v3155_v28  ;;  %3168 = vpow2.f32 %v1495_v42  ;;  %v4799_v45 = vadd.f32 %v5607_v23, %v3921_v53 }
 0x1f8   : > { %5606 = vst [vmem:[#allocation16_spill] sm:$0xff] %v4790_v14  ;;  %2919 = vmatpush1.bf16.msra.mxu1 %v2918_v36  ;;  %v4803_v9 = vadd.f32 %v4380_v58, %v3927_v55  ;;  %v1967_v12 = vrot.slane %v1966_v5, 1  ;;  %v4805_v22 = vadd.f32 %v1973_v56, %v1972_v40  ;;  %3170 = vpow2.f32 %v1499_v60 }
 0x1f9   : > { %v1497_v29 = vmul.f32 1.442695, %v4795_v54  ;;  %v3157_v11 = vpop.eup %3156  ;;  %v4808_v31 = vadd.f32 %v1989_v48, %v1988_v33  ;;  %v1713_v35 = vsel %vm1329_vm10, %v4632_v3, %v2779_v24  ;;  %vm1328_vm11 = vcmp.gt.f32.partialorder %v4736_v62, 0.0 }
 0x1fa   : > { %v1501_v38 = vmul.f32 1.442695, %v4799_v45  ;;  %v3159_v16 = vpop.eup %3158  ;;  %v1827_v58 = vmul.f32 %v4335_v63, %v1713_v35  ;;  %v2778_v46 = vadd.f32 -1.0, %v3157_v11  ;;  %vm1330_vm12 = vcmp.gt.f32.partialorder %v4740_v20, 0.0 }
 0x1fb   : > { %3172 = vpow2.f32 %v1497_v29  ;;  %v2780_v40 = vadd.f32 -1.0, %v3159_v16  ;;  %v1503_v33 = vmul.f32 1.442695, %v4803_v9  ;;  %v4820_v49 = vadd.f32 %v4382_v8, %v3919_v52 }
 0x1fc   : > { %3174 = vpow2.f32 %v1501_v38  ;;  %v1995_v44 = vrot.slane %v4748_v43, 4  ;;  %v4824_v30 = vadd.f32 %v4720_v6, %v1827_v58  ;;  %v1712_v18 = vsel %vm1328_vm11, %v4736_v62, %v2778_v46 }
 0x1fd   : > { %v3161_v3 = vpop.eup %3160  ;;  %v4829_v56 = vadd.f32 %v5608_v13, %v3921_v53  ;;  %v1826_v48 = vmul.f32 %v4335_v63, %v1712_v18  ;;  %v1714_v42 = vsel %vm1330_vm12, %v4740_v20, %v2780_v40  ;;  %3176 = vpow2.f32 %v1503_v33  ;;  %v5610_v33 = vld [vmem:[#allocation48_spill] sm:$0xff] }
 0x1fe   : > { %v3163_v26 = vpop.eup %3162  ;;  %v2781_v36 = vadd.f32 -1.0, %v3161_v3  ;;  %v4836_v28 = vadd.f32 %v1959_v1, %v4686_v7  ;;  %v4838_v6 = vadd.f32 %v1967_v12, %v1966_v5  ;;  %v1828_v60 = vmul.f32 %v4335_v63, %v1714_v42 }
 0x1ff   : > { %v3165_v8 = vpop.eup %3164  ;;  %v1975_v24 = vrot.slane %v4805_v22, 1  ;;  %v4844_v23 = vadd.f32 %v4726_v61, %v1826_v48  ;;  %v2783_v20 = vadd.f32 -1.0, %v3163_v26  ;;  %v1507_v29 = vmul.f32 1.442695, %v4820_v49 }
 0x200   : > { %5609 = vst [vmem:[#allocation18_spill] sm:$0xff] %v4838_v6  ;;  %v3167_v11 = vpop.eup %3166  ;;  %v1991_v35 = vrot.slane %v4808_v31, 1  ;;  %v4849_v7 = vadd.f32 %v4742_v41, %v1828_v60  ;;  %vm1331_vm13 = vcmp.gt.f32.partialorder %v4752_v0, 0.0  ;;  %vm1333_vm14 = vcmp.gt.f32.partialorder %v4756_v39, 0.0  ;;  %v5175_v6 = vld [vmem:[#allocation7 + $0x170] sm:$0xff] }
 0x201   : > { %v3169_v1 = vpop.eup %3168  ;;  %v4854_v5 = vadd.f32 %v1995_v44, %v4748_v43  ;;  %v1715_v61 = vsel %vm1331_vm13, %v4752_v0, %v2781_v36  ;;  %vm1332_vm15 = vcmp.gt.f32.partialorder %v4760_v4, 0.0  ;;  %v2782_v12 = vadd.f32 -1.0, %v3165_v8 }
 0x202   : > { %v3171_v38 = vpop.eup %3170  ;;  %vm1334_vm0 = vcmp.gt.f32.partialorder %v4764_v25, 0.0  ;;  %vm1335_vm1 = vcmp.gt.f32.partialorder %v4781_v37, 0.0  ;;  %v2785_v41 = vadd.f32 -1.0, %v3169_v1  ;;  %vm1337_vm2 = vcmp.gt.f32.partialorder %v4785_v50, 0.0 }
 0x203   : > { %v1717_v16 = vsel %vm1333_vm14, %v4756_v39, %v2783_v20  ;;  %v2784_v58 = vadd.f32 -1.0, %v3167_v11  ;;  %v2787_v46 = vadd.f32 -1.0, %v3171_v38  ;;  %3178 = vpow2.f32 %v1507_v29  ;;  %v2146_v20 = vld [vmem:[#allocation6 + $0xc8] sm:$0xff]  ;;  %v2344_v38 = vld [vmem:[#allocation7 + $0xd8] sm:$0xff] }
 0x204   : > { %v1829_v40 = vmul.f32 %v4216_v2, %v1715_v61  ;;  %v1719_v0 = vsel %vm1335_vm1, %v4781_v37, %v2785_v41  ;;  %vm1336_vm3 = vcmp.gt.f32.partialorder %v4795_v54, 0.0  ;;  %v4867_v3 = vadd.f32 %v5610_v33, %v3936_v34  ;;  %v2148_v61 = vld [vmem:[#allocation6 + $0xd8] sm:$0xff] }
 0x205   : > { %v3173_v43 = vpop.eup %3172  ;;  %v1716_v18 = vsel %vm1332_vm15, %v4760_v4, %v2782_v12  ;;  %v1833_v39 = vmul.f32 %v4274_v47, %v1719_v0  ;;  %v1721_v13 = vsel %vm1337_vm2, %v4785_v50, %v2787_v46  ;;  %v1831_v48 = vmul.f32 %v4216_v2, %v1717_v16  ;;  %v2342_v12 = vld [vmem:[#allocation7 + $0xc8] sm:$0xff]  ;;  %v2147_v46 = vld [vmem:[#allocation6 + $0xd0] sm:$0xff] }
 0x206   : > { %v3175_v44 = vpop.eup %3174  ;;  %v2786_v26 = vadd.f32 -1.0, %v3173_v43  ;;  %v1835_v37 = vmul.f32 %v4274_v47, %v1721_v13  ;;  %vm1338_vm4 = vcmp.gt.f32.partialorder %v4799_v45, 0.0  ;;  %v1718_v8 = vsel %vm1334_vm0, %v4764_v25, %v2784_v58  ;;  %v2145_v58 = vld [vmem:[#allocation6 + $0xc0] sm:$0xff] }
 0x207   : > { %v2788_v42 = vadd.f32 -1.0, %v3175_v44  ;;  %v3177_v36 = vpop.eup %3176  ;;  %v2025_v60 = vadd.f32 %v1833_v39, %v1829_v40  ;;  %vm1339_vm5 = vcmp.gt.f32.partialorder %v4803_v9, 0.0  ;;  %v2011_v50 = vrot.slane %v4824_v30, 4  ;;  %v2341_v44 = vld [vmem:[#allocation7 + $0xc0] sm:$0xff] }
 0x208   : > { %v1720_v4 = vsel %vm1336_vm3, %v4795_v54, %v2786_v26  ;;  %v1830_v29 = vmul.f32 %v4216_v2, %v1716_v18  ;;  %v2041_v11 = vadd.f32 %v1835_v37, %v1831_v48  ;;  %v2003_v41 = vrot.slane %v4844_v23, 4  ;;  %v2343_v18 = vld [vmem:[#allocation7 + $0xd0] sm:$0xff] }
 0x209   : > { %v1834_v1 = vmul.f32 %v4274_v47, %v1720_v4  ;;  %v1722_v25 = vsel %vm1338_vm4, %v4799_v45, %v2788_v42  ;;  %v2789_v54 = vadd.f32 -1.0, %v3177_v36  ;;  %v1505_v16 = vmul.f32 1.442695, %v4867_v3  ;;  %v5611_v4 = vld [vmem:[#allocation52_spill] sm:$0xff] }
 0x20a   : > { %v2019_v43 = vrot.slane %v4849_v7, 4  ;;  %v1832_v40 = vmul.f32 %v4216_v2, %v1718_v8  ;;  %v1836_v33 = vmul.f32 %v4274_v47, %v1722_v25  ;;  %v1509_v45 = vmul.f32 1.442695, %v4829_v56 }
 0x20b   : > { %v4892_v0 = vadd.f32 %v1834_v1, %v1830_v29  ;;  %v1723_v39 = vsel %vm1339_vm5, %v4803_v9, %v2789_v54  ;;  %3180 = vpow2.f32 %v1505_v16  ;;  %v2856_v13 = vpack.c.bf16 %v2148_v61, %v2146_v20  ;;  %v5612_v9 = vld [vmem:[#allocation53_spill] sm:$0xff]  ;;  %v5613_v61 = vld [vmem:[#allocation54_spill] sm:$0xff] }
 0x20c   : > { %v4899_v26 = vadd.f32 %v1836_v33, %v1832_v40  ;;  %v1837_v48 = vmul.f32 %v4335_v63, %v1723_v39  ;;  %v2920_v37 = vpack.c.bf16 %v2344_v38, %v2342_v12  ;;  %v2858_v42 = vpack.c.bf16 %v2147_v46, %v2145_v58  ;;  %v5614_v38 = vld [vmem:[#allocation55_spill] sm:$0xff]  ;;  %v2150_v16 = vld [vmem:[#allocation6 + $0xe8] sm:$0xff] }
 0x20d   : > { %v3179_v36 = vpop.eup %3178  ;;  %3182 = vpow2.f32 %v1509_v45  ;;  %2857 = vmatprep.subr.bf16.mxu0 %v2856_v13  ;;  %v2922_v8 = vpack.c.bf16 %v2343_v18, %v2341_v44  ;;  %v4904_v29 = vadd.f32 %v5611_v4, %v3927_v55  ;;  %v4908_v1 = vadd.f32 %v5612_v9, %v3919_v52  ;;  %v2152_v58 = vld [vmem:[#allocation6 + $0xf8] sm:$0xff]  ;;  %v2346_v46 = vld [vmem:[#allocation7 + $0xe8] sm:$0xff] }
 0x20e   : > { %v2026_v25 = vadd.f32 %v2025_v60, %v1837_v48  ;;  %v2791_v20 = vadd.f32 -1.0, %v3179_v36  ;;  %2921 = vmatprep.subr.bf16.mxu1 %v2920_v37  ;;  %2859 = vmatpush1.bf16.msra.mxu0 %v2858_v42  ;;  %v4912_v12 = vadd.f32 %v5613_v61, %v3936_v34  ;;  %v4916_v54 = vadd.f32 %v5614_v38, %v3921_v53  ;;  %v2348_v44 = vld [vmem:[#allocation7 + $0xf8] sm:$0xff]  ;;  %v2149_v48 = vld [vmem:[#allocation6 + $0xe0] sm:$0xff]  ;;  %v2151_v42 = vld [vmem:[#allocation6 + $0xf0] sm:$0xff] }
 0x20f   : > { %v4921_v40 = vadd.f32 %v1975_v24, %v4805_v22  ;;  %vm1341_vm6 = vcmp.gt.f32.partialorder %v4820_v49, 0.0  ;;  %2923 = vmatpush1.bf16.msra.mxu1 %v2922_v8  ;;  %v1511_v60 = vmul.f32 1.442695, %v4904_v29  ;;  %v1515_v33 = vmul.f32 1.442695, %v4908_v1  ;;  %v2345_v36 = vld [vmem:[#allocation7 + $0xe0] sm:$0xff] }
 0x210   : > { %v1997_v18 = vrot.slane %v4854_v5, 2  ;;  %v2012_v39 = vadd.f32 %v2011_v50, %v4824_v30  ;;  %v1725_v45 = vsel %vm1341_vm6, %v4820_v49, %v2791_v20  ;;  %v1513_v13 = vmul.f32 1.442695, %v4912_v12  ;;  %v2347_v8 = vld [vmem:[#allocation7 + $0xf0] sm:$0xff]  ;;  %v5615_v49 = vld [vmem:[#allocation56_spill] sm:$0xff] }
 0x211   : > { %v2004_v22 = vadd.f32 %v2003_v41, %v4844_v23  ;;  %v1839_v24 = vmul.f32 %v4335_v63, %v1725_v45  ;;  %3184 = vpow2.f32 %v1511_v60  ;;  %v1517_v37 = vmul.f32 1.442695, %v4916_v54  ;;  %v5616_v23 = vld [vmem:[#allocation57_spill] sm:$0xff] }
 0x212   : > { %v2020_v4 = vadd.f32 %v2019_v43, %v4849_v7  ;;  %3186 = vpow2.f32 %v1515_v33  ;;  %v2860_v9 = vpack.c.bf16 %v2152_v58, %v2150_v16  ;;  %v2924_v30 = vpack.c.bf16 %v2348_v44, %v2346_v46 }
 0x213   : > { %v4934_v50 = vadd.f32 %v2041_v11, %v1839_v24  ;;  %3188 = vpow2.f32 %v1513_v13  ;;  %v4938_v20 = vadd.f32 %v5615_v49, %v3927_v55  ;;  %v4942_v41 = vadd.f32 %v5616_v23, %v3919_v52 }
 0x214   : > { %v4947_v61 = vadd.f32 %v1991_v35, %v4808_v31  ;;  %3190 = vpow2.f32 %v1517_v37  ;;  %2861 = vmatprep.subr.bf16.mxu0 %v2860_v9  ;;  %2925 = vmatprep.subr.bf16.mxu1 %v2924_v30  ;;  %v2862_v7 = vpack.c.bf16 %v2151_v42, %v2149_v48  ;;  %v2926_v11 = vpack.c.bf16 %v2347_v8, %v2345_v36  ;;  %v5618_v31 = vld [vmem:[#allocation58_spill] sm:$0xff]  ;;  %v5620_v37 = vld [vmem:[#allocation61_spill] sm:$0xff] }
 0x215   : > { %v3181_v43 = vpop.eup %3180  ;;  %v4950_v38 = vadd.f32 %v1997_v18, %v4854_v5  ;;  %v2013_v16 = vrot.slane %v2012_v39, 2  ;;  %v2027_v58 = vrot.slane %v2026_v25, 4  ;;  %v1519_v46 = vmul.f32 1.442695, %v4938_v20  ;;  %v5619_v5 = vld [vmem:[#allocation59_spill] sm:$0xff]  ;;  %v2362_v30 = vld [vmem:[#allocation7 + $0x168] sm:$0xff] }
 0x216   : > { %v2005_v60 = vrot.slane %v2004_v22, 2  ;;  %v2790_v33 = vadd.f32 -1.0, %v3181_v43  ;;  %v1523_v44 = vmul.f32 1.442695, %v4942_v41  ;;  %2863 = vmatpush1.bf16.msra.mxu0 %v2862_v7  ;;  %2927 = vmatpush1.bf16.msra.mxu1 %v2926_v11  ;;  %v4956_v35 = vadd.f32 %v5618_v31, %v3936_v34 }
 0x217   : > { %5617 = vst [vmem:[#allocation19_spill] sm:$0xff] %v4950_v38  ;;  %v3183_v45 = vpop.eup %3182  ;;  %v2021_v13 = vrot.slane %v2020_v4, 2  ;;  %vm1340_vm7 = vcmp.gt.f32.partialorder %v4867_v3, 0.0  ;;  %3192 = vpow2.f32 %v1519_v46  ;;  %v4961_v18 = vadd.f32 %v5619_v5, %v3921_v53  ;;  %v5185_v38 = vld [vmem:[#allocation6 + $0x190] sm:$0xff] }
 0x218   : > { %v1724_v48 = vsel %vm1340_vm7, %v4867_v3, %v2790_v33  ;;  %v2792_v24 = vadd.f32 -1.0, %v3183_v45  ;;  %3194 = vpow2.f32 %v1523_v44  ;;  %v4966_v42 = vadd.f32 %v5620_v37, %v3927_v55 }
 0x219   : > { %v2028_v36 = vadd.f32 %v2027_v58, %v2026_v25  ;;  %v1838_v8 = vmul.f32 %v4335_v63, %v1724_v48  ;;  %vm1342_vm8 = vcmp.gt.f32.partialorder %v4829_v56, 0.0  ;;  %v1521_v9 = vmul.f32 1.442695, %v4956_v35 }
 0x21a   : > { %v4972_v49 = vadd.f32 %v2013_v16, %v2012_v39  ;;  %v1726_v23 = vsel %vm1342_vm8, %v4829_v56, %v2792_v24  ;;  %v1525_v3 = vmul.f32 1.442695, %v4961_v18  ;;  %v4976_v11 = vadd.f32 %v2005_v60, %v2004_v22 }
 0x21b   : > { %v3185_v7 = vpop.eup %3184  ;;  %v4979_v43 = vadd.f32 %v4892_v0, %v1838_v8  ;;  %v1840_v25 = vmul.f32 %v4335_v63, %v1726_v23  ;;  %3196 = vpow2.f32 %v1521_v9  ;;  %v4982_v46 = vadd.f32 %v2021_v13, %v2020_v4  ;;  %v5622_v4 = vld [vmem:[#allocation62_spill] sm:$0xff] }
 0x21c   : > { %5621 = vst [vmem:[#allocation20_spill] sm:$0xff] %v4972_v49  ;;  %v3187_v58 = vpop.eup %3186  ;;  %v2793_v33 = vadd.f32 -1.0, %v3185_v7  ;;  %3198 = vpow2.f32 %v1525_v3  ;;  %v1527_v39 = vmul.f32 1.442695, %v4966_v42  ;;  %v2029_v56 = vrot.slane %v2028_v36, 2  ;;  %v5180_v49 = vld [vmem:[#allocation6 + $0x188] sm:$0xff] }
 0x21d   : > { %v3189_v16 = vpop.eup %3188  ;;  %v2043_v44 = vrot.slane %v4934_v50, 4  ;;  %v4987_v22 = vadd.f32 %v4899_v26, %v1840_v25  ;;  %v2795_v60 = vadd.f32 -1.0, %v3187_v58  ;;  %vm1343_vm9 = vcmp.gt.f32.partialorder %v4904_v29, 0.0  ;;  %v2154_v58 = vld [vmem:[#allocation6 + $0x108] sm:$0xff] }
 0x21e   : > { %v3191_v0 = vpop.eup %3190  ;;  %v2794_v31 = vadd.f32 -1.0, %v3189_v16  ;;  %3200 = vpow2.f32 %v1527_v39  ;;  %v4992_v45 = vadd.f32 %v5622_v4, %v3919_v52  ;;  %vm1345_vm10 = vcmp.gt.f32.partialorder %v4908_v1, 0.0  ;;  %v5626_v4 = vld [vmem:[#allocation64_spill] sm:$0xff] }
 0x21f   : > { %vm1344_vm11 = vcmp.gt.f32.partialorder %v4912_v12, 0.0  ;;  %vm1346_vm12 = vcmp.gt.f32.partialorder %v4916_v54, 0.0  ;;  %vm1347_vm13 = vcmp.gt.f32.partialorder %v4938_v20, 0.0  ;;  %v1727_v26 = vsel %vm1343_vm9, %v4904_v29, %v2793_v33  ;;  %v2156_v33 = vld [vmem:[#allocation6 + $0x118] sm:$0xff] }
 0x220   : > { %v1729_v13 = vsel %vm1345_vm10, %v4908_v1, %v2795_v60  ;;  %v2796_v5 = vadd.f32 -1.0, %v3191_v0  ;;  %vm1349_vm14 = vcmp.gt.f32.partialorder %v4942_v41, 0.0  ;;  %v5001_v24 = vadd.f32 %v2029_v56, %v2028_v36  ;;  %v5625_v1 = vld [vmem:[#allocation63_spill] sm:$0xff]  ;;  %v2350_v56 = vld [vmem:[#allocation7 + $0x108] sm:$0xff] }
 0x221   : > { %v3193_v48 = vpop.eup %3192  ;;  %v5004_v37 = vadd.f32 %v2043_v44, %v4934_v50  ;;  %vm1348_vm15 = vcmp.gt.f32.partialorder %v4956_v35, 0.0  ;;  %vm1350_vm0 = vcmp.gt.f32.partialorder %v4961_v18, 0.0  ;;  %v1728_v9 = vsel %vm1344_vm11, %v4912_v12, %v2794_v31 }
 0x222   : > { %5623 = vst [vmem:[#allocation40_spill] sm:$0xff] %v5001_v24  ;;  %v3195_v8 = vpop.eup %3194  ;;  %v2797_v23 = vadd.f32 -1.0, %v3193_v48  ;;  %v1531_v29 = vmul.f32 1.442695, %v4992_v45  ;;  %v5012_v3 = vadd.f32 %v5625_v1, %v3936_v34  ;;  %v2035_v36 = vrot.slane %v4979_v43, 4  ;;  %v2368_v24 = vld [vmem:[#allocation7 + $0x198] sm:$0xff] }
 0x223   : > { %5624 = vst [vmem:[#allocation41_spill] sm:$0xff] %v5004_v37  ;;  %v1841_v7 = vmul.f32 %v4216_v2, %v1727_v26  ;;  %v1843_v50 = vmul.f32 %v4216_v2, %v1729_v13  ;;  %v2799_v25 = vadd.f32 -1.0, %v3195_v8  ;;  %v1730_v12 = vsel %vm1346_vm12, %v4916_v54, %v2796_v5  ;;  %v2352_v26 = vld [vmem:[#allocation7 + $0x118] sm:$0xff]  ;;  %v2153_v13 = vld [vmem:[#allocation6 + $0x100] sm:$0xff] }
 0x224   : > { %v1731_v39 = vsel %vm1347_vm13, %v4938_v20, %v2797_v23  ;;  %3202 = vpow2.f32 %v1531_v29  ;;  %v1529_v16 = vmul.f32 1.442695, %v5012_v3  ;;  %v1842_v60 = vmul.f32 %v4216_v2, %v1728_v9  ;;  %v2155_v20 = vld [vmem:[#allocation6 + $0x110] sm:$0xff]  ;;  %v5183_v37 = vld [vmem:[#allocation6 + $0x180] sm:$0xff] }
 0x225   : > { %v3197_v44 = vpop.eup %3196  ;;  %v1845_v0 = vmul.f32 %v4274_v47, %v1731_v39  ;;  %v1733_v31 = vsel %vm1349_vm14, %v4942_v41, %v2799_v25  ;;  %v5031_v54 = vadd.f32 %v5626_v4, %v3921_v53  ;;  %v2864_v23 = vpack.c.bf16 %v2156_v33, %v2154_v58  ;;  %v2349_v41 = vld [vmem:[#allocation7 + $0x100] sm:$0xff]  ;;  %v2351_v25 = vld [vmem:[#allocation7 + $0x110] sm:$0xff] }
 0x226   : > { %v3199_v5 = vpop.eup %3198  ;;  %v1847_v48 = vmul.f32 %v4274_v47, %v1733_v31  ;;  %v2798_v8 = vadd.f32 -1.0, %v3197_v44  ;;  %3204 = vpow2.f32 %v1529_v16  ;;  %v1844_v9 = vmul.f32 %v4216_v2, %v1730_v12 }
 0x227   : > { %v2057_v29 = vadd.f32 %v1845_v0, %v1841_v7  ;;  %v2800_v1 = vadd.f32 -1.0, %v3199_v5  ;;  %v1533_v39 = vmul.f32 1.442695, %v5031_v54  ;;  %2865 = vmatprep.subr.bf16.mxu0 %v2864_v23  ;;  %v2928_v31 = vpack.c.bf16 %v2352_v26, %v2350_v56  ;;  %v5628_v0 = vld [vmem:[#allocation65_spill] sm:$0xff]  ;;  %v2356_v23 = vld [vmem:[#allocation7 + $0x138] sm:$0xff] }
 0x228   : > { %v3201_v62 = vpop.eup %3200  ;;  %v5036_v4 = vadd.f32 %v1847_v48, %v1843_v50  ;;  %v1732_v15 = vsel %vm1348_vm15, %v4956_v35, %v2798_v8  ;;  %v2866_v44 = vpack.c.bf16 %v2155_v20, %v2153_v13  ;;  %vm1351_vm1 = vcmp.gt.f32.partialorder %v4966_v42, 0.0  ;;  %v5627_v35 = vld [vmem:[#allocation32_spill] sm:$0xff]  ;;  %v2158_v13 = vld [vmem:[#allocation6 + $0x128] sm:$0xff]  ;;  %v2160_v20 = vld [vmem:[#allocation6 + $0x138] sm:$0xff] }
 0x229   : > { %v1846_v58 = vmul.f32 %v4274_v47, %v1732_v15  ;;  %v1734_v7 = vsel %vm1350_vm0, %v4961_v18, %v2800_v1  ;;  %v2801_v33 = vadd.f32 -1.0, %v3201_v62  ;;  %3206 = vpow2.f32 %v1533_v39  ;;  %2929 = vmatprep.subr.bf16.mxu1 %v2928_v31  ;;  %v5629_v62 = vld [vmem:[#allocation66_spill] sm:$0xff] }
 0x22a   : > { %v1848_v12 = vmul.f32 %v4274_v47, %v1734_v7  ;;  %2867 = vmatpush1.bf16.msra.mxu0 %v2866_v44  ;;  %v2930_v50 = vpack.c.bf16 %v2351_v25, %v2349_v41  ;;  %v5049_v16 = vadd.f32 %v5627_v35, %v3927_v55  ;;  %v5054_v26 = vadd.f32 %v5628_v0, %v3919_v52  ;;  %v5631_v7 = vld [vmem:[#allocation33_spill] sm:$0xff] }
 0x22b   : > { %v2065_v56 = vadd.f32 %v1846_v58, %v1842_v60  ;;  %v1735_v15 = vsel %vm1351_vm1, %v4966_v42, %v2801_v33  ;;  %v5058_v18 = vadd.f32 %v5629_v62, %v3936_v34  ;;  %v5061_v5 = vadd.f32 %v2035_v36, %v4979_v43  ;;  %v2354_v60 = vld [vmem:[#allocation7 + $0x128] sm:$0xff]  ;;  %v5630_v36 = vld [vmem:[#allocation67_spill] sm:$0xff]  ;;  %v2353_v62 = vld [vmem:[#allocation7 + $0x120] sm:$0xff] }
 0x22c   : > { %v5063_v48 = vadd.f32 %v1848_v12, %v1844_v9  ;;  %v1849_v8 = vmul.f32 %v4335_v63, %v1735_v15  ;;  %2931 = vmatpush1.bf16.msra.mxu1 %v2930_v50  ;;  %v1535_v42 = vmul.f32 1.442695, %v5049_v16  ;;  %v2051_v1 = vrot.slane %v4987_v22, 4  ;;  %v2157_v12 = vld [vmem:[#allocation6 + $0x120] sm:$0xff]  ;;  %v2159_v50 = vld [vmem:[#allocation6 + $0x130] sm:$0xff] }
 0x22d   : > { %vm1353_vm2 = vcmp.gt.f32.partialorder %v4992_v45, 0.0  ;;  %v1539_v39 = vmul.f32 1.442695, %v5054_v26  ;;  %v1537_v41 = vmul.f32 1.442695, %v5058_v18  ;;  %v5073_v9 = vadd.f32 %v5630_v36, %v3921_v53 }
 0x22e   : > { %v3203_v25 = vpop.eup %3202  ;;  %v2058_v43 = vadd.f32 %v2057_v29, %v1849_v8  ;;  %3208 = vpow2.f32 %v1535_v42  ;;  %v2868_v31 = vpack.c.bf16 %v2160_v20, %v2158_v13  ;;  %v2932_v58 = vpack.c.bf16 %v2356_v23, %v2354_v60  ;;  %v2355_v8 = vld [vmem:[#allocation7 + $0x130] sm:$0xff] }
 0x22f   : > { %v2803_v44 = vadd.f32 -1.0, %v3203_v25  ;;  %3210 = vpow2.f32 %v1539_v39  ;;  %v5077_v33 = vadd.f32 %v5631_v7, %v3927_v55  ;;  %v2037_v15 = vrot.slane %v5061_v5, 2  ;;  %v5632_v39 = vld [vmem:[#allocation34_spill] sm:$0xff] }
 0x230   : > { %v3205_v35 = vpop.eup %3204  ;;  %v2059_v0 = vrot.slane %v2058_v43, 4  ;;  %3212 = vpow2.f32 %v1537_v41  ;;  %v1541_v29 = vmul.f32 1.442695, %v5073_v9  ;;  %2869 = vmatprep.subr.bf16.mxu0 %v2868_v31  ;;  %v2052_v13 = vadd.f32 %v2051_v1, %v4987_v22  ;;  %2933 = vmatprep.subr.bf16.mxu1 %v2932_v58 }
 0x231   : > { %v1737_v20 = vsel %vm1353_vm2, %v4992_v45, %v2803_v44  ;;  %v2802_v42 = vadd.f32 -1.0, %v3205_v35  ;;  %v1543_v60 = vmul.f32 1.442695, %v5077_v33  ;;  %vm1352_vm3 = vcmp.gt.f32.partialorder %v5012_v3, 0.0  ;;  %v5633_v35 = vld [vmem:[#allocation35_spill] sm:$0xff] }
 0x232   : > { %v1851_v23 = vmul.f32 %v4335_v63, %v1737_v20  ;;  %3214 = vpow2.f32 %v1541_v29  ;;  %v5090_v41 = vadd.f32 %v5632_v39, %v3919_v52  ;;  %v2870_v1 = vpack.c.bf16 %v2159_v50, %v2157_v12 }
 0x233   : > { %v3207_v25 = vpop.eup %3206  ;;  %v1736_v22 = vsel %vm1352_vm3, %v5012_v3, %v2802_v42  ;;  %3216 = vpow2.f32 %v1543_v60  ;;  %v2934_v36 = vpack.c.bf16 %v2355_v8, %v2353_v62  ;;  %v2060_v45 = vadd.f32 %v2059_v0, %v2058_v43  ;;  %v5634_v3 = vld [vmem:[#allocation36_spill] sm:$0xff]  ;;  %v2360_v60 = vld [vmem:[#allocation7 + $0x158] sm:$0xff] }
 0x234   : > { %v5094_v31 = vadd.f32 %v5036_v4, %v1851_v23  ;;  %v1850_v44 = vmul.f32 %v4335_v63, %v1736_v22  ;;  %v2804_v58 = vadd.f32 -1.0, %v3207_v25  ;;  %vm1354_vm4 = vcmp.gt.f32.partialorder %v5031_v54, 0.0  ;;  %2871 = vmatpush1.bf16.msra.mxu0 %v2870_v1  ;;  %v2168_v23 = vld [vmem:[#allocation6 + $0x178] sm:$0xff] }
 0x235   : > { %v1547_v7 = vmul.f32 1.442695, %v5090_v41  ;;  %2935 = vmatpush1.bf16.msra.mxu1 %v2934_v36  ;;  %v5101_v29 = vadd.f32 %v5633_v35, %v3936_v34  ;;  %v5105_v12 = vadd.f32 %v5634_v3, %v3921_v53  ;;  %v2053_v43 = vrot.slane %v2052_v13, 2  ;;  %v2364_v62 = vld [vmem:[#allocation7 + $0x178] sm:$0xff] }
 0x236   : > { %v2066_v50 = vadd.f32 %v2065_v56, %v1850_v44  ;;  %v1738_v0 = vsel %vm1354_vm4, %v5031_v54, %v2804_v58  ;;  %v5115_v39 = vadd.f32 %v2037_v15, %v5061_v5  ;;  %v2061_v25 = vrot.slane %v2060_v45, 2  ;;  %v5635_v5 = vld [vmem:[#allocation37_spill] sm:$0xff] }
 0x237   : > { %v1852_v8 = vmul.f32 %v4335_v63, %v1738_v0  ;;  %3218 = vpow2.f32 %v1547_v7  ;;  %v1545_v20 = vmul.f32 1.442695, %v5101_v29  ;;  %v1549_v1 = vmul.f32 1.442695, %v5105_v12 }
 0x238   : > { %v3209_v42 = vpop.eup %3208  ;;  %v5119_v44 = vadd.f32 %v2053_v43, %v2052_v13  ;;  %v2067_v58 = vrot.slane %v2066_v50, 4  ;;  %vm1355_vm5 = vcmp.gt.f32.partialorder %v5049_v16, 0.0  ;;  %vm1357_vm6 = vcmp.gt.f32.partialorder %v5054_v26, 0.0 }
 0x239   : > { %v3211_v22 = vpop.eup %3210  ;;  %v2082_v56 = vadd.f32 %v5063_v48, %v1852_v8  ;;  %v2805_v54 = vadd.f32 -1.0, %v3209_v42  ;;  %3220 = vpow2.f32 %v1545_v20  ;;  %v5125_v15 = vadd.f32 %v5635_v5, %v3927_v55  ;;  %v2358_v5 = vld [vmem:[#allocation7 + $0x148] sm:$0xff] }
 0x23a   : > { %v3213_v36 = vpop.eup %3212  ;;  %v2807_v7 = vadd.f32 -1.0, %v3211_v22  ;;  %3222 = vpow2.f32 %v1549_v1  ;;  %vm1356_vm7 = vcmp.gt.f32.partialorder %v5058_v18, 0.0  ;;  %vm1358_vm8 = vcmp.gt.f32.partialorder %v5073_v9, 0.0 }
 0x23b   : > { %v2806_v35 = vadd.f32 -1.0, %v3213_v36  ;;  %v2083_v3 = vrot.slane %v2082_v56, 4  ;;  %v1739_v0 = vsel %vm1355_vm5, %v5049_v16, %v2805_v54  ;;  %v5130_v43 = vadd.f32 %v2061_v25, %v2060_v45  ;;  %v2162_v16 = vld [vmem:[#allocation6 + $0x148] sm:$0xff]  ;;  %v5636_v25 = vld [vmem:[#allocation15_spill] sm:$0xff] }
 0x23c   : > { %v3215_v48 = vpop.eup %3214  ;;  %vm1359_vm9 = vcmp.gt.f32.partialorder %v5077_v33, 0.0  ;;  %vm1361_vm10 = vcmp.gt.f32.partialorder %v5090_v41, 0.0  ;;  %vm1360_vm11 = vcmp.gt.f32.partialorder %v5101_v29, 0.0  ;;  %v5135_v8 = vadd.f32 %v2067_v58, %v2066_v50  ;;  %v2164_v36 = vld [vmem:[#allocation6 + $0x158] sm:$0xff]  ;;  %v5637_v58 = vld [vmem:[#allocation14_spill] sm:$0xff] }
 0x23d   : > { %v3217_v13 = vpop.eup %3216  ;;  %v1741_v55 = vsel %vm1357_vm6, %v5054_v26, %v2807_v7  ;;  %v2808_v20 = vadd.f32 -1.0, %v3215_v48  ;;  %v1853_v22 = vmul.f32 %v4216_v2, %v1739_v0  ;;  %v1740_v54 = vsel %vm1356_vm7, %v5058_v18, %v2806_v35  ;;  %v5638_v18 = vld [vmem:[#allocation38_spill] sm:$0xff]  ;;  %v2161_v48 = vld [vmem:[#allocation6 + $0x140] sm:$0xff] }
 0x23e   : > { %v2809_v42 = vadd.f32 -1.0, %v3217_v13  ;;  %v1551_v45 = vmul.f32 1.442695, %v5125_v15  ;;  %v5143_v1 = vadd.f32 %v5636_v25, %v3919_v52  ;;  %v5145_v50 = vadd.f32 %v2083_v3, %v2082_v56  ;;  %v2163_v52 = vld [vmem:[#allocation6 + $0x150] sm:$0xff]  ;;  %v2357_v0 = vld [vmem:[#allocation7 + $0x140] sm:$0xff] }
 0x23f   : > { %v5152_v7 = vadd.f32 %v5637_v58, %v3936_v34  ;;  %v5156_v35 = vadd.f32 %v5638_v18, %v3921_v53  ;;  %v1855_v25 = vmul.f32 %v4216_v2, %v1741_v55  ;;  %v1854_v34 = vmul.f32 %v4216_v2, %v1740_v54  ;;  %v5166_v55 = vld [vmem:[#allocation6 + $0x160] sm:$0xff] }
 0x240   : > { %v1743_v26 = vsel %vm1359_vm9, %v5077_v33, %v2809_v42  ;;  %3224 = vpow2.f32 %v1551_v45  ;;  %v1555_v3 = vmul.f32 1.442695, %v5143_v1  ;;  %v2359_v33 = vld [vmem:[#allocation7 + $0x150] sm:$0xff]  ;;  %v2166_v42 = vld [vmem:[#allocation6 + $0x168] sm:$0xff]  ;;  %v1742_v53 = vsel %vm1358_vm8, %v5073_v9, %v2808_v20  ;;  %v5173_v54 = vld [vmem:[#allocation7 + $0x160] sm:$0xff] }
 0x241   : > { %v3219_v13 = vpop.eup %3218  ;;  %v1857_v56 = vmul.f32 %v4274_v47, %v1743_v26  ;;  %v1553_v18 = vmul.f32 1.442695, %v5152_v7  ;;  %v1557_v4 = vmul.f32 1.442695, %v5156_v35  ;;  %v2872_v14 = vpack.c.bf16 %v2164_v36, %v2162_v16 }
 0x242   : > { %v2811_v58 = vadd.f32 -1.0, %v3219_v13  ;;  %3226 = vpow2.f32 %v1555_v3  ;;  %v2936_v13 = vpack.c.bf16 %v2360_v60, %v2358_v5  ;;  %v2874_v36 = vpack.c.bf16 %v2163_v52, %v2161_v48 }
 0x243   : > { %v3221_v26 = vpop.eup %3220  ;;  %v5168_v45 = vadd.f32 %v1857_v56, %v1853_v22  ;;  %3228 = vpow2.f32 %v1553_v18  ;;  %v2172_v22 = vld [vmem:[#allocation6 + $0x198] sm:$0xff]  ;;  %v2366_v56 = vld [vmem:[#allocation7 + $0x188] sm:$0xff]  ;;  %2873 = vmatprep.subr.bf16.mxu0 %v2872_v14  ;;  %v2938_v51 = vpack.c.bf16 %v2359_v33, %v2357_v0  ;;  %v2876_v5 = vpack.c.bf16 %v2168_v23, %v2166_v42  ;;  %v5190_v18 = vld [vmem:[#allocation7 + $0x180] sm:$0xff] }
 0x244   : > { %v1745_v9 = vsel %vm1361_vm10, %v5090_v41, %v2811_v58  ;;  %v2810_v20 = vadd.f32 -1.0, %v3221_v26  ;;  %v3223_v3 = vpop.eup %3222  ;;  %3230 = vpow2.f32 %v1557_v4  ;;  %2937 = vmatprep.subr.bf16.mxu1 %v2936_v13  ;;  %v2940_v58 = vpack.c.bf16 %v2364_v62, %v2362_v30  ;;  %v5192_v26 = vld [vmem:[#allocation7 + $0x190] sm:$0xff]  ;;  %v5194_v14 = vld [vmem:[#allocation6 + $0x1a8] sm:$0xff]  ;;  %v5196_v4 = vld [vmem:[#allocation6 + $0x1b8] sm:$0xff]  ;;  %2875 = vmatpush1.bf16.msra.mxu0 %v2874_v36 }
 0x245   : > { %v1859_v16 = vmul.f32 %v4274_v47, %v1745_v9  ;;  %v2812_v60 = vadd.f32 -1.0, %v3223_v3  ;;  %vm1362_vm12 = vcmp.gt.f32.partialorder %v5105_v12, 0.0  ;;  %2939 = vmatpush1.bf16.msra.mxu1 %v2938_v51  ;;  %v5204_v30 = vld [vmem:[#allocation7 + $0x1a8] sm:$0xff]  ;;  %v2372_v62 = vld [vmem:[#allocation7 + $0x1b8] sm:$0xff]  ;;  %v5206_v23 = vld [vmem:[#allocation6 + $0x1a0] sm:$0xff]  ;;  %2877 = vmatprep.subr.bf16.mxu0 %v2876_v5  ;;  %v2942_v51 = vpack.c.bf16 %v5175_v6, %v5173_v54 }
 0x246   : > { %v1744_v41 = vsel %vm1360_vm11, %v5101_v29, %v2810_v20  ;;  %v2878_v29 = vpack.c.bf16 %v5171_v21, %v5166_v55  ;;  %v5208_v0 = vld [vmem:[#allocation6 + $0x1b0] sm:$0xff]  ;;  %v5210_v33 = vld [vmem:[#allocation7 + $0x1a0] sm:$0xff]  ;;  %2941 = vmatprep.subr.bf16.mxu1 %v2940_v58  ;;  %v2880_v21 = vpack.c.bf16 %v2172_v22, %v5180_v49  ;;  %v5219_v9 = vld [vmem:[#allocation6 + $0x1c8] sm:$0xff]  ;;  %v1856_v13 = vmul.f32 %v4216_v2, %v1742_v53 }
 0x247   : > { %v5198_v48 = vadd.f32 %v1859_v16, %v1855_v25  ;;  %v1858_v52 = vmul.f32 %v4274_v47, %v1744_v41  ;;  %v2075_v25 = vrot.slane %v5094_v31, 4  ;;  %v1746_v42 = vsel %vm1362_vm12, %v5105_v12, %v2812_v60  ;;  %v5217_v55 = vld [vmem:[#allocation7 + $0x1b0] sm:$0xff]  ;;  %v5221_v20 = vld [vmem:[#allocation6 + $0x1d8] sm:$0xff]  ;;  %v5227_v36 = vld [vmem:[#allocation7 + $0x1c8] sm:$0xff] }
 0x248   : > { %v1860_v16 = vmul.f32 %v4274_v47, %v1746_v42  ;;  %v2944_v12 = vpack.c.bf16 %v2368_v24, %v2366_v56  ;;  %v5229_v41 = vld [vmem:[#allocation7 + $0x1d8] sm:$0xff]  ;;  %v5231_v6 = vld [vmem:[#allocation6 + $0x1c0] sm:$0xff]  ;;  %vm1363_vm13 = vcmp.gt.f32.partialorder %v5125_v15, 0.0  ;;  %vm1365_vm14 = vcmp.gt.f32.partialorder %v5143_v1, 0.0  ;;  %v5242_v24 = vld [vmem:[#allocation7 + $0x1d0] sm:$0xff]  ;;  %2879 = vmatpush1.bf16.msra.mxu0 %v2878_v29 }
 0x249   : > { %v5224_v3 = vadd.f32 %v1858_v52, %v1854_v34  ;;  %vm1364_vm15 = vcmp.gt.f32.partialorder %v5152_v7, 0.0  ;;  %v2882_v49 = vpack.c.bf16 %v5185_v38, %v5183_v37  ;;  %v5238_v34 = vld [vmem:[#allocation6 + $0x1d0] sm:$0xff]  ;;  %v5240_v53 = vld [vmem:[#allocation7 + $0x1c0] sm:$0xff]  ;;  %vm1366_vm0 = vcmp.gt.f32.partialorder %v5156_v35, 0.0  ;;  %2943 = vmatpush1.bf16.msra.mxu1 %v2942_v51  ;;  %2881 = vmatprep.subr.bf16.mxu0 %v2880_v21 }
 0x24a   : > { %v3225_v54 = vpop.eup %3224  ;;  %v5244_v22 = vadd.f32 %v1860_v16, %v1856_v13  ;;  %v2946_v56 = vpack.c.bf16 %v5192_v26, %v5190_v18  ;;  %v2884_v60 = vpack.c.bf16 %v5196_v4, %v5194_v14  ;;  %2945 = vmatprep.subr.bf16.mxu1 %v2944_v12  ;;  %v2948_v37 = vpack.c.bf16 %v2372_v62, %v5204_v30  ;;  %v5641_v13 = vld [vmem:[#allocation30_spill] sm:$0xff] }
 0x24b   : > { %v2813_v38 = vadd.f32 -1.0, %v3225_v54  ;;  %v2886_v5 = vpack.c.bf16 %v5208_v0, %v5206_v23  ;;  %v2950_v58 = vpack.c.bf16 %v5217_v55, %v5210_v33  ;;  %v2888_v29 = vpack.c.bf16 %v5221_v20, %v5219_v9  ;;  %v5639_v23 = vld [vmem:[#allocation22_spill] sm:$0xff]  ;;  %v2182_v9 = vld [vmem:[#allocation6 + $0x1e8] sm:$0xff]  ;;  %v2184_v20 = vld [vmem:[#allocation6 + $0x1f8] sm:$0xff] }
 0x24c   : > { %v3227_v52 = vpop.eup %3226  ;;  %v2952_v18 = vpack.c.bf16 %v5229_v41, %v5227_v36  ;;  %v2890_v26 = vpack.c.bf16 %v5238_v34, %v5231_v6  ;;  %v2954_v14 = vpack.c.bf16 %v5242_v24, %v5240_v53  ;;  %v1770_v0 = vmul.f32 %v4216_v2, %v5639_v23  ;;  %v5640_v33 = vld [vmem:[#allocation26_spill] sm:$0xff]  ;;  %2883 = vmatpush1.bf16.msra.mxu0 %v2882_v49  ;;  %v2378_v54 = vld [vmem:[#allocation7 + $0x1e8] sm:$0xff] }
 0x24d   : > { %v3229_v4 = vpop.eup %3228  ;;  %v1747_v30 = vsel %vm1363_vm13, %v5125_v15, %v2813_v38  ;;  %v2815_v62 = vadd.f32 -1.0, %v3227_v52  ;;  %v1774_v42 = vmul.f32 %v4274_v47, %v5640_v33  ;;  %2947 = vmatpush1.bf16.msra.mxu1 %v2946_v56  ;;  %v1778_v16 = vmul.f32 %v4335_v63, %v5641_v13  ;;  %v5642_v12 = vld [vmem:[#allocation46_spill] sm:$0xff]  ;;  %2885 = vmatprep.subr.bf16.mxu0 %v2884_v60  ;;  %v2380_v56 = vld [vmem:[#allocation7 + $0x1f8] sm:$0xff] }
 0x24e   : > { %v3231_v51 = vpop.eup %3230  ;;  %v1861_v21 = vmul.f32 %v4335_v63, %v1747_v30  ;;  %v2814_v55 = vadd.f32 -1.0, %v3229_v4  ;;  %v1782_v15 = vmul.f32 %v4216_v2, %v5642_v12  ;;  %2949 = vmatprep.subr.bf16.mxu1 %v2948_v37  ;;  %v1786_v6 = vmul.f32 %v4274_v47, %v4638_v10  ;;  %v2183_v4 = vld [vmem:[#allocation6 + $0x1f0] sm:$0xff] }
 0x24f   : > { %v1749_v36 = vsel %vm1365_vm14, %v5143_v1, %v2815_v62  ;;  %v2816_v41 = vadd.f32 -1.0, %v3231_v51  ;;  %v1790_v49 = vmul.f32 %v4335_v63, %v4663_v59  ;;  %v1873_v1 = vadd.f32 %v1774_v42, %v1770_v0  ;;  %v2379_v0 = vld [vmem:[#allocation7 + $0x1f0] sm:$0xff] }
 0x250   : > { %v2090_v34 = vadd.f32 %v5168_v45, %v1861_v21  ;;  %v1863_v53 = vmul.f32 %v4335_v63, %v1749_v36  ;;  %v1748_v24 = vsel %vm1364_vm15, %v5152_v7, %v2814_v55  ;;  %v2892_v38 = vpack.c.bf16 %v2184_v20, %v2182_v9  ;;  %2887 = vmatpush1.bf16.msra.mxu0 %v2886_v5  ;;  %v2181_v7 = vld [vmem:[#allocation6 + $0x1e0] sm:$0xff] }
 0x251   : > { %v1862_v60 = vmul.f32 %v4335_v63, %v1748_v24  ;;  %v1750_v10 = vsel %vm1366_vm0, %v5156_v35, %v2816_v41  ;;  %v1905_v37 = vadd.f32 %v1786_v6, %v1782_v15  ;;  %v2069_v59 = vrot.slane %v5135_v8, 2  ;;  %2951 = vmatpush1.bf16.msra.mxu1 %v2950_v58  ;;  %2889 = vmatprep.subr.bf16.mxu0 %v2888_v29  ;;  %v2377_v35 = vld [vmem:[#allocation7 + $0x1e0] sm:$0xff] }
 0x252   : > { %v5294_v45 = vadd.f32 %v5198_v48, %v1863_v53  ;;  %v1864_v52 = vmul.f32 %v4335_v63, %v1750_v10  ;;  %v1874_v30 = vadd.f32 %v1873_v1, %v1778_v16  ;;  %2953 = vmatprep.subr.bf16.mxu1 %v2952_v18  ;;  %v2956_v23 = vpack.c.bf16 %v2380_v56, %v2378_v54  ;;  %v5644_v53 = vld [vmem:[#allocation23_spill] sm:$0xff] }
 0x253   : > { %v2098_v62 = vadd.f32 %v5224_v3, %v1862_v60  ;;  %v1906_v33 = vadd.f32 %v1905_v37, %v1790_v49  ;;  %v2039_v42 = vrot.slane %v5115_v39, 1  ;;  %v2063_v48 = vrot.slane %v5130_v43, 1  ;;  %v5645_v56 = vld [vmem:[#allocation27_spill] sm:$0xff] }
 0x254   : > { %v5303_v5 = vadd.f32 %v2075_v25, %v5094_v31  ;;  %v2114_v58 = vadd.f32 %v5244_v22, %v1864_v52  ;;  %v1875_v51 = vrot.slane %v1874_v30, 4  ;;  %v2091_v21 = vrot.slane %v2090_v34, 4  ;;  %2891 = vmatpush1.bf16.msra.mxu0 %v2890_v26  ;;  %v5647_v10 = vld [vmem:[#allocation47_spill] sm:$0xff] }
 0x255   : > { %v2099_v3 = vrot.slane %v2098_v62, 4  ;;  %v2894_v29 = vpack.c.bf16 %v2183_v4, %v2181_v7  ;;  %v1907_v18 = vrot.slane %v1906_v33, 4  ;;  %v2085_v55 = vrot.slane %v5145_v50, 2  ;;  %2955 = vmatpush1.bf16.msra.mxu1 %v2954_v14  ;;  %2893 = vmatprep.subr.bf16.mxu0 %v2892_v38 }
 0x256   : > { %v2958_v9 = vpack.c.bf16 %v2379_v0, %v2377_v35  ;;  %v1876_v20 = vadd.f32 %v1875_v51, %v1874_v30  ;;  %v2070_v13 = vadd.f32 %v2069_v59, %v5135_v8  ;;  %2957 = vmatprep.subr.bf16.mxu1 %v2956_v23  ;;  %vm2213_vm1 = vcmask 1041409  }
 0x257   : > { %v2100_v16 = vadd.f32 %v2099_v3, %v2098_v62  ;;  %v1908_v31 = vadd.f32 %v1907_v18, %v1906_v33  ;;  %vm2215_vm2 = vcmask 1042434   ;;  %v5643_v22 = vrot.slane %v4976_v11, 1 }
 0x258   : > { %v1877_v25 = vrot.slane %v1876_v20, 2  ;;  %v2040_v15 = vadd.f32 %v2039_v42, %v5115_v39  ;;  %vm2217_vm3 = vcmask 1043459   ;;  %v5312_v26 = vadd.f32 %v2091_v21, %v2090_v34  ;;  %2895 = vmatpush1.bf16.msra.mxu0 %v2894_v29  ;;  %v5646_v34 = vld [vmem:[#allocation31_spill] sm:$0xff]  ;;  %v5648_v21 = vld [vmem:[#allocation24_spill] sm:$0xff] }
 0x259   : > { %v2008_v12 = vadd.f32 %v5643_v22, %v4976_v11  ;;  %v2115_v14 = vrot.slane %v2114_v58, 4  ;;  %v1909_v36 = vrot.slane %v1908_v31, 2  ;;  %v2101_v41 = vrot.slane %v2100_v16, 2  ;;  %2959 = vmatpush1.bf16.msra.mxu1 %v2958_v9  ;;  %v5651_v22 = vld [vmem:[#allocation44_spill] sm:$0xff] }
 0x25a   : > { %vm2219_vm4 = vcmask 1044484   ;;  %v2107_v8 = vrot.slane %v5294_v45, 4  ;;  %v1878_v6 = vadd.f32 %v1877_v25, %v1876_v20  ;;  %v2071_v49 = vrot.slane %v2070_v13, 1 }
 0x25b   : > { %v1772_v24 = vmul.f32 %v4216_v2, %v5644_v53  ;;  %v1910_v54 = vadd.f32 %v1909_v36, %v1908_v31  ;;  %v2102_v11 = vadd.f32 %v2101_v41, %v2100_v16  ;;  %v1776_v39 = vmul.f32 %v4274_v47, %v5645_v56  ;;  %v5649_v16 = vld [vmem:[#allocation17_spill] sm:$0xff]  ;;  %v5650_v31 = vld [vmem:[#allocation28_spill] sm:$0xff]  ;;  %v5652_v36 = vld [vmem:[#allocation50_spill] sm:$0xff] }
 0x25c   : > { %v1780_v1 = vmul.f32 %v4335_v63, %v5646_v34  ;;  %v1879_v60 = vrot.slane %v1878_v6, 1  ;;  %v1784_v38 = vmul.f32 %v4216_v2, %v5647_v10  ;;  %v1788_v37 = vmul.f32 %v4274_v47, %v4644_v19 }
 0x25d   : > { %v1792_v59 = vmul.f32 %v4335_v63, %v4672_v57  ;;  %v2116_v52 = vadd.f32 %v2115_v14, %v2114_v58  ;;  %v1911_v7 = vrot.slane %v1910_v54, 1  ;;  %v2103_v4 = vrot.slane %v2102_v11, 1 }
 0x25e   : > { %v1889_v30 = vadd.f32 %v1776_v39, %v1772_v24  ;;  %v2093_v62 = vrot.slane %v5312_v26, 2  ;;  %vm2221_vm5 = vcmask 1045509   ;;  %vm2223_vm6 = vcmask 1046534  }
 0x25f   : > { %v1921_v23 = vadd.f32 %v1788_v37, %v1784_v38  ;;  %v1880_v35 = vadd.f32 %v1879_v60, %v1878_v6  ;;  %v1912_v0 = vadd.f32 %v1911_v7, %v1910_v54  ;;  %v2072_v33 = vadd.f32 %v2071_v49, %v2070_v13 }
 0x260   : > { %v1890_v42 = vadd.f32 %v1889_v30, %v1780_v1  ;;  %vm2225_vm7 = vcmask 1047559   ;;  %v2086_v19 = vadd.f32 %v2085_v55, %v5145_v50  ;;  %v1773_v57 = vmul.f32 %v4274_v47, %v5648_v21 }
 0x261   : > { %v1922_v51 = vadd.f32 %v1921_v23, %v1792_v59  ;;  %v2104_v58 = vadd.f32 %v2103_v4, %v2102_v11  ;;  %v2227_v3 = vsel %vm2213_vm1, %v1912_v0, %v1880_v35  ;;  %v2117_v18 = vrot.slane %v2116_v52, 2  ;;  %v5654_v4 = vld [vmem:[#allocation21_spill] sm:$0xff] }
 0x262   : > { %v1891_v29 = vrot.slane %v1890_v42, 4  ;;  %v2228_v9 = vsel %vm2215_vm2, %v4772_v17, %v2227_v3  ;;  %v1769_v13 = vmul.f32 %v4216_v2, %v5649_v16  ;;  %v1777_v25 = vmul.f32 %v4335_v63, %v5650_v31  ;;  %v5655_v23 = vld [vmem:[#allocation29_spill] sm:$0xff] }
 0x263   : > { %v1923_v20 = vrot.slane %v1922_v51, 4  ;;  %v2229_v50 = vsel %vm2217_vm3, %v4921_v40, %v2228_v9  ;;  %v1781_v14 = vmul.f32 %v4216_v2, %v5651_v22  ;;  %v1785_v41 = vmul.f32 %v4274_v47, %v5652_v36 }
 0x264   : > { %v1892_v55 = vadd.f32 %v1891_v29, %v1890_v42  ;;  %v2230_v6 = vsel %vm2219_vm4, %v2008_v12, %v2229_v50  ;;  %v1789_v49 = vmul.f32 %v4335_v63, %v4651_v32  ;;  %v1865_v53 = vadd.f32 %v1773_v57, %v1769_v13  ;;  %v5656_v42 = vld [vmem:[#allocation45_spill] sm:$0xff] }
 0x265   : > { %v1924_v17 = vadd.f32 %v1923_v20, %v1922_v51  ;;  %v5348_v24 = vadd.f32 %v2107_v8, %v5294_v45  ;;  %v2231_v54 = vsel %vm2221_vm5, %v2040_v15, %v2230_v6  ;;  %v1897_v11 = vadd.f32 %v1785_v41, %v1781_v14  ;;  %v5653_v8 = vld [vmem:[#allocation25_spill] sm:$0xff]  ;;  %v5657_v51 = vld [vmem:[#allocation51_spill] sm:$0xff] }
 0x266   : > { %v1893_v40 = vrot.slane %v1892_v55, 2  ;;  %v2232_v56 = vsel %vm2223_vm6, %v2072_v33, %v2231_v54  ;;  %v2055_v34 = vrot.slane %v5119_v44, 1  ;;  %v1866_v1 = vadd.f32 %v1865_v53, %v1777_v25 }
 0x267   : > { %v1925_v39 = vrot.slane %v1924_v17, 2  ;;  %v2233_v12 = vsel %vm2225_vm7, %v2104_v58, %v2232_v56  ;;  %v2118_v10 = vadd.f32 %v2117_v18, %v2116_v52  ;;  %v1898_v38 = vadd.f32 %v1897_v11, %v1789_v49 }
 0x268   : > { %v1894_v60 = vadd.f32 %v1893_v40, %v1892_v55  ;;  %2300 = vmatprep.mubr.f32.mxu0 %v2233_v12  ;;  %v2087_v37 = vrot.slane %v2086_v19, 1  ;;  %v1867_v45 = vrot.slane %v1866_v1, 4  ;;  %v1775_v15 = vmul.f32 %v4274_v47, %v5653_v8 }
 0x269   : > { %v1926_v32 = vadd.f32 %v1925_v39, %v1924_v17  ;;  %v1899_v7 = vrot.slane %v1898_v38, 4  ;;  %v1771_v30 = vmul.f32 %v4216_v2, %v5654_v4  ;;  %v1779_v35 = vmul.f32 %v4335_v63, %v5655_v23 }
 0x26a   : > { %v1895_v59 = vrot.slane %v1894_v60, 1  ;;  %v1868_v33 = vadd.f32 %v1867_v45, %v1866_v1  ;;  %v1783_v52 = vmul.f32 %v4216_v2, %v5656_v42  ;;  %v1787_v21 = vmul.f32 %v4274_v47, %v5657_v51  ;;  %v5663_v45 = vld [vmem:[#allocation40_spill] sm:$0xff] }
 0x26b   : > { %v1927_v0 = vrot.slane %v1926_v32, 1  ;;  %v2119_v57 = vrot.slane %v2118_v10, 1  ;;  %v1900_v58 = vadd.f32 %v1899_v7, %v1898_v38  ;;  %v1791_v3 = vmul.f32 %v4335_v63, %v4657_v27  ;;  %v5666_v42 = vld [vmem:[#allocation20_spill] sm:$0xff] }
 0x26c   : > { %v1881_v29 = vadd.f32 %v1775_v15, %v1771_v30  ;;  %v1896_v18 = vadd.f32 %v1895_v59, %v1894_v60  ;;  %v1869_v20 = vrot.slane %v1868_v33, 2  ;;  %v1913_v16 = vadd.f32 %v1787_v21, %v1783_v52  ;;  %v5661_v60 = vld [vmem:[#allocation41_spill] sm:$0xff]  ;;  %v5667_v21 = vld [vmem:[#allocation18_spill] sm:$0xff] }
 0x26d   : > { %v1928_v9 = vadd.f32 %v1927_v0, %v1926_v32  ;;  %v2094_v13 = vadd.f32 %v2093_v62, %v5312_v26  ;;  %v5658_v31 = vrot.slane %v4982_v46, 1  ;;  %v1901_v2 = vrot.slane %v1900_v58, 2 }
 0x26e   : > { %v1882_v50 = vadd.f32 %v1881_v29, %v1779_v35  ;;  %v2056_v47 = vadd.f32 %v2055_v34, %v5119_v44  ;;  %v1870_v22 = vadd.f32 %v1869_v20, %v1868_v33  ;;  %v1914_v14 = vadd.f32 %v1913_v16, %v1791_v3  ;;  %v5665_v35 = vld [vmem:[#allocation39_spill] sm:$0xff] }
 0x26f   : > { %v2024_v25 = vadd.f32 %v5658_v31, %v4982_v46  ;;  %v2416_v55 = vsel %vm2213_vm1, %v1928_v9, %v1896_v18  ;;  %v2088_v63 = vadd.f32 %v2087_v37, %v2086_v19  ;;  %v1902_v36 = vadd.f32 %v1901_v2, %v1900_v58 }
 0x270   : > { %v2417_v27 = vsel %vm2215_vm2, %v4836_v28, %v2416_v55  ;;  %v1883_v41 = vrot.slane %v1882_v50, 4  ;;  %v2120_v6 = vadd.f32 %v2119_v57, %v2118_v10  ;;  %v1871_v62 = vrot.slane %v1870_v22, 1 }
 0x271   : > { %v2418_v26 = vsel %vm2217_vm3, %v4947_v61, %v2417_v27  ;;  %v1915_v46 = vrot.slane %v1914_v14, 4  ;;  %v2077_v17 = vrot.slane %v5303_v5, 2  ;;  %v1903_v49 = vrot.slane %v1902_v36, 1  ;;  %v5659_v61 = vld [vmem:[#allocation19_spill] sm:$0xff] }
 0x272   : > { %v2419_v44 = vsel %vm2219_vm4, %v2024_v25, %v2418_v26  ;;  %v1884_v53 = vadd.f32 %v1883_v41, %v1882_v50  ;;  %v2109_v54 = vrot.slane %v5348_v24, 2  ;;  %v2095_v40 = vrot.slane %v2094_v13, 1 }
 0x273   : > { %v2420_v19 = vsel %vm2221_vm5, %v2056_v47, %v2419_v44  ;;  %v1916_v28 = vadd.f32 %v1915_v46, %v1914_v14  ;;  %v1872_v56 = vadd.f32 %v1871_v62, %v1870_v22  ;;  %v1904_v39 = vadd.f32 %v1903_v49, %v1902_v36  ;;  %v5672_v44 = vld [vmem:[#allocation12_spill] sm:$0xff] }
 0x274   : > { %v2421_v11 = vsel %vm2223_vm6, %v2088_v63, %v2420_v19  ;;  %v1885_v34 = vrot.slane %v1884_v53, 2  ;;  %v5660_v1 = vrot.slane %v5659_v61, 1  ;;  %v5662_v10 = vrot.slane %v5661_v60, 2 }
 0x275   : > { %v2422_v32 = vsel %vm2225_vm7, %v2120_v6, %v2421_v11  ;;  %v1917_v37 = vrot.slane %v1916_v28, 2  ;;  %v5664_v8 = vrot.slane %v5663_v45, 1  ;;  %v2078_v59 = vadd.f32 %v2077_v17, %v5303_v5  ;;  %v2185_v17 = vld [vmem:[%s5468_s7] sm:$0x3] }
 0x276   : > { %v2000_v12 = vadd.f32 %v5660_v1, %v5659_v61  ;;  %v2046_v38 = vadd.f32 %v5662_v10, %v5661_v60  ;;  %2489 = vmatprep.mubr.f32.mxu1 %v2422_v32  ;;  %v2214_v7 = vsel %vm2213_vm1, %v1904_v39, %v1872_v56  ;;  %v1886_v4 = vadd.f32 %v1885_v34, %v1884_v53  ;;  %v5673_v53 = vld [vmem:[#allocation13_spill] sm:$0xff] }
 0x277   : > { %v2032_v15 = vadd.f32 %v5664_v8, %v5663_v45  ;;  %v2110_v30 = vadd.f32 %v2109_v54, %v5348_v24  ;;  %v2064_v23 = vadd.f32 %v2063_v48, %v5130_v43  ;;  %v2216_v0 = vsel %vm2215_vm2, %v5665_v35, %v2214_v7  ;;  %v5668_v24 = vld [vmem:[#allocation60_spill] sm:$0xff]  ;;  %v2506_v45 = vld [vmem:[%s5471_s10] sm:$0x3] }
 0x278   : > { %v1918_v33 = vadd.f32 %v1917_v37, %v1916_v28  ;;  %v2015_v52 = vrot.slane %v5666_v42, 1  ;;  %v2096_v51 = vadd.f32 %v2095_v40, %v2094_v13  ;;  %v2218_v5 = vsel %vm2217_vm3, %v5667_v21, %v2216_v0  ;;  %v5670_v43 = vld [vmem:[#allocation16_spill] sm:$0xff]  ;;  %v2381_v28 = vld [vmem:[%s5470_s9] sm:$0x3] }
 0x279   : > { %v1887_v57 = vrot.slane %v1886_v4, 1  ;;  %v2047_v58 = vrot.slane %v2046_v38, 1  ;;  %v2220_v3 = vsel %vm2219_vm4, %v2000_v12, %v2218_v5  ;;  %v5669_v18 = vrot.slane %v5668_v24, 1  ;;  %v2523_v35 = vld [vmem:[%s5674_s22] sm:$0x3] }
 0x27a   : > { %v1919_v29 = vrot.slane %v1918_v33, 1  ;;  %v5671_v48 = vrot.slane %v5670_v43, 1  ;;  %v2079_v16 = vrot.slane %v2078_v59, 1  ;;  %v2222_v31 = vsel %vm2221_vm5, %v2032_v15, %v2220_v3 }
 0x27b   : > { %v1952_v9 = vadd.f32 %v5669_v18, %v5668_v24  ;;  %v2224_v13 = vsel %vm2223_vm6, %v2064_v23, %v2222_v31  ;;  %v1888_v25 = vadd.f32 %v1887_v57, %v1886_v4  ;;  %v2111_v50 = vrot.slane %v2110_v30, 1 }
 0x27c   : > { %v1984_v20 = vadd.f32 %v5671_v48, %v5670_v43  ;;  %v1920_v2 = vadd.f32 %v1919_v29, %v1918_v33  ;;  %v2016_v47 = vadd.f32 %v2015_v52, %v5666_v42  ;;  %v2226_v55 = vsel %vm2225_vm7, %v2096_v51, %v2224_v13 }
 0x27d   : > { %v2048_v22 = vadd.f32 %v2047_v58, %v2046_v38  ;;  %2301 = vmatmul.mubr.f32.vlgmr.msra.gmra.mrb[48].mxu0 %v2226_v55  ;;  %v2080_v63 = vadd.f32 %v2079_v16, %v2078_v59  ;;  %v2112_v36 = vadd.f32 %v2111_v50, %v2110_v30  ;;  %v2190_v49 = vrot.slane %v2185_v17, %v5672_v44 }
 0x27e   : > { %v2409_v14 = vsel %vm2213_vm1, %v1920_v2, %v1888_v25  ;;  %v2194_v54 = vrot.slane %v2185_v17, %v5673_v53  ;;  %v2386_v34 = vrot.slane %v2381_v28, %v5672_v44  ;;  %v2390_v1 = vrot.slane %v2381_v28, %v5673_v53 }
 0x27f   : > { %v2410_v27 = vsel %vm2215_vm2, %v1952_v9, %v2409_v14  ;;  %v2511_v15 = vrot.slane %v2506_v45, %v5672_v44  ;;  %v2515_v4 = vrot.slane %v2506_v45, %v5673_v53  ;;  %v2528_v51 = vrot.slane %v2523_v35, %v5672_v44 }
 0x280   : > { %v2411_v41 = vsel %vm2217_vm3, %v1984_v20, %v2410_v27  ;;  %v2532_v58 = vrot.slane %v2523_v35, %v5673_v53  ;;  %vm2540_vm12 = vcmask 7168   ;;  %v2821_v20 = vld [vmem:[%s5675_s18] ss:$0 sm:$0xff]  ;;  %vm2550_vm13 = vcmask 15360  }
 0x281   : > { %v2412_v6 = vsel %vm2219_vm4, %v2016_v47, %v2411_v41 }
 0x282   : > { %v2413_v26 = vsel %vm2221_vm5, %v2048_v22, %v2412_v6 }
 0x283   : > { %v2414_v62 = vsel %vm2223_vm6, %v2080_v63, %v2413_v26 }
 0x284   : > { %v2415_v46 = vsel %vm2225_vm7, %v2112_v36, %v2414_v62 }
 0x285   : > { %2490 = vmatmul.mubr.f32.vlgmr.msra.gmra.mrb[48].mxu1 %v2415_v46 }
 0x350   : > { %v2302_v19 = vpop.f32.mrb[48].mxu0 }
 0x351   : > { %v2303_v40 = vadd.f32 %v2302_v19, %v2190_v49  ;;  %v2304_v11 = vpop.f32.mrb[49].mxu0 }
 0x352   : > { %v2305_v56 = vadd.f32 %v2304_v11, %v2194_v54 }
 0x353   : > { %v2309_v39 = vmul.f32 1.442695, %v2303_v40  ;;  %vm2307_vm8 = vcmp.gt.f32.partialorder %v2303_v40, 0.0 }
 0x354   : > { %v2311_v61 = vmul.f32 1.442695, %v2305_v56  ;;  %vm2308_vm9 = vcmp.gt.f32.partialorder %v2305_v56, 0.0 }
 0x355   : > { %3232 = vpow2.f32 %v2309_v39 }
 0x356   : > { %3234 = vpow2.f32 %v2311_v61 }
 0x358   : > { %v2491_v12 = vpop.f32.mrb[48].mxu1 }
 0x359   : > { %v2492_v60 = vadd.f32 %v2491_v12, %v2386_v34  ;;  %v2493_v10 = vpop.f32.mrb[49].mxu1 }
 0x35a   : > { %v2494_v38 = vadd.f32 %v2493_v10, %v2390_v1 }
 0x35b   : > { %v2498_v32 = vmul.f32 1.442695, %v2492_v60  ;;  %vm2496_vm10 = vcmp.gt.f32.partialorder %v2492_v60, 0.0 }
 0x35c   : > { %v2500_v37 = vmul.f32 1.442695, %v2494_v38  ;;  %vm2497_vm11 = vcmp.gt.f32.partialorder %v2494_v38, 0.0 }
 0x35d   : > { %3236 = vpow2.f32 %v2498_v32 }
 0x35e   : > { %3238 = vpow2.f32 %v2500_v37 }
 0x35f   : > { %v3233_v8 = vpop.eup %3232 }
 0x360   : > { %v3235_v59 = vpop.eup %3234  ;;  %v2817_v7 = vadd.f32 -1.0, %v3233_v8 }
 0x361   : > { %v2818_v30 = vadd.f32 -1.0, %v3235_v59 }
 0x362   : > { %v2315_v23 = vsel %vm2307_vm8, %v2303_v40, %v2817_v7 }
 0x363   : > { %v2316_v0 = vsel %vm2308_vm9, %v2305_v56, %v2818_v30  ;;  %v2518_v33 = vmul.f32 %v2511_v15, %v2315_v23 }
 0x364   : > { %v2519_v42 = vmul.f32 %v2515_v4, %v2316_v0 }
 0x366   : > { %v2520_v21 = vadd.f32 %v2519_v42, %v2518_v33 }
 0x367   : > { %v3237_v52 = vpop.eup %3236 }
 0x368   : > { %v3239_v5 = vpop.eup %3238  ;;  %v2819_v57 = vadd.f32 -1.0, %v3237_v52  ;;  %2521 = vadd.xlane.f32.xlu1 %v2520_v21 }
 0x369   : > { %v2820_v3 = vadd.f32 -1.0, %v3239_v5 }
 0x36a   : > { %v2504_v29 = vsel %vm2496_vm10, %v2492_v60, %v2819_v57 }
 0x36b   : > { %v2505_v24 = vsel %vm2497_vm11, %v2494_v38, %v2820_v3  ;;  %v2535_v18 = vmul.f32 %v2528_v51, %v2504_v29 }
 0x36c   : > { %v2536_v9 = vmul.f32 %v2532_v58, %v2505_v24 }
 0x36e   : > { %v2537_v43 = vadd.f32 %v2536_v9, %v2535_v18 }
 0x370   : > { %2538 = vadd.xlane.f32.xlu0 %v2537_v43 }
 0x3f5   : > { %v2522_v48 = vpop.xlane.xlu1 %2521 }
 0x3fd   : > { %v2539_v16 = vpop.xlane.xlu0 %2538 }
 0x3fe   : > { %v2541_v31 = vsel %vm2540_vm12, %v2522_v48, %v2539_v16 }
 0x3ff   : > { %v2549_v13 = vadd.f32 %v2821_v20, %v2541_v31 }
 0x401   : > { %2551 = vst.msk [vmem:[%s514_s23] sm:$0xff] %vm2550_vm13, %v2549_v13 }
 0x402 PF: > { %p25_p10 = scmp.ge.s32.totalorder %s3591_s5, 4   ;;  %s5677_s25 = smov %s3388_s26 }
 0x403   : > { %s5678_s26 = smov %s3392_s27  ;;  %s5679_s27 = smov %s3601_s19 }
 0x404   : > { %s5680_s28 = smov %s3591_s5  ;;  %27 = sbr.rel (!%p25_p10) target bundleno = 10 (0xa), region = 127 }
 0x40b   :  { %2571 = vsyncpa [#allocation3], 1 }
 0x40c   :  { %2573 = vsyncpa [#allocation3 + $0x1], 1 }
 0x40d   :  { %2574 = vsyncpa [#allocation5], 1 }
 0x40e   :  { %2575 = vsyncpa [#allocation8], 1 }

</bundles_post_ra>
